<compile_context>
chip_gen: v7x
topology: tpu7x:2x2x1
jax: 0.10.0
libtpu: 0.0.40
codegen_flags: <defaults>
</compile_context>

<pallas_src>
import numpy as np
import jax
import jax.numpy as jnp
from jax.experimental import pallas as pl
from jax.experimental.pallas import tpu as pltpu

LANES = 256      # lane width of the conv stages (columns x channels packed into lanes)
FC_LANES = 128   # lane width of the fc stages


def _round_up(v, m):
    return (v + m - 1) // m * m


# ---------------------------------------------------------------------------
# Host-side weight packing (block-Toeplitz conv weights, permuted fc1 weights)
# ---------------------------------------------------------------------------

def _conv_toeplitz(w, *, n_wout, gin, gout, lanes=LANES):
    """w: (Cout, Cin, 5, 5).  Returns (5, lanes, lanes) bf16 with
       rhs[i, gin*(wout + j) + c, gout*wout + o] = w[o, c, i, j]  (else 0),
       i.e. the column taps + channels are absorbed into one dense K tile."""
    cout, cin, kh, kw = w.shape
    flat = jnp.concatenate([w.astype(jnp.float32).reshape(-1),
                            jnp.zeros((1,), jnp.float32)])
    zero_idx = cout * cin * kh * kw
    idx = np.full((kh, lanes, lanes), zero_idx, dtype=np.int32)
    oidx = np.arange(cout, dtype=np.int32)
    for i in range(kh):
        for wo in range(n_wout):
            for j in range(kw):
                for c in range(cin):
                    idx[i, gin * (wo + j) + c, gout * wo + oidx] = (
                        (oidx * cin + c) * kh + i) * kw + j
    return jnp.take(flat, jnp.asarray(idx)).astype(jnp.bfloat16)


def _fc1_blocks(w):
    """w: (120, 400), torch flatten order f = c*25 + h*5 + x.
       Returns (5, 256, 128) bf16: blk[h, 32*x + c, o] = w[o, c*25 + h*5 + x]."""
    flat = jnp.concatenate([w.astype(jnp.float32).reshape(-1),
                            jnp.zeros((1,), jnp.float32)])
    zero_idx = 120 * 400
    idx = np.full((5, LANES, FC_LANES), zero_idx, dtype=np.int32)
    oidx = np.arange(120, dtype=np.int32)
    for h in range(5):
        for xw in range(5):
            for c in range(16):
                idx[h, 32 * xw + c, oidx] = oidx * 400 + (c * 25 + h * 5 + xw)
    return jnp.take(flat, jnp.asarray(idx)).astype(jnp.bfloat16)


def _fc_mat(w, lanes=FC_LANES):
    """(out, in) torch Linear weight -> lane-padded (lanes, lanes) bf16 (x @ W)."""
    o, i = w.shape
    m = jnp.zeros((lanes, lanes), jnp.float32).at[:i, :o].set(
        w.T.astype(jnp.float32))
    return m.astype(jnp.bfloat16)


def _shift_mat(shift, lanes=LANES):
    """0/1 matrix S with (y @ S)[:, l] = y[:, l + shift]  (zeros shifted in)."""
    m = np.zeros((lanes, lanes), dtype=np.float32)
    for l in range(lanes - shift):
        m[l + shift, l] = 1.0
    return jnp.asarray(m, dtype=jnp.bfloat16)


def _group_bias(b, group, n_groups, lanes=LANES):
    """row[w*group + o] = b[o]  (broadcast over the column groups in the lanes)."""
    g = jnp.zeros((group,), jnp.float32).at[:b.shape[0]].set(b.astype(jnp.float32))
    row = jnp.tile(g, (n_groups,))
    return jnp.pad(row, (0, lanes - group * n_groups)).reshape(1, lanes)


def _row_bias(b, lanes=FC_LANES):
    return jnp.zeros((1, lanes), jnp.float32).at[0, :b.shape[0]].set(
        b.astype(jnp.float32))


# ---------------------------------------------------------------------------
# The fused kernel
# ---------------------------------------------------------------------------
# Layouts (bt = batch tile, rows of every 2-D operand are (spatial_row, sample)):
#   x      : (32, bt, 256)            lane = col*8 + ch          (ch 3 -> 8 pad, bf16)
#   conv1  : (28*bt, 256) f32         lane = col*8 + out_ch      (out_ch 6 -> 8 pad)
#   pool1  : (14*bt, 256) bf16        valid at lanes (2*wp)*8 + c
#   conv2  : (10*bt, 256) f32         lane = col*16 + out_ch     (16 real)
#   pool2  : (5*bt, 256)  bf16        valid at lanes (2*wp)*16 + c
#   fc*    : (bt, 128)

def _lenet_kernel(x_ref, w1_ref, s1_ref, b1_ref, w2_ref, s2_ref, b2_ref,
                  wf1_ref, bf1_ref, wf2_ref, bf2_ref, wf3_ref, bf3_ref,
                  out_ref):
    bt = x_ref.shape[1]
    f32 = jnp.float32
    bf16 = jnp.bfloat16

    # ---- conv1: 5 row-window GEMMs with block-Toeplitz weights (dense K=256) ----
    acc = None
    for i in range(5):
        lhs = x_ref[pl.ds(i, 28), :, :].reshape(28 * bt, LANES)   # contiguous window
        t = jnp.dot(lhs, w1_ref[i], preferred_element_type=f32)
        acc = t if acc is None else acc + t
    y = jnp.maximum(acc + b1_ref[...], 0.0)                       # bias + ReLU
    # 2x2 max-pool: rows via block max, columns via MXU shift-partner max
    y = y.reshape(14, 2 * bt, LANES)
    y = jnp.maximum(y[:, :bt, :], y[:, bt:, :])                   # (14, bt, 256)
    y = y.astype(bf16).reshape(14 * bt, LANES)
    nb = jnp.dot(y, s1_ref[...], preferred_element_type=f32).astype(bf16)
    p1 = jnp.maximum(y, nb)                                       # valid at even cols

    # ---- conv2: same scheme, reading pool1's even-column lanes ----
    acc = None
    for i in range(5):
        lhs = p1[i * bt:(i + 10) * bt]                            # (10*bt, 256)
        t = jnp.dot(lhs, w2_ref[i], preferred_element_type=f32)
        acc = t if acc is None else acc + t
    y = jnp.maximum(acc + b2_ref[...], 0.0)
    y = y.reshape(5, 2 * bt, LANES)
    y = jnp.maximum(y[:, :bt, :], y[:, bt:, :])                   # (5, bt, 256)
    y = y.astype(bf16).reshape(5 * bt, LANES)
    nb = jnp.dot(y, s2_ref[...], preferred_element_type=f32).astype(bf16)
    p2 = jnp.maximum(y, nb)                                       # valid at even cols

    # ---- fc1: the 5 pooled rows folded into 5 accumulated K=256 GEMMs ----
    acc = None
    for h in range(5):
        t = jnp.dot(p2[h * bt:(h + 1) * bt], wf1_ref[h],
                    preferred_element_type=f32)
        acc = t if acc is None else acc + t
    f1 = jnp.maximum(acc + bf1_ref[...], 0.0).astype(bf16)        # (bt, 128)

    # ---- fc2 + ReLU, fc3 (lane-dense 128-wide output, sliced outside) ----
    f2 = jnp.maximum(jnp.dot(f1, wf2_ref[...], preferred_element_type=f32)
                     + bf2_ref[...], 0.0).astype(bf16)
    out_ref[...] = (jnp.dot(f2, wf3_ref[...], preferred_element_type=f32)
                    + bf3_ref[...])


# ---------------------------------------------------------------------------
# Forward wrapper
# ---------------------------------------------------------------------------

def net_forward(x, params, *, block_batch=64):
    """x: (N, 3, 32, 32) f32 -> logits (N, 10) f32."""
    n = x.shape[0]
    assert x.shape[1:] == (3, 32, 32)

    bt = min(block_batch, _round_up(n, 16))
    # keep >= 2 grid steps when possible so v7x's two TensorCores both get work
    if _round_up(n, bt) // bt < 2 and bt % 32 == 0:
        bt //= 2
    n_pad = _round_up(n, bt)

    # Input packed as (row, batch, col*8 + ch) bf16: every conv tap window is a
    # contiguous, lane-dense slice inside the kernel (no strided reads).
    xh = jnp.transpose(x.astype(jnp.float32), (2, 0, 3, 1))        # (32, N, 32, 3)
    xh = jnp.pad(xh, ((0, 0), (0, n_pad - n), (0, 0), (0, 5)))     # ch 3->8, batch pad
    xh = xh.reshape(32, n_pad, LANES).astype(jnp.bfloat16)

    w1 = _conv_toeplitz(params["conv1_w"], n_wout=28, gin=8, gout=8)    # (5,256,256)
    w2 = _conv_toeplitz(params["conv2_w"], n_wout=10, gin=16, gout=16)  # (5,256,256)
    s1 = _shift_mat(8)
    s2 = _shift_mat(16)
    wf1 = _fc1_blocks(params["fc1_w"])                                  # (5,256,128)
    wf2 = _fc_mat(params["fc2_w"])
    wf3 = _fc_mat(params["fc3_w"])
    b1 = _group_bias(params["conv1_b"], 8, 28)
    b2 = _group_bias(params["conv2_b"], 16, 10)
    bf1 = _row_bias(params["fc1_b"])
    bf2 = _row_bias(params["fc2_b"])
    bf3 = _row_bias(params["fc3_b"])

    def whole(arr):
        nd = arr.ndim
        return pl.BlockSpec(arr.shape, lambda *_: (0,) * nd)

    out = pl.pallas_call(
        _lenet_kernel,
        out_shape=jax.ShapeDtypeStruct((n_pad, FC_LANES), jnp.float32),
        grid=(n_pad // bt,),
        in_specs=[
            pl.BlockSpec((32, bt, LANES), lambda b: (0, b, 0)),
            whole(w1), whole(s1), whole(b1),
            whole(w2), whole(s2), whole(b2),
            whole(wf1), whole(bf1),
            whole(wf2), whole(bf2),
            whole(wf3), whole(bf3),
        ],
        out_specs=pl.BlockSpec((bt, FC_LANES), lambda b: (b, 0)),
        compiler_params=pltpu.CompilerParams(
            dimension_semantics=("parallel",),
            vmem_limit_bytes=40 * 1024 * 1024,
        ),
    )(xh, w1, s1, b1, w2, s2, b2, wf1, bf1, wf2, bf2, wf3, bf3)

    return out[:n, :10]


# ---------------------------------------------------------------------------
# Deterministic parameter init (PyTorch-style uniform(+-1/sqrt(fan_in)))
# ---------------------------------------------------------------------------

def init_params(key):
    def uinit(k, shape, fan_in):
        bound = 1.0 / float(fan_in) ** 0.5
        return jax.random.uniform(k, shape, jnp.float32, -bound, bound)

    ks = jax.random.split(key, 10)
    return {
        "conv1_w": uinit(ks[0], (6, 3, 5, 5), 3 * 5 * 5),
        "conv1_b": uinit(ks[1], (6,), 3 * 5 * 5),
        "conv2_w": uinit(ks[2], (16, 6, 5, 5), 6 * 5 * 5),
        "conv2_b": uinit(ks[3], (16,), 6 * 5 * 5),
        "fc1_w": uinit(ks[4], (120, 400), 400),
        "fc1_b": uinit(ks[5], (120,), 400),
        "fc2_w": uinit(ks[6], (84, 120), 120),
        "fc2_b": uinit(ks[7], (84,), 120),
        "fc3_w": uinit(ks[8], (10, 84), 84),
        "fc3_b": uinit(ks[9], (10,), 84),
    }


if __name__ == "__main__":
    key = jax.random.PRNGKey(0)
    k_x, k_p = jax.random.split(key)
    # Spatial size 32 is fixed by the architecture (32 -> 28 -> 14 -> 10 -> 5).
    x = jax.random.normal(k_x, (2, 3, 32, 32), dtype=jnp.float32)
    params = init_params(k_p)

    logits = jax.jit(net_forward)(x, params)
    logits = jax.block_until_ready(logits)
    assert logits.shape == (2, 10)
    assert logits.dtype == jnp.float32
    print("KERNEL_OK")
</pallas_src>

<mosaic_0001>
module attributes {stable_mosaic.version = 11 : i64} {
  func.func @_lenet_kernel(%arg0: i32, %arg1: memref<32x16x256xbf16, #tpu.memory_space<vmem>>, %arg2: memref<5x256x256xbf16, #tpu.memory_space<vmem>>, %arg3: memref<256x256xbf16, #tpu.memory_space<vmem>>, %arg4: memref<1x256xf32, #tpu.memory_space<vmem>>, %arg5: memref<5x256x256xbf16, #tpu.memory_space<vmem>>, %arg6: memref<256x256xbf16, #tpu.memory_space<vmem>>, %arg7: memref<1x256xf32, #tpu.memory_space<vmem>>, %arg8: memref<5x256x128xbf16, #tpu.memory_space<vmem>>, %arg9: memref<1x128xf32, #tpu.memory_space<vmem>>, %arg10: memref<128x128xbf16, #tpu.memory_space<vmem>>, %arg11: memref<1x128xf32, #tpu.memory_space<vmem>>, %arg12: memref<128x128xbf16, #tpu.memory_space<vmem>>, %arg13: memref<1x128xf32, #tpu.memory_space<vmem>>, %arg14: memref<16x128xf32, #tpu.memory_space<vmem>>) attributes {dimension_semantics = [#tpu.dimension_semantics<parallel>], iteration_bounds = array<i64: 1>, scalar_prefetch = 0 : i64, scratch_operands = 0 : i64, tpu.core_type = #tpu.core_type<tc>, window_params = [{transform_indices = @transform_0, window_bounds = array<i64: 32, 16, 256>}, {pipeline_mode = #tpu.pipeline_mode<synchronous>, transform_indices = @transform_1, window_bounds = array<i64: 5, 256, 256>}, {pipeline_mode = #tpu.pipeline_mode<synchronous>, transform_indices = @transform_2, window_bounds = array<i64: 256, 256>}, {pipeline_mode = #tpu.pipeline_mode<synchronous>, transform_indices = @transform_3, window_bounds = array<i64: 1, 256>}, {pipeline_mode = #tpu.pipeline_mode<synchronous>, transform_indices = @transform_4, window_bounds = array<i64: 5, 256, 256>}, {pipeline_mode = #tpu.pipeline_mode<synchronous>, transform_indices = @transform_5, window_bounds = array<i64: 256, 256>}, {pipeline_mode = #tpu.pipeline_mode<synchronous>, transform_indices = @transform_6, window_bounds = array<i64: 1, 256>}, {pipeline_mode = #tpu.pipeline_mode<synchronous>, transform_indices = @transform_7, window_bounds = array<i64: 5, 256, 128>}, {pipeline_mode = #tpu.pipeline_mode<synchronous>, transform_indices = @transform_8, window_bounds = array<i64: 1, 128>}, {pipeline_mode = #tpu.pipeline_mode<synchronous>, transform_indices = @transform_9, window_bounds = array<i64: 128, 128>}, {pipeline_mode = #tpu.pipeline_mode<synchronous>, transform_indices = @transform_10, window_bounds = array<i64: 1, 128>}, {pipeline_mode = #tpu.pipeline_mode<synchronous>, transform_indices = @transform_11, window_bounds = array<i64: 128, 128>}, {pipeline_mode = #tpu.pipeline_mode<synchronous>, transform_indices = @transform_12, window_bounds = array<i64: 1, 128>}, {transform_indices = @transform_13, window_bounds = array<i64: 16, 128>}]} {
    %c0 = arith.constant 0 : index
    %c0_0 = arith.constant 0 : index
    %c0_1 = arith.constant 0 : index
    %0 = vector.load %arg1[%c0, %c0_0, %c0_1] : memref<32x16x256xbf16, #tpu.memory_space<vmem>>, vector<28x16x256xbf16>
    %1 = vector.shape_cast %0 : vector<28x16x256xbf16> to vector<448x256xbf16>
    %c0_2 = arith.constant 0 : index
    %c0_3 = arith.constant 0 : index
    %c0_4 = arith.constant 0 : index
    %2 = vector.load %arg2[%c0_2, %c0_3, %c0_4] : memref<5x256x256xbf16, #tpu.memory_space<vmem>>, vector<1x256x256xbf16>
    %3 = vector.shape_cast %2 : vector<1x256x256xbf16> to vector<256x256xbf16>
    %cst = arith.constant dense<0.000000e+00> : vector<448x256xf32>
    %4 = tpu.matmul %1, %3, %cst {dimension_numbers = #tpu.dot_dimension_numbers<[1], [0], [0], [1], [0, 0, 1, 1], [], []>} : vector<448x256xbf16>, vector<256x256xbf16>, vector<448x256xf32> -> vector<448x256xf32>
    %c1 = arith.constant 1 : index
    %c0_5 = arith.constant 0 : index
    %c0_6 = arith.constant 0 : index
    %5 = vector.load %arg1[%c1, %c0_5, %c0_6] : memref<32x16x256xbf16, #tpu.memory_space<vmem>>, vector<28x16x256xbf16>
    %6 = vector.shape_cast %5 : vector<28x16x256xbf16> to vector<448x256xbf16>
    %c1_7 = arith.constant 1 : index
    %c0_8 = arith.constant 0 : index
    %c0_9 = arith.constant 0 : index
    %7 = vector.load %arg2[%c1_7, %c0_8, %c0_9] : memref<5x256x256xbf16, #tpu.memory_space<vmem>>, vector<1x256x256xbf16>
    %8 = vector.shape_cast %7 : vector<1x256x256xbf16> to vector<256x256xbf16>
    %cst_10 = arith.constant dense<0.000000e+00> : vector<448x256xf32>
    %9 = tpu.matmul %6, %8, %cst_10 {dimension_numbers = #tpu.dot_dimension_numbers<[1], [0], [0], [1], [0, 0, 1, 1], [], []>} : vector<448x256xbf16>, vector<256x256xbf16>, vector<448x256xf32> -> vector<448x256xf32>
    %10 = arith.addf %4, %9 : vector<448x256xf32>
    %c2 = arith.constant 2 : index
    %c0_11 = arith.constant 0 : index
    %c0_12 = arith.constant 0 : index
    %11 = vector.load %arg1[%c2, %c0_11, %c0_12] : memref<32x16x256xbf16, #tpu.memory_space<vmem>>, vector<28x16x256xbf16>
    %12 = vector.shape_cast %11 : vector<28x16x256xbf16> to vector<448x256xbf16>
    %c2_13 = arith.constant 2 : index
    %c0_14 = arith.constant 0 : index
    %c0_15 = arith.constant 0 : index
    %13 = vector.load %arg2[%c2_13, %c0_14, %c0_15] : memref<5x256x256xbf16, #tpu.memory_space<vmem>>, vector<1x256x256xbf16>
    %14 = vector.shape_cast %13 : vector<1x256x256xbf16> to vector<256x256xbf16>
    %cst_16 = arith.constant dense<0.000000e+00> : vector<448x256xf32>
    %15 = tpu.matmul %12, %14, %cst_16 {dimension_numbers = #tpu.dot_dimension_numbers<[1], [0], [0], [1], [0, 0, 1, 1], [], []>} : vector<448x256xbf16>, vector<256x256xbf16>, vector<448x256xf32> -> vector<448x256xf32>
    %16 = arith.addf %10, %15 : vector<448x256xf32>
    %c3 = arith.constant 3 : index
    %c0_17 = arith.constant 0 : index
    %c0_18 = arith.constant 0 : index
    %17 = vector.load %arg1[%c3, %c0_17, %c0_18] : memref<32x16x256xbf16, #tpu.memory_space<vmem>>, vector<28x16x256xbf16>
    %18 = vector.shape_cast %17 : vector<28x16x256xbf16> to vector<448x256xbf16>
    %c3_19 = arith.constant 3 : index
    %c0_20 = arith.constant 0 : index
    %c0_21 = arith.constant 0 : index
    %19 = vector.load %arg2[%c3_19, %c0_20, %c0_21] : memref<5x256x256xbf16, #tpu.memory_space<vmem>>, vector<1x256x256xbf16>
    %20 = vector.shape_cast %19 : vector<1x256x256xbf16> to vector<256x256xbf16>
    %cst_22 = arith.constant dense<0.000000e+00> : vector<448x256xf32>
    %21 = tpu.matmul %18, %20, %cst_22 {dimension_numbers = #tpu.dot_dimension_numbers<[1], [0], [0], [1], [0, 0, 1, 1], [], []>} : vector<448x256xbf16>, vector<256x256xbf16>, vector<448x256xf32> -> vector<448x256xf32>
    %22 = arith.addf %16, %21 : vector<448x256xf32>
    %c4 = arith.constant 4 : index
    %c0_23 = arith.constant 0 : index
    %c0_24 = arith.constant 0 : index
    %23 = vector.load %arg1[%c4, %c0_23, %c0_24] : memref<32x16x256xbf16, #tpu.memory_space<vmem>>, vector<28x16x256xbf16>
    %24 = vector.shape_cast %23 : vector<28x16x256xbf16> to vector<448x256xbf16>
    %c4_25 = arith.constant 4 : index
    %c0_26 = arith.constant 0 : index
    %c0_27 = arith.constant 0 : index
    %25 = vector.load %arg2[%c4_25, %c0_26, %c0_27] : memref<5x256x256xbf16, #tpu.memory_space<vmem>>, vector<1x256x256xbf16>
    %26 = vector.shape_cast %25 : vector<1x256x256xbf16> to vector<256x256xbf16>
    %cst_28 = arith.constant dense<0.000000e+00> : vector<448x256xf32>
    %27 = tpu.matmul %24, %26, %cst_28 {dimension_numbers = #tpu.dot_dimension_numbers<[1], [0], [0], [1], [0, 0, 1, 1], [], []>} : vector<448x256xbf16>, vector<256x256xbf16>, vector<448x256xf32> -> vector<448x256xf32>
    %28 = arith.addf %22, %27 : vector<448x256xf32>
    %c0_29 = arith.constant 0 : index
    %c0_30 = arith.constant 0 : index
    %29 = vector.load %arg4[%c0_29, %c0_30] : memref<1x256xf32, #tpu.memory_space<vmem>>, vector<1x256xf32>
    %30 = vector.broadcast %29 : vector<1x256xf32> to vector<448x256xf32>
    %31 = arith.addf %28, %30 : vector<448x256xf32>
    %cst_31 = arith.constant 0.000000e+00 : f32
    %32 = vector.broadcast %cst_31 : f32 to vector<448x256xf32>
    %33 = arith.maximumf %31, %32 : vector<448x256xf32>
    %34 = vector.shape_cast %33 : vector<448x256xf32> to vector<14x32x256xf32>
    %35 = vector.extract_strided_slice %34 {offsets = [0, 0, 0], sizes = [14, 16, 256], strides = [1, 1, 1]} : vector<14x32x256xf32> to vector<14x16x256xf32>
    %36 = vector.extract_strided_slice %34 {offsets = [0, 16, 0], sizes = [14, 16, 256], strides = [1, 1, 1]} : vector<14x32x256xf32> to vector<14x16x256xf32>
    %37 = arith.maximumf %35, %36 : vector<14x16x256xf32>
    %38 = arith.truncf %37 : vector<14x16x256xf32> to vector<14x16x256xbf16>
    %39 = vector.shape_cast %38 : vector<14x16x256xbf16> to vector<224x256xbf16>
    %c0_32 = arith.constant 0 : index
    %c0_33 = arith.constant 0 : index
    %40 = vector.load %arg3[%c0_32, %c0_33] : memref<256x256xbf16, #tpu.memory_space<vmem>>, vector<256x256xbf16>
    %cst_34 = arith.constant dense<0.000000e+00> : vector<224x256xf32>
    %41 = tpu.matmul %39, %40, %cst_34 {dimension_numbers = #tpu.dot_dimension_numbers<[1], [0], [0], [1], [0, 0, 1, 1], [], []>} : vector<224x256xbf16>, vector<256x256xbf16>, vector<224x256xf32> -> vector<224x256xf32>
    %42 = arith.truncf %41 : vector<224x256xf32> to vector<224x256xbf16>
    %43 = arith.maximumf %39, %42 : vector<224x256xbf16>
    %44 = vector.extract_strided_slice %43 {offsets = [0, 0], sizes = [160, 256], strides = [1, 1]} : vector<224x256xbf16> to vector<160x256xbf16>
    %c0_35 = arith.constant 0 : index
    %c0_36 = arith.constant 0 : index
    %c0_37 = arith.constant 0 : index
    %45 = vector.load %arg5[%c0_35, %c0_36, %c0_37] : memref<5x256x256xbf16, #tpu.memory_space<vmem>>, vector<1x256x256xbf16>
    %46 = vector.shape_cast %45 : vector<1x256x256xbf16> to vector<256x256xbf16>
    %cst_38 = arith.constant dense<0.000000e+00> : vector<160x256xf32>
    %47 = tpu.matmul %44, %46, %cst_38 {dimension_numbers = #tpu.dot_dimension_numbers<[1], [0], [0], [1], [0, 0, 1, 1], [], []>} : vector<160x256xbf16>, vector<256x256xbf16>, vector<160x256xf32> -> vector<160x256xf32>
    %48 = vector.extract_strided_slice %43 {offsets = [16, 0], sizes = [160, 256], strides = [1, 1]} : vector<224x256xbf16> to vector<160x256xbf16>
    %c1_39 = arith.constant 1 : index
    %c0_40 = arith.constant 0 : index
    %c0_41 = arith.constant 0 : index
    %49 = vector.load %arg5[%c1_39, %c0_40, %c0_41] : memref<5x256x256xbf16, #tpu.memory_space<vmem>>, vector<1x256x256xbf16>
    %50 = vector.shape_cast %49 : vector<1x256x256xbf16> to vector<256x256xbf16>
    %cst_42 = arith.constant dense<0.000000e+00> : vector<160x256xf32>
    %51 = tpu.matmul %48, %50, %cst_42 {dimension_numbers = #tpu.dot_dimension_numbers<[1], [0], [0], [1], [0, 0, 1, 1], [], []>} : vector<160x256xbf16>, vector<256x256xbf16>, vector<160x256xf32> -> vector<160x256xf32>
    %52 = arith.addf %47, %51 : vector<160x256xf32>
    %53 = vector.extract_strided_slice %43 {offsets = [32, 0], sizes = [160, 256], strides = [1, 1]} : vector<224x256xbf16> to vector<160x256xbf16>
    %c2_43 = arith.constant 2 : index
    %c0_44 = arith.constant 0 : index
    %c0_45 = arith.constant 0 : index
    %54 = vector.load %arg5[%c2_43, %c0_44, %c0_45] : memref<5x256x256xbf16, #tpu.memory_space<vmem>>, vector<1x256x256xbf16>
    %55 = vector.shape_cast %54 : vector<1x256x256xbf16> to vector<256x256xbf16>
    %cst_46 = arith.constant dense<0.000000e+00> : vector<160x256xf32>
    %56 = tpu.matmul %53, %55, %cst_46 {dimension_numbers = #tpu.dot_dimension_numbers<[1], [0], [0], [1], [0, 0, 1, 1], [], []>} : vector<160x256xbf16>, vector<256x256xbf16>, vector<160x256xf32> -> vector<160x256xf32>
    %57 = arith.addf %52, %56 : vector<160x256xf32>
    %58 = vector.extract_strided_slice %43 {offsets = [48, 0], sizes = [160, 256], strides = [1, 1]} : vector<224x256xbf16> to vector<160x256xbf16>
    %c3_47 = arith.constant 3 : index
    %c0_48 = arith.constant 0 : index
    %c0_49 = arith.constant 0 : index
    %59 = vector.load %arg5[%c3_47, %c0_48, %c0_49] : memref<5x256x256xbf16, #tpu.memory_space<vmem>>, vector<1x256x256xbf16>
    %60 = vector.shape_cast %59 : vector<1x256x256xbf16> to vector<256x256xbf16>
    %cst_50 = arith.constant dense<0.000000e+00> : vector<160x256xf32>
    %61 = tpu.matmul %58, %60, %cst_50 {dimension_numbers = #tpu.dot_dimension_numbers<[1], [0], [0], [1], [0, 0, 1, 1], [], []>} : vector<160x256xbf16>, vector<256x256xbf16>, vector<160x256xf32> -> vector<160x256xf32>
    %62 = arith.addf %57, %61 : vector<160x256xf32>
    %63 = vector.extract_strided_slice %43 {offsets = [64, 0], sizes = [160, 256], strides = [1, 1]} : vector<224x256xbf16> to vector<160x256xbf16>
    %c4_51 = arith.constant 4 : index
    %c0_52 = arith.constant 0 : index
    %c0_53 = arith.constant 0 : index
    %64 = vector.load %arg5[%c4_51, %c0_52, %c0_53] : memref<5x256x256xbf16, #tpu.memory_space<vmem>>, vector<1x256x256xbf16>
    %65 = vector.shape_cast %64 : vector<1x256x256xbf16> to vector<256x256xbf16>
    %cst_54 = arith.constant dense<0.000000e+00> : vector<160x256xf32>
    %66 = tpu.matmul %63, %65, %cst_54 {dimension_numbers = #tpu.dot_dimension_numbers<[1], [0], [0], [1], [0, 0, 1, 1], [], []>} : vector<160x256xbf16>, vector<256x256xbf16>, vector<160x256xf32> -> vector<160x256xf32>
    %67 = arith.addf %62, %66 : vector<160x256xf32>
    %c0_55 = arith.constant 0 : index
    %c0_56 = arith.constant 0 : index
    %68 = vector.load %arg7[%c0_55, %c0_56] : memref<1x256xf32, #tpu.memory_space<vmem>>, vector<1x256xf32>
    %69 = vector.broadcast %68 : vector<1x256xf32> to vector<160x256xf32>
    %70 = arith.addf %67, %69 : vector<160x256xf32>
    %cst_57 = arith.constant 0.000000e+00 : f32
    %71 = vector.broadcast %cst_57 : f32 to vector<160x256xf32>
    %72 = arith.maximumf %70, %71 : vector<160x256xf32>
    %73 = vector.shape_cast %72 : vector<160x256xf32> to vector<5x32x256xf32>
    %74 = vector.extract_strided_slice %73 {offsets = [0, 0, 0], sizes = [5, 16, 256], strides = [1, 1, 1]} : vector<5x32x256xf32> to vector<5x16x256xf32>
    %75 = vector.extract_strided_slice %73 {offsets = [0, 16, 0], sizes = [5, 16, 256], strides = [1, 1, 1]} : vector<5x32x256xf32> to vector<5x16x256xf32>
    %76 = arith.maximumf %74, %75 : vector<5x16x256xf32>
    %77 = arith.truncf %76 : vector<5x16x256xf32> to vector<5x16x256xbf16>
    %78 = vector.shape_cast %77 : vector<5x16x256xbf16> to vector<80x256xbf16>
    %c0_58 = arith.constant 0 : index
    %c0_59 = arith.constant 0 : index
    %79 = vector.load %arg6[%c0_58, %c0_59] : memref<256x256xbf16, #tpu.memory_space<vmem>>, vector<256x256xbf16>
    %cst_60 = arith.constant dense<0.000000e+00> : vector<80x256xf32>
    %80 = tpu.matmul %78, %79, %cst_60 {dimension_numbers = #tpu.dot_dimension_numbers<[1], [0], [0], [1], [0, 0, 1, 1], [], []>} : vector<80x256xbf16>, vector<256x256xbf16>, vector<80x256xf32> -> vector<80x256xf32>
    %81 = arith.truncf %80 : vector<80x256xf32> to vector<80x256xbf16>
    %82 = arith.maximumf %78, %81 : vector<80x256xbf16>
    %83 = vector.extract_strided_slice %82 {offsets = [0, 0], sizes = [16, 256], strides = [1, 1]} : vector<80x256xbf16> to vector<16x256xbf16>
    %c0_61 = arith.constant 0 : index
    %c0_62 = arith.constant 0 : index
    %c0_63 = arith.constant 0 : index
    %84 = vector.load %arg8[%c0_61, %c0_62, %c0_63] : memref<5x256x128xbf16, #tpu.memory_space<vmem>>, vector<1x256x128xbf16>
    %85 = vector.shape_cast %84 : vector<1x256x128xbf16> to vector<256x128xbf16>
    %cst_64 = arith.constant dense<0.000000e+00> : vector<16x128xf32>
    %86 = tpu.matmul %83, %85, %cst_64 {dimension_numbers = #tpu.dot_dimension_numbers<[1], [0], [0], [1], [0, 0, 1, 1], [], []>} : vector<16x256xbf16>, vector<256x128xbf16>, vector<16x128xf32> -> vector<16x128xf32>
    %87 = vector.extract_strided_slice %82 {offsets = [16, 0], sizes = [16, 256], strides = [1, 1]} : vector<80x256xbf16> to vector<16x256xbf16>
    %c1_65 = arith.constant 1 : index
    %c0_66 = arith.constant 0 : index
    %c0_67 = arith.constant 0 : index
    %88 = vector.load %arg8[%c1_65, %c0_66, %c0_67] : memref<5x256x128xbf16, #tpu.memory_space<vmem>>, vector<1x256x128xbf16>
    %89 = vector.shape_cast %88 : vector<1x256x128xbf16> to vector<256x128xbf16>
    %cst_68 = arith.constant dense<0.000000e+00> : vector<16x128xf32>
    %90 = tpu.matmul %87, %89, %cst_68 {dimension_numbers = #tpu.dot_dimension_numbers<[1], [0], [0], [1], [0, 0, 1, 1], [], []>} : vector<16x256xbf16>, vector<256x128xbf16>, vector<16x128xf32> -> vector<16x128xf32>
    %91 = arith.addf %86, %90 : vector<16x128xf32>
    %92 = vector.extract_strided_slice %82 {offsets = [32, 0], sizes = [16, 256], strides = [1, 1]} : vector<80x256xbf16> to vector<16x256xbf16>
    %c2_69 = arith.constant 2 : index
    %c0_70 = arith.constant 0 : index
    %c0_71 = arith.constant 0 : index
    %93 = vector.load %arg8[%c2_69, %c0_70, %c0_71] : memref<5x256x128xbf16, #tpu.memory_space<vmem>>, vector<1x256x128xbf16>
    %94 = vector.shape_cast %93 : vector<1x256x128xbf16> to vector<256x128xbf16>
    %cst_72 = arith.constant dense<0.000000e+00> : vector<16x128xf32>
    %95 = tpu.matmul %92, %94, %cst_72 {dimension_numbers = #tpu.dot_dimension_numbers<[1], [0], [0], [1], [0, 0, 1, 1], [], []>} : vector<16x256xbf16>, vector<256x128xbf16>, vector<16x128xf32> -> vector<16x128xf32>
    %96 = arith.addf %91, %95 : vector<16x128xf32>
    %97 = vector.extract_strided_slice %82 {offsets = [48, 0], sizes = [16, 256], strides = [1, 1]} : vector<80x256xbf16> to vector<16x256xbf16>
    %c3_73 = arith.constant 3 : index
    %c0_74 = arith.constant 0 : index
    %c0_75 = arith.constant 0 : index
    %98 = vector.load %arg8[%c3_73, %c0_74, %c0_75] : memref<5x256x128xbf16, #tpu.memory_space<vmem>>, vector<1x256x128xbf16>
    %99 = vector.shape_cast %98 : vector<1x256x128xbf16> to vector<256x128xbf16>
    %cst_76 = arith.constant dense<0.000000e+00> : vector<16x128xf32>
    %100 = tpu.matmul %97, %99, %cst_76 {dimension_numbers = #tpu.dot_dimension_numbers<[1], [0], [0], [1], [0, 0, 1, 1], [], []>} : vector<16x256xbf16>, vector<256x128xbf16>, vector<16x128xf32> -> vector<16x128xf32>
    %101 = arith.addf %96, %100 : vector<16x128xf32>
    %102 = vector.extract_strided_slice %82 {offsets = [64, 0], sizes = [16, 256], strides = [1, 1]} : vector<80x256xbf16> to vector<16x256xbf16>
    %c4_77 = arith.constant 4 : index
    %c0_78 = arith.constant 0 : index
    %c0_79 = arith.constant 0 : index
    %103 = vector.load %arg8[%c4_77, %c0_78, %c0_79] : memref<5x256x128xbf16, #tpu.memory_space<vmem>>, vector<1x256x128xbf16>
    %104 = vector.shape_cast %103 : vector<1x256x128xbf16> to vector<256x128xbf16>
    %cst_80 = arith.constant dense<0.000000e+00> : vector<16x128xf32>
    %105 = tpu.matmul %102, %104, %cst_80 {dimension_numbers = #tpu.dot_dimension_numbers<[1], [0], [0], [1], [0, 0, 1, 1], [], []>} : vector<16x256xbf16>, vector<256x128xbf16>, vector<16x128xf32> -> vector<16x128xf32>
    %106 = arith.addf %101, %105 : vector<16x128xf32>
    %c0_81 = arith.constant 0 : index
    %c0_82 = arith.constant 0 : index
    %107 = vector.load %arg9[%c0_81, %c0_82] : memref<1x128xf32, #tpu.memory_space<vmem>>, vector<1x128xf32>
    %108 = vector.broadcast %107 : vector<1x128xf32> to vector<16x128xf32>
    %109 = arith.addf %106, %108 : vector<16x128xf32>
    %cst_83 = arith.constant 0.000000e+00 : f32
    %110 = vector.broadcast %cst_83 : f32 to vector<16x128xf32>
    %111 = arith.maximumf %109, %110 : vector<16x128xf32>
    %112 = arith.truncf %111 : vector<16x128xf32> to vector<16x128xbf16>
    %c0_84 = arith.constant 0 : index
    %c0_85 = arith.constant 0 : index
    %113 = vector.load %arg10[%c0_84, %c0_85] : memref<128x128xbf16, #tpu.memory_space<vmem>>, vector<128x128xbf16>
    %cst_86 = arith.constant dense<0.000000e+00> : vector<16x128xf32>
    %114 = tpu.matmul %112, %113, %cst_86 {dimension_numbers = #tpu.dot_dimension_numbers<[1], [0], [0], [1], [0, 0, 1, 1], [], []>} : vector<16x128xbf16>, vector<128x128xbf16>, vector<16x128xf32> -> vector<16x128xf32>
    %c0_87 = arith.constant 0 : index
    %c0_88 = arith.constant 0 : index
    %115 = vector.load %arg11[%c0_87, %c0_88] : memref<1x128xf32, #tpu.memory_space<vmem>>, vector<1x128xf32>
    %116 = vector.broadcast %115 : vector<1x128xf32> to vector<16x128xf32>
    %117 = arith.addf %114, %116 : vector<16x128xf32>
    %cst_89 = arith.constant 0.000000e+00 : f32
    %118 = vector.broadcast %cst_89 : f32 to vector<16x128xf32>
    %119 = arith.maximumf %117, %118 : vector<16x128xf32>
    %120 = arith.truncf %119 : vector<16x128xf32> to vector<16x128xbf16>
    %c0_90 = arith.constant 0 : index
    %c0_91 = arith.constant 0 : index
    %121 = vector.load %arg12[%c0_90, %c0_91] : memref<128x128xbf16, #tpu.memory_space<vmem>>, vector<128x128xbf16>
    %cst_92 = arith.constant dense<0.000000e+00> : vector<16x128xf32>
    %122 = tpu.matmul %120, %121, %cst_92 {dimension_numbers = #tpu.dot_dimension_numbers<[1], [0], [0], [1], [0, 0, 1, 1], [], []>} : vector<16x128xbf16>, vector<128x128xbf16>, vector<16x128xf32> -> vector<16x128xf32>
    %c0_93 = arith.constant 0 : index
    %c0_94 = arith.constant 0 : index
    %123 = vector.load %arg13[%c0_93, %c0_94] : memref<1x128xf32, #tpu.memory_space<vmem>>, vector<1x128xf32>
    %124 = vector.broadcast %123 : vector<1x128xf32> to vector<16x128xf32>
    %125 = arith.addf %122, %124 : vector<16x128xf32>
    %c0_95 = arith.constant 0 : index
    %c0_96 = arith.constant 0 : index
    %126 = vector.load %arg14[%c0_95, %c0_96] : memref<16x128xf32, #tpu.memory_space<vmem>>, vector<16x128xf32>
    tpu.vector_store %arg14[%c0_95, %c0_96], %125 {strides = array<i32>} : memref<16x128xf32, #tpu.memory_space<vmem>>, vector<16x128xf32>,
    return
  }
  func.func @transform_0(%arg0: i32) -> (i32, i32, i32) {
    %c0_i32 = arith.constant 0 : i32
    %c0_i32_0 = arith.constant 0 : i32
    %c0_i32_1 = arith.constant 0 : i32
    return %c0_i32, %arg0, %c0_i32_0 : i32, i32, i32
  }
  func.func @transform_1(%arg0: i32) -> (i32, i32, i32) {
    %c0_i32 = arith.constant 0 : i32
    %c0_i32_0 = arith.constant 0 : i32
    %c0_i32_1 = arith.constant 0 : i32
    %c0_i32_2 = arith.constant 0 : i32
    return %c0_i32, %c0_i32_0, %c0_i32_1 : i32, i32, i32
  }
  func.func @transform_2(%arg0: i32) -> (i32, i32) {
    %c0_i32 = arith.constant 0 : i32
    %c0_i32_0 = arith.constant 0 : i32
    %c0_i32_1 = arith.constant 0 : i32
    return %c0_i32, %c0_i32_0 : i32, i32
  }
  func.func @transform_3(%arg0: i32) -> (i32, i32) {
    %c0_i32 = arith.constant 0 : i32
    %c0_i32_0 = arith.constant 0 : i32
    %c0_i32_1 = arith.constant 0 : i32
    return %c0_i32, %c0_i32_0 : i32, i32
  }
  func.func @transform_4(%arg0: i32) -> (i32, i32, i32) {
    %c0_i32 = arith.constant 0 : i32
    %c0_i32_0 = arith.constant 0 : i32
    %c0_i32_1 = arith.constant 0 : i32
    %c0_i32_2 = arith.constant 0 : i32
    return %c0_i32, %c0_i32_0, %c0_i32_1 : i32, i32, i32
  }
  func.func @transform_5(%arg0: i32) -> (i32, i32) {
    %c0_i32 = arith.constant 0 : i32
    %c0_i32_0 = arith.constant 0 : i32
    %c0_i32_1 = arith.constant 0 : i32
    return %c0_i32, %c0_i32_0 : i32, i32
  }
  func.func @transform_6(%arg0: i32) -> (i32, i32) {
    %c0_i32 = arith.constant 0 : i32
    %c0_i32_0 = arith.constant 0 : i32
    %c0_i32_1 = arith.constant 0 : i32
    return %c0_i32, %c0_i32_0 : i32, i32
  }
  func.func @transform_7(%arg0: i32) -> (i32, i32, i32) {
    %c0_i32 = arith.constant 0 : i32
    %c0_i32_0 = arith.constant 0 : i32
    %c0_i32_1 = arith.constant 0 : i32
    %c0_i32_2 = arith.constant 0 : i32
    return %c0_i32, %c0_i32_0, %c0_i32_1 : i32, i32, i32
  }
  func.func @transform_8(%arg0: i32) -> (i32, i32) {
    %c0_i32 = arith.constant 0 : i32
    %c0_i32_0 = arith.constant 0 : i32
    %c0_i32_1 = arith.constant 0 : i32
    return %c0_i32, %c0_i32_0 : i32, i32
  }
  func.func @transform_9(%arg0: i32) -> (i32, i32) {
    %c0_i32 = arith.constant 0 : i32
    %c0_i32_0 = arith.constant 0 : i32
    %c0_i32_1 = arith.constant 0 : i32
    return %c0_i32, %c0_i32_0 : i32, i32
  }
  func.func @transform_10(%arg0: i32) -> (i32, i32) {
    %c0_i32 = arith.constant 0 : i32
    %c0_i32_0 = arith.constant 0 : i32
    %c0_i32_1 = arith.constant 0 : i32
    return %c0_i32, %c0_i32_0 : i32, i32
  }
  func.func @transform_11(%arg0: i32) -> (i32, i32) {
    %c0_i32 = arith.constant 0 : i32
    %c0_i32_0 = arith.constant 0 : i32
    %c0_i32_1 = arith.constant 0 : i32
    return %c0_i32, %c0_i32_0 : i32, i32
  }
  func.func @transform_12(%arg0: i32) -> (i32, i32) {
    %c0_i32 = arith.constant 0 : i32
    %c0_i32_0 = arith.constant 0 : i32
    %c0_i32_1 = arith.constant 0 : i32
    return %c0_i32, %c0_i32_0 : i32, i32
  }
  func.func @transform_13(%arg0: i32) -> (i32, i32) {
    %c0_i32 = arith.constant 0 : i32
    %c0_i32_0 = arith.constant 0 : i32
    return %arg0, %c0_i32 : i32, i32
  }
}

</mosaic_0001>

<bundles_post_ra>
// kernel: tile.13
= control target key start
LH: loop header
LB: loop body
LE: loop exit
PB: predicated region body
PF: predicated region fallthrough
CT: control target
= control target key end

     0   :  { %s40_s0 = inlined_call_operand.vmem [shape: f32[8], index: 0, kind: input, shape index: {}]   ;;  %s41_s1 = inlined_call_operand.vmem [shape: f32[28,8], index: 1, kind: output, shape index: {}]  }
   0x1   :  { %v4_v0 = vld [vmem:[%s40_s0] ss:$0 sm:$0xff] }
   0x2   :  { %5 = vst [vmem:[%s41_s1] sm:$0xff] %v4_v0  ;;  %12 = vst [vmem:[%s41_s1 + $0x8] sm:$0xff] %v4_v0 }
   0x3   :  { %13 = vst [vmem:[%s41_s1 + $0x10] sm:$0xff] %v4_v0  ;;  %14 = vst [vmem:[%s41_s1 + $0x18] sm:$0xff] %v4_v0 }

// kernel: tile.14
= control target key start
LH: loop header
LB: loop body
LE: loop exit
PB: predicated region body
PF: predicated region fallthrough
CT: control target
= control target key end

     0   :  { %s143_s10 = smov 120   ;;  %s144_s11 = smov 104   ;;  %vm4_vm0 = vcmask 64512   ;;  %vm10_vm1 = vcmask 1048512   ;;  %vm16_vm2 = vcmask 982912   ;;  %vm22_vm3 = vcmask 917312   ;;  %s219_s0 = inlined_call_operand.vmem [shape: f32[28,8], index: 0, kind: input, shape index: {}]   ;;  %s220_s1 = inlined_call_operand.vmem [shape: f32[224], index: 1, kind: output, shape index: {}]  }
   0x1   :  { %v113_v0 = vld [vmem:[%s219_s0 + $0xf] sm:$0x1]   ;;  %v115_v1 = vld [vmem:[%s219_s0 + $0xd] sm:$0x1]   ;;  %v114_v2 = vld [vmem:[%s219_s0 + $0xe] sm:$0x1]  }
   0x2   :  { %8 = vrot.lane.b32.xlu0 %v113_v0, %s143_s10  ;;  %20 = vrot.lane.b32.xlu1 %v115_v1, %s144_s11  ;;  %v116_v3 = vld [vmem:[%s219_s0 + $0xc] sm:$0x1]   ;;  %s31_s16 = smov 3  ;;  %s38_s17 = smov 3  ;;  %vm28_vm4 = vcmask 851712   ;;  %vm35_vm5 = vcmask 786112  }
   0x3   :  { %s145_s18 = smov 112   ;;  %s146_s19 = smov 96   ;;  %v117_v4 = vld [vmem:[%s219_s0 + $0xb] ss:$16 sm:%s31_s16]   ;;  %v118_v5 = vld [vmem:[%s219_s0 + $0xa] ss:$16 sm:%s38_s17]  }
   0x4   :  { %s45_s24 = smov 3  ;;  %s52_s25 = smov 3  ;;  %vm42_vm6 = vcmask 720512   ;;  %vm49_vm7 = vcmask 654912   ;;  %vm56_vm8 = vcmask 589312   ;;  %vm63_vm9 = vcmask 523712  }
   0x5   :  { %s147_s26 = smov 88   ;;  %s148_s27 = smov 80   ;;  %v119_v6 = vld [vmem:[%s219_s0 + $0x9] ss:$16 sm:%s45_s24]   ;;  %v120_v7 = vld [vmem:[%s219_s0 + $0x8] ss:$16 sm:%s52_s25]  }
   0x6   :  { %14 = vrot.lane.b32.xlu0 %v114_v2, %s145_s18  ;;  %26 = vrot.lane.b32.xlu1 %v116_v3, %s146_s19  ;;  %s59_s3 = smov 3  ;;  %s66_s4 = smov 3  ;;  %vm70_vm10 = vcmask 458112   ;;  %vm77_vm11 = vcmask 392512   ;;  %vm84_vm12 = vcmask 326912   ;;  %vm91_vm13 = vcmask 261312  }
   0x7   :  { %s149_s5 = smov 72   ;;  %s150_s6 = smov 64   ;;  %v121_v8 = vld [vmem:[%s219_s0 + $0x7] ss:$16 sm:%s59_s3]   ;;  %v122_v9 = vld [vmem:[%s219_s0 + $0x6] ss:$16 sm:%s66_s4]  }
   0x8   :  { %s2_s9 = smov 3  ;;  %s73_s14 = smov 3  ;;  %vm98_vm14 = vcmask 195712   ;;  %vm105_vm15 = vcmask 130112  }
   0x9   :  { %v3_v10 = vld [vmem:[%s219_s0] ss:$16 sm:%s2_s9]   ;;  %s80_s15 = smov 3  ;;  %s151_s16 = smov 56   ;;  %v123_v11 = vld [vmem:[%s219_s0 + $0x5] ss:$16 sm:%s73_s14]  }
   0xa   :  { %33 = vrot.lane.b32.xlu0 %v117_v4, %s147_s26  ;;  %40 = vrot.lane.b32.xlu1 %v118_v5, %s148_s27  ;;  %5 = vst.msk [vmem:[#allocation0] sm:$0x3] %vm4_vm0, %v3_v10   ;;  %s152_s17 = smov 48   ;;  %v124_v12 = vld [vmem:[%s219_s0 + $0x4] ss:$16 sm:%s80_s15]   ;;  %s87_s22 = smov 3 }
   0xb   :  { %s94_s23 = smov 3  ;;  %s153_s24 = smov 40   ;;  %v125_v13 = vld [vmem:[%s219_s0 + $0x3] ss:$16 sm:%s87_s22]  }
   0xc   :  { %s154_s25 = smov 32   ;;  %v126_v14 = vld [vmem:[%s219_s0 + $0x2] ss:$16 sm:%s94_s23]   ;;  %s101_s30 = smov 3 }
   0xd   :  { %s155_s2 = smov 24   ;;  %s156_s3 = smov 16   ;;  %v127_v15 = vld [vmem:[%s219_s0 + $0x1] ss:$16 sm:%s101_s30]  }
   0xe   :  { %47 = vrot.lane.b32.xlu0 %v119_v6, %s149_s5  ;;  %54 = vrot.lane.b32.xlu1 %v120_v7, %s150_s6  ;;  %s157_s0 = smov 8  }
  0x12   :  { %61 = vrot.lane.b32.xlu0 %v121_v8, %s151_s16  ;;  %68 = vrot.lane.b32.xlu1 %v122_v9, %s152_s17 }
  0x16   :  { %75 = vrot.lane.b32.xlu0 %v123_v11, %s153_s24  ;;  %82 = vrot.lane.b32.xlu1 %v124_v12, %s154_s25 }
  0x1a   :  { %89 = vrot.lane.b32.xlu0 %v125_v13, %s155_s2  ;;  %96 = vrot.lane.b32.xlu1 %v126_v14, %s156_s3 }
  0x1e   :  { %103 = vrot.lane.b32.xlu0 %v127_v15, %s157_s0 }
  0x74   :  { %v9_v16 = vpop.permute.xlu0 %8   ;;  %v21_v17 = vpop.permute.xlu1 %20  }
  0x75   :  { %11 = vst.msk [vmem:[#allocation0] sm:$0x1] %vm10_vm1, %v9_v16  }
  0x78   :  { %v15_v18 = vpop.permute.xlu0 %14   ;;  %v27_v19 = vpop.permute.xlu1 %26  }
  0x79   :  { %17 = vst.msk [vmem:[#allocation0] sm:$0x1] %vm16_vm2, %v15_v18  }
  0x7a   :  { %23 = vst.msk [vmem:[#allocation0] sm:$0x1] %vm22_vm3, %v21_v17  }
  0x7b   :  { %29 = vst.msk [vmem:[#allocation0] sm:$0x1] %vm28_vm4, %v27_v19  }
  0x7c   :  { %v34_v20 = vpop.permute.xlu0 %33   ;;  %v41_v21 = vpop.permute.xlu1 %40  }
  0x7d   :  { %36 = vst.msk [vmem:[#allocation0] sm:$0x3] %vm35_vm5, %v34_v20  }
  0x7e   :  { %43 = vst.msk [vmem:[#allocation0] sm:$0x3] %vm42_vm6, %v41_v21  }
  0x80   :  { %v48_v22 = vpop.permute.xlu0 %47   ;;  %v55_v23 = vpop.permute.xlu1 %54  }
  0x81   :  { %50 = vst.msk [vmem:[#allocation0] sm:$0x3] %vm49_vm7, %v48_v22  }
  0x82   :  { %57 = vst.msk [vmem:[#allocation0] sm:$0x3] %vm56_vm8, %v55_v23  }
  0x84   :  { %v62_v24 = vpop.permute.xlu0 %61   ;;  %v69_v25 = vpop.permute.xlu1 %68  }
  0x85   :  { %64 = vst.msk [vmem:[#allocation0] sm:$0x3] %vm63_vm9, %v62_v24  }
  0x86   :  { %71 = vst.msk [vmem:[#allocation0] sm:$0x3] %vm70_vm10, %v69_v25  }
  0x88   :  { %v76_v26 = vpop.permute.xlu0 %75   ;;  %v83_v27 = vpop.permute.xlu1 %82  }
  0x89   :  { %78 = vst.msk [vmem:[#allocation0] sm:$0x3] %vm77_vm11, %v76_v26  }
  0x8a   :  { %85 = vst.msk [vmem:[#allocation0] sm:$0x3] %vm84_vm12, %v83_v27  }
  0x8c   :  { %v90_v28 = vpop.permute.xlu0 %89   ;;  %v97_v29 = vpop.permute.xlu1 %96  }
  0x8d   :  { %92 = vst.msk [vmem:[#allocation0] sm:$0x3] %vm91_vm13, %v90_v28  }
  0x8e   :  { %99 = vst.msk [vmem:[#allocation0] sm:$0x3] %vm98_vm14, %v97_v29  }
  0x90   :  { %v104_v30 = vpop.permute.xlu0 %103  }
  0x91   :  { %106 = vst.msk [vmem:[#allocation0] sm:$0x3] %vm105_vm15, %v104_v30  }
  0x98   :  { %v110_v31 = vld [vmem:[#allocation0] sm:$0x3] }
  0x99   :  { %112 = vst [vmem:[%s220_s1] sm:$0x3] %v110_v31 }

// kernel: tile.18
= control target key start
LH: loop header
LB: loop body
LE: loop exit
PB: predicated region body
PF: predicated region fallthrough
CT: control target
= control target key end

     0   :  { %s28_s0 = inlined_call_operand.vmem [shape: f32[16], index: 0, kind: input, shape index: {}]   ;;  %s29_s1 = inlined_call_operand.vmem [shape: f32[10,16], index: 1, kind: output, shape index: {}]  }
   0x1   :  { %v4_v0 = vld [vmem:[%s28_s0] ss:$0 sm:$0xff] }
   0x2   :  { %5 = vst [vmem:[%s29_s1] sm:$0xff] %v4_v0  ;;  %8 = vst [vmem:[%s29_s1 + $0x8] sm:$0xff] %v4_v0 }

// kernel: tile.19
= control target key start
LH: loop header
LB: loop body
LE: loop exit
PB: predicated region body
PF: predicated region fallthrough
CT: control target
= control target key end

     0   :  { %s69_s10 = smov 112   ;;  %s70_s11 = smov 80   ;;  %vm4_vm0 = vcmask 130048   ;;  %vm10_vm1 = vcmask 1048448   ;;  %vm16_vm2 = vcmask 917248   ;;  %vm22_vm3 = vcmask 786048   ;;  %s113_s0 = inlined_call_operand.vmem [shape: f32[10,16], index: 0, kind: input, shape index: {}]   ;;  %s114_s1 = inlined_call_operand.vmem [shape: f32[160], index: 1, kind: output, shape index: {}]  }
   0x1   :  { %v55_v0 = vld [vmem:[%s113_s0 + $0x7] sm:$0x1]   ;;  %v57_v1 = vld [vmem:[%s113_s0 + $0x5] sm:$0x1]   ;;  %v56_v2 = vld [vmem:[%s113_s0 + $0x6] sm:$0x1]  }
   0x2   :  { %8 = vrot.lane.b32.xlu0 %v55_v0, %s69_s10  ;;  %20 = vrot.lane.b32.xlu1 %v57_v1, %s70_s11  ;;  %v58_v3 = vld [vmem:[%s113_s0 + $0x4] sm:$0x1]   ;;  %s2_s16 = smov 3  ;;  %s71_s17 = smov 96   ;;  %v59_v5 = vld [vmem:[%s113_s0 + $0x3] sm:$0x1]  }
   0x3   :  { %s72_s18 = smov 64   ;;  %v3_v4 = vld [vmem:[%s113_s0] ss:$8 sm:%s2_s16]   ;;  %v60_v6 = vld [vmem:[%s113_s0 + $0x2] sm:$0x1]   ;;  %s43_s25 = smov 3 }
   0x4   :  { %5 = vst.msk [vmem:[#allocation0] sm:$0x3] %vm4_vm0, %v3_v4   ;;  %s73_s26 = smov 48   ;;  %s74_s27 = smov 32   ;;  %v61_v7 = vld [vmem:[%s113_s0 + $0x1] ss:$8 sm:%s43_s25]  }
   0x5   :  { %s75_s0 = smov 16   ;;  %vm28_vm4 = vcmask 654848   ;;  %vm34_vm5 = vcmask 523648   ;;  %vm40_vm6 = vcmask 392448   ;;  %vm47_vm7 = vcmask 261248  }
   0x6   :  { %14 = vrot.lane.b32.xlu0 %v56_v2, %s71_s17  ;;  %26 = vrot.lane.b32.xlu1 %v58_v3, %s72_s18 }
   0xa   :  { %32 = vrot.lane.b32.xlu0 %v59_v5, %s73_s26  ;;  %38 = vrot.lane.b32.xlu1 %v60_v6, %s74_s27 }
   0xe   :  { %45 = vrot.lane.b32.xlu0 %v61_v7, %s75_s0 }
  0x74   :  { %v9_v8 = vpop.permute.xlu0 %8   ;;  %v21_v9 = vpop.permute.xlu1 %20  }
  0x75   :  { %11 = vst.msk [vmem:[#allocation0] sm:$0x1] %vm10_vm1, %v9_v8  }
  0x78   :  { %v15_v10 = vpop.permute.xlu0 %14   ;;  %v27_v11 = vpop.permute.xlu1 %26  }
  0x79   :  { %17 = vst.msk [vmem:[#allocation0] sm:$0x1] %vm16_vm2, %v15_v10  }
  0x7a   :  { %23 = vst.msk [vmem:[#allocation0] sm:$0x1] %vm22_vm3, %v21_v9  }
  0x7b   :  { %29 = vst.msk [vmem:[#allocation0] sm:$0x1] %vm28_vm4, %v27_v11  }
  0x7c   :  { %v33_v12 = vpop.permute.xlu0 %32   ;;  %v39_v13 = vpop.permute.xlu1 %38  }
  0x7d   :  { %35 = vst.msk [vmem:[#allocation0] sm:$0x1] %vm34_vm5, %v33_v12  }
  0x7e   :  { %41 = vst.msk [vmem:[#allocation0] sm:$0x1] %vm40_vm6, %v39_v13  }
  0x80   :  { %v46_v14 = vpop.permute.xlu0 %45  }
  0x81   :  { %48 = vst.msk [vmem:[#allocation0] sm:$0x3] %vm47_vm7, %v46_v14  }
  0x88   :  { %v52_v15 = vld [vmem:[#allocation0] sm:$0x3] }
  0x89   :  { %54 = vst [vmem:[%s114_s1] sm:$0x3] %v52_v15 }

// kernel: net_forward.1
= control target key start
LH: loop header
LB: loop body
LE: loop exit
PB: predicated region body
PF: predicated region fallthrough
CT: control target
= control target key end

     0   :  { %vm11647_vm0 = vmmov 0   ;;  %s15042_s1 = inlined_call_operand.vmem [shape: bf16[5,256,256], index: 1, kind: input, shape index: {}]   ;;  %s15043_s0 = inlined_call_operand.vmem [shape: bf16[32,16,256], index: 0, kind: input, shape index: {}]   ;;  %s15044_s2 = inlined_call_operand.vmem [shape: bf16[256,256], index: 2, kind: input, shape index: {}]   ;;  %s15045_s3 = inlined_call_operand.vmem [shape: f32[1,256], index: 3, kind: input, shape index: {}]   ;;  %s15046_s4 = inlined_call_operand.vmem [shape: bf16[5,256,256], index: 4, kind: input, shape index: {}]   ;;  %s15047_s5 = inlined_call_operand.vmem [shape: bf16[256,256], index: 5, kind: input, shape index: {}]   ;;  %s15048_s7 = inlined_call_operand.vmem [shape: bf16[5,256,128], index: 7, kind: input, shape index: {}]   ;;  %s15049_s6 = inlined_call_operand.vmem [shape: f32[1,256], index: 6, kind: input, shape index: {}]   ;;  %s15050_s9 = inlined_call_operand.vmem [shape: bf16[128,128], index: 9, kind: input, shape index: {}]   ;;  %s15051_s11 = inlined_call_operand.vmem [shape: bf16[128,128], index: 11, kind: input, shape index: {}]   ;;  %s15052_s8 = inlined_call_operand.vmem [shape: f32[1,128], index: 8, kind: input, shape index: {}]   ;;  %s15053_s10 = inlined_call_operand.vmem [shape: f32[1,128], index: 10, kind: input, shape index: {}]   ;;  %s15054_s12 = inlined_call_operand.vmem [shape: f32[1,128], index: 12, kind: input, shape index: {}]   ;;  %s15055_s13 = inlined_call_operand.vmem [shape: f32[16,128], index: 13, kind: output, shape index: {}]  }
   0x1   :  { %v10782_v0 = vld [vmem:[%s15042_s1 + $0x104] ss:$8 sps:$4 sm:$0xff]   ;;  %v10784_v1 = vld [vmem:[%s15042_s1 + $0x100] ss:$8 sps:$4 sm:$0xff]   ;;  %v10785_v2 = vld [vmem:[%s15042_s1 + $0x114] ss:$8 sps:$4 sm:$0xff]  }
   0x2   :  { %663 = vmatprep.subr.bf16.mxu0 %v10782_v0  ;;  %v10787_v3 = vld [vmem:[%s15042_s1 + $0x110] ss:$8 sps:$4 sm:$0xff]   ;;  %v10788_v4 = vld [vmem:[%s15042_s1 + $0x124] ss:$8 sps:$4 sm:$0xff]   ;;  %v10790_v5 = vld [vmem:[%s15042_s1 + $0x120] ss:$8 sps:$4 sm:$0xff]  }
   0x3   :  { %664 = vmatpush1.bf16.msra.mxu0 %v10784_v1  ;;  %v10791_v6 = vld [vmem:[%s15042_s1 + $0x134] ss:$8 sps:$4 sm:$0xff]   ;;  %v10793_v7 = vld [vmem:[%s15042_s1 + $0x130] ss:$8 sps:$4 sm:$0xff]   ;;  %v10794_v8 = vld [vmem:[%s15042_s1 + $0x144] ss:$8 sps:$4 sm:$0xff]  }
   0x4   :  { %665 = vmatprep.subr.bf16.mxu0 %v10785_v2  ;;  %v10796_v9 = vld [vmem:[%s15042_s1 + $0x140] ss:$8 sps:$4 sm:$0xff]   ;;  %v10797_v10 = vld [vmem:[%s15042_s1 + $0x154] ss:$8 sps:$4 sm:$0xff]   ;;  %v10799_v11 = vld [vmem:[%s15042_s1 + $0x150] ss:$8 sps:$4 sm:$0xff]  }
   0x5   :  { %v10800_v12 = vld [vmem:[%s15042_s1 + $0x164] ss:$8 sps:$4 sm:$0xff]   ;;  %v11760_v13 = vld [vmem:[%s15043_s0 + $0x14] ss:$8 sps:$4 sm:$0xff]   ;;  %v10802_v14 = vld [vmem:[%s15042_s1 + $0x160] ss:$8 sps:$4 sm:$0xff]  }
   0x6   :  { %v10803_v15 = vld [vmem:[%s15042_s1 + $0x174] ss:$8 sps:$4 sm:$0xff]   ;;  %695 = vmatprep.mubr.bf16.mxu0 %v11760_v13  ;;  %v10805_v16 = vld [vmem:[%s15042_s1 + $0x170] ss:$8 sps:$4 sm:$0xff]   ;;  %v10806_v17 = vld [vmem:[%s15042_s1 + $0x184] ss:$8 sps:$4 sm:$0xff]  }
   0x7   :  { %666 = vmatpush1.bf16.msra.mxu0 %v10787_v3  ;;  %v10808_v18 = vld [vmem:[%s15042_s1 + $0x180] ss:$8 sps:$4 sm:$0xff]   ;;  %v10809_v19 = vld [vmem:[%s15042_s1 + $0x194] ss:$8 sps:$4 sm:$0xff]   ;;  %v10811_v20 = vld [vmem:[%s15042_s1 + $0x190] ss:$8 sps:$4 sm:$0xff]  }
   0x8   :  { %667 = vmatprep.subr.bf16.mxu0 %v10788_v4  ;;  %v10812_v21 = vld [vmem:[%s15042_s1 + $0x1a4] ss:$8 sps:$4 sm:$0xff]   ;;  %v10814_v22 = vld [vmem:[%s15042_s1 + $0x1a0] ss:$8 sps:$4 sm:$0xff]   ;;  %v10815_v23 = vld [vmem:[%s15042_s1 + $0x1b4] ss:$8 sps:$4 sm:$0xff]  }
   0x9   :  { %v10817_v24 = vld [vmem:[%s15042_s1 + $0x1b0] ss:$8 sps:$4 sm:$0xff]   ;;  %v10818_v25 = vld [vmem:[%s15042_s1 + $0x1c4] ss:$8 sps:$4 sm:$0xff]   ;;  %v10820_v26 = vld [vmem:[%s15042_s1 + $0x1c0] ss:$8 sps:$4 sm:$0xff]  }
   0xa   :  { %v10821_v27 = vld [vmem:[%s15042_s1 + $0x1d4] ss:$8 sps:$4 sm:$0xff]   ;;  %v10823_v28 = vld [vmem:[%s15042_s1 + $0x1d0] ss:$8 sps:$4 sm:$0xff]   ;;  %v10824_v29 = vld [vmem:[%s15042_s1 + $0x1e4] ss:$8 sps:$4 sm:$0xff]  }
   0xb   :  { %668 = vmatpush1.bf16.msra.mxu0 %v10790_v5  ;;  %v10826_v30 = vld [vmem:[%s15042_s1 + $0x1e0] ss:$8 sps:$4 sm:$0xff]   ;;  %v10827_v31 = vld [vmem:[%s15042_s1 + $0x1f4] ss:$8 sps:$4 sm:$0xff]   ;;  %v10829_v32 = vld [vmem:[%s15042_s1 + $0x1f0] ss:$8 sps:$4 sm:$0xff]  }
   0xc   :  { %669 = vmatprep.subr.bf16.mxu0 %v10791_v6  ;;  %v10835_v33 = vld [vmem:[%s15042_s1 + $0x4] ss:$8 sps:$4 sm:$0xff]   ;;  %v11826_v34 = vld [vmem:[%s15043_s0 + $0x10] ss:$8 sps:$4 sm:$0xff]   ;;  %v10833_v35 = vld [vmem:[%s15042_s1] ss:$8 sps:$4 sm:$0xff]  }
   0xd   :  { %v11834_v36 = vld [vmem:[%s15043_s0 + $0x24] ss:$8 sps:$4 sm:$0xff]   ;;  %v10841_v37 = vld [vmem:[%s15042_s1 + $0x14] ss:$8 sps:$4 sm:$0xff]   ;;  %v10839_v38 = vld [vmem:[%s15042_s1 + $0x10] ss:$8 sps:$4 sm:$0xff]  }
   0xe   :  { %v10850_v39 = vld [vmem:[%s15042_s1 + $0x24] ss:$8 sps:$4 sm:$0xff]   ;;  %v11850_v40 = vld [vmem:[%s15043_s0 + $0x20] ss:$8 sps:$4 sm:$0xff]   ;;  %v11855_v41 = vld [vmem:[%s15043_s0 + $0x34] ss:$8 sps:$4 sm:$0xff]  }
   0xf   :  { %670 = vmatpush1.bf16.msra.mxu0 %v10793_v7  ;;  %v10848_v42 = vld [vmem:[%s15042_s1 + $0x20] ss:$8 sps:$4 sm:$0xff]   ;;  %v10859_v43 = vld [vmem:[%s15042_s1 + $0x34] ss:$8 sps:$4 sm:$0xff]   ;;  %v10857_v44 = vld [vmem:[%s15042_s1 + $0x30] ss:$8 sps:$4 sm:$0xff]  }
  0x10   :  { %671 = vmatprep.subr.bf16.mxu0 %v10794_v8  ;;  %v10868_v45 = vld [vmem:[%s15042_s1 + $0x44] ss:$8 sps:$4 sm:$0xff]   ;;  %v11874_v46 = vld [vmem:[%s15043_s0 + $0x30] ss:$8 sps:$4 sm:$0xff]   ;;  %v10866_v48 = vld [vmem:[%s15042_s1 + $0x40] ss:$8 sps:$4 sm:$0xff]  }
  0x11   :  { %v11879_v47 = vld [vmem:[%s15043_s0 + $0x44] ss:$8 sps:$4 sm:$0xff]   ;;  %v10874_v49 = vld [vmem:[%s15042_s1 + $0x54] ss:$8 sps:$4 sm:$0xff]   ;;  %v10872_v50 = vld [vmem:[%s15042_s1 + $0x50] ss:$8 sps:$4 sm:$0xff]  }
  0x12   :  { %v10883_v51 = vld [vmem:[%s15042_s1 + $0x64] ss:$8 sps:$4 sm:$0xff]   ;;  %v11898_v52 = vld [vmem:[%s15043_s0 + $0x40] ss:$8 sps:$4 sm:$0xff]   ;;  %v11903_v53 = vld [vmem:[%s15043_s0 + $0x54] ss:$8 sps:$4 sm:$0xff]  }
  0x13   :  { %672 = vmatpush1.bf16.msra.mxu0 %v10796_v9  ;;  %v10881_v54 = vld [vmem:[%s15042_s1 + $0x60] ss:$8 sps:$4 sm:$0xff]   ;;  %v10892_v55 = vld [vmem:[%s15042_s1 + $0x74] ss:$8 sps:$4 sm:$0xff]   ;;  %v10890_v56 = vld [vmem:[%s15042_s1 + $0x70] ss:$8 sps:$4 sm:$0xff]  }
  0x14   :  { %673 = vmatprep.subr.bf16.mxu0 %v10797_v10  ;;  %v10901_v57 = vld [vmem:[%s15042_s1 + $0x84] ss:$8 sps:$4 sm:$0xff]   ;;  %v11922_v58 = vld [vmem:[%s15043_s0 + $0x50] ss:$8 sps:$4 sm:$0xff]   ;;  %v10899_v60 = vld [vmem:[%s15042_s1 + $0x80] ss:$8 sps:$4 sm:$0xff]  }
  0x15   :  { %v11927_v59 = vld [vmem:[%s15043_s0 + $0x64] ss:$8 sps:$4 sm:$0xff]   ;;  %v10907_v61 = vld [vmem:[%s15042_s1 + $0x94] ss:$8 sps:$4 sm:$0xff]   ;;  %v10905_v62 = vld [vmem:[%s15042_s1 + $0x90] ss:$8 sps:$4 sm:$0xff]  }
  0x16   :  { %v10916_v63 = vld [vmem:[%s15042_s1 + $0xa4] ss:$8 sps:$4 sm:$0xff]   ;;  %v11946_v0 = vld [vmem:[%s15043_s0 + $0x60] ss:$8 sps:$4 sm:$0xff]   ;;  %v11951_v1 = vld [vmem:[%s15043_s0 + $0x74] ss:$8 sps:$4 sm:$0xff]  }
  0x17   :  { %674 = vmatpush1.bf16.msra.mxu0 %v10799_v11  ;;  %v10914_v2 = vld [vmem:[%s15042_s1 + $0xa0] ss:$8 sps:$4 sm:$0xff]   ;;  %v10925_v3 = vld [vmem:[%s15042_s1 + $0xb4] ss:$8 sps:$4 sm:$0xff]   ;;  %v10923_v4 = vld [vmem:[%s15042_s1 + $0xb0] ss:$8 sps:$4 sm:$0xff]  }
  0x18   :  { %675 = vmatprep.subr.bf16.mxu0 %v10800_v12  ;;  %v10934_v5 = vld [vmem:[%s15042_s1 + $0xc4] ss:$8 sps:$4 sm:$0xff]   ;;  %v11970_v6 = vld [vmem:[%s15043_s0 + $0x70] ss:$8 sps:$4 sm:$0xff]   ;;  %v10932_v8 = vld [vmem:[%s15042_s1 + $0xc0] ss:$8 sps:$4 sm:$0xff]  }
  0x19   :  { %v11975_v7 = vld [vmem:[%s15043_s0 + $0x84] ss:$8 sps:$4 sm:$0xff]   ;;  %v10940_v9 = vld [vmem:[%s15042_s1 + $0xd4] ss:$8 sps:$4 sm:$0xff]   ;;  %v10938_v10 = vld [vmem:[%s15042_s1 + $0xd0] ss:$8 sps:$4 sm:$0xff]  }
  0x1a   :  { %v11991_v11 = vld [vmem:[%s15043_s0 + $0x80] ss:$8 sps:$4 sm:$0xff]   ;;  %v11996_v12 = vld [vmem:[%s15043_s0 + $0x94] ss:$8 sps:$4 sm:$0xff]  }
  0x1b   :  { %676 = vmatpush1.bf16.msra.mxu0 %v10802_v14  ;;  %v12003_v14 = vld [vmem:[%s15043_s0 + $0x90] ss:$8 sps:$4 sm:$0xff]  }
  0x1c   :  { %677 = vmatprep.subr.bf16.mxu0 %v10803_v15  ;;  %v12008_v15 = vld [vmem:[%s15043_s0 + $0xa4] ss:$8 sps:$4 sm:$0xff]  }
  0x1f   :  { %678 = vmatpush1.bf16.msra.mxu0 %v10805_v16  ;;  %v10947_v16 = vld [vmem:[%s15042_s1 + $0xe0] ss:$8 sps:$4 sm:$0xff]  }
  0x20   :  { %679 = vmatprep.subr.bf16.mxu0 %v10806_v17  ;;  %v10949_v17 = vld [vmem:[%s15042_s1 + $0xe4] ss:$8 sps:$4 sm:$0xff]  }
  0x23   :  { %680 = vmatpush1.bf16.msra.mxu0 %v10808_v18  ;;  %v12021_v18 = vld [vmem:[%s15043_s0 + $0xa0] ss:$8 sps:$4 sm:$0xff]  }
  0x24   :  { %681 = vmatprep.subr.bf16.mxu0 %v10809_v19  ;;  %v12026_v19 = vld [vmem:[%s15043_s0 + $0xb4] ss:$8 sps:$4 sm:$0xff]  }
  0x27   :  { %682 = vmatpush1.bf16.msra.mxu0 %v10811_v20  ;;  %v12033_v20 = vld [vmem:[%s15043_s0 + $0xb0] ss:$8 sps:$4 sm:$0xff]  }
  0x28   :  { %683 = vmatprep.subr.bf16.mxu0 %v10812_v21  ;;  %v12038_v21 = vld [vmem:[%s15043_s0 + $0xc4] ss:$8 sps:$4 sm:$0xff]  }
  0x2b   :  { %684 = vmatpush1.bf16.msra.mxu0 %v10814_v22  ;;  %v10956_v22 = vld [vmem:[%s15042_s1 + $0xf0] ss:$8 sps:$4 sm:$0xff]  }
  0x2c   :  { %685 = vmatprep.subr.bf16.mxu0 %v10815_v23  ;;  %v10958_v23 = vld [vmem:[%s15042_s1 + $0xf4] ss:$8 sps:$4 sm:$0xff]  }
  0x2f   :  { %686 = vmatpush1.bf16.msra.mxu0 %v10817_v24  ;;  %v12051_v24 = vld [vmem:[%s15043_s0 + $0xc0] ss:$8 sps:$4 sm:$0xff]  }
  0x30   :  { %687 = vmatprep.subr.bf16.mxu0 %v10818_v25  ;;  %v12056_v25 = vld [vmem:[%s15043_s0 + $0xd4] ss:$8 sps:$4 sm:$0xff]  }
  0x33   :  { %688 = vmatpush1.bf16.msra.mxu0 %v10820_v26  ;;  %v12063_v26 = vld [vmem:[%s15043_s0 + $0xd0] ss:$8 sps:$4 sm:$0xff]  }
  0x34   :  { %689 = vmatprep.subr.bf16.mxu0 %v10821_v27  ;;  %v12068_v27 = vld [vmem:[%s15043_s0 + $0xe4] ss:$8 sps:$4 sm:$0xff]  }
  0x37   :  { %690 = vmatpush1.bf16.msra.mxu0 %v10823_v28  ;;  %v10967_v28 = vld [vmem:[%s15042_s1 + $0x204] ss:$8 sps:$4 sm:$0xff]  }
  0x38   :  { %691 = vmatprep.subr.bf16.mxu0 %v10824_v29  ;;  %v12078_v29 = vld [vmem:[%s15043_s0 + $0xe0] ss:$8 sps:$4 sm:$0xff]  }
  0x3b   :  { %692 = vmatpush1.bf16.msra.mxu0 %v10826_v30  ;;  %v12083_v30 = vld [vmem:[%s15043_s0 + $0xf4] ss:$8 sps:$4 sm:$0xff]  }
  0x3c   :  { %693 = vmatprep.subr.bf16.mxu0 %v10827_v31  ;;  %v12090_v31 = vld [vmem:[%s15043_s0 + $0xf0] ss:$8 sps:$4 sm:$0xff]  }
  0x3f   :  { %694 = vmatpush1.bf16.msra.mxu0 %v10829_v32  ;;  %v12095_v32 = vld [vmem:[%s15043_s0 + $0x104] ss:$8 sps:$4 sm:$0xff]  }
  0x40   :  { %1416 = vmatprep.subr.bf16.mxu0 %v10835_v33  ;;  %v12102_v33 = vld [vmem:[%s15043_s0 + $0x100] ss:$8 sps:$4 sm:$0xff]  }
  0x42   :  { %696 = vmatmul.mubr.bf16.vlgmr.msra.gmra.mrb[0].mxu0 %v11826_v34 }
  0x43   :  { %1417 = vmatpush1.bf16.msra.mxu0 %v10833_v35  ;;  %705 = vmatprep.mubr.bf16.mxu0 %v11834_v36  ;;  %v12107_v35 = vld [vmem:[%s15043_s0 + $0x114] ss:$8 sps:$4 sm:$0xff]  }
  0x44   :  { %1418 = vmatprep.subr.bf16.mxu0 %v10841_v37  ;;  %v12114_v37 = vld [vmem:[%s15043_s0 + $0x110] ss:$8 sps:$4 sm:$0xff]  }
  0x47   :  { %1419 = vmatpush1.bf16.msra.mxu0 %v10839_v38  ;;  %v12119_v38 = vld [vmem:[%s15043_s0 + $0x124] ss:$8 sps:$4 sm:$0xff]  }
  0x48   :  { %1420 = vmatprep.subr.bf16.mxu0 %v10850_v39  ;;  %v12126_v39 = vld [vmem:[%s15043_s0 + $0x120] ss:$8 sps:$4 sm:$0xff]  }
  0x4a   :  { %706 = vmatmul.mubr.bf16.gmra.mrb[4].mxu0 %v11850_v40 }
  0x4b   :  { %715 = vmatprep.mubr.bf16.mxu0 %v11855_v41  ;;  %1421 = vmatpush1.bf16.msra.mxu0 %v10848_v42  ;;  %v12131_v42 = vld [vmem:[%s15043_s0 + $0x134] ss:$8 sps:$4 sm:$0xff]  }
  0x4c   :  { %1422 = vmatprep.subr.bf16.mxu0 %v10859_v43  ;;  %v12138_v43 = vld [vmem:[%s15043_s0 + $0x130] ss:$8 sps:$4 sm:$0xff]  }
  0x4f   :  { %1423 = vmatpush1.bf16.msra.mxu0 %v10857_v44  ;;  %v12143_v44 = vld [vmem:[%s15043_s0 + $0x144] ss:$8 sps:$4 sm:$0xff]  }
  0x50   :  { %1424 = vmatprep.subr.bf16.mxu0 %v10868_v45  ;;  %v12150_v45 = vld [vmem:[%s15043_s0 + $0x140] ss:$8 sps:$4 sm:$0xff]  }
  0x52   :  { %716 = vmatmul.mubr.bf16.gmra.mrb[8].mxu0 %v11874_v46 }
  0x53   :  { %725 = vmatprep.mubr.bf16.mxu0 %v11879_v47  ;;  %1425 = vmatpush1.bf16.msra.mxu0 %v10866_v48  ;;  %v12155_v48 = vld [vmem:[%s15043_s0 + $0x154] ss:$8 sps:$4 sm:$0xff]  }
  0x54   :  { %1426 = vmatprep.subr.bf16.mxu0 %v10874_v49  ;;  %v12162_v49 = vld [vmem:[%s15043_s0 + $0x150] ss:$8 sps:$4 sm:$0xff]  }
  0x57   :  { %1427 = vmatpush1.bf16.msra.mxu0 %v10872_v50  ;;  %v12167_v50 = vld [vmem:[%s15043_s0 + $0x164] ss:$8 sps:$4 sm:$0xff]  }
  0x58   :  { %1428 = vmatprep.subr.bf16.mxu0 %v10883_v51  ;;  %v12174_v51 = vld [vmem:[%s15043_s0 + $0x160] ss:$8 sps:$4 sm:$0xff]  }
  0x5a   :  { %726 = vmatmul.mubr.bf16.gmra.mrb[12].mxu0 %v11898_v52 }
  0x5b   :  { %735 = vmatprep.mubr.bf16.mxu0 %v11903_v53  ;;  %1429 = vmatpush1.bf16.msra.mxu0 %v10881_v54  ;;  %v12179_v54 = vld [vmem:[%s15043_s0 + $0x174] ss:$8 sps:$4 sm:$0xff]  }
  0x5c   :  { %1430 = vmatprep.subr.bf16.mxu0 %v10892_v55  ;;  %v12186_v55 = vld [vmem:[%s15043_s0 + $0x170] ss:$8 sps:$4 sm:$0xff]  }
  0x5f   :  { %1431 = vmatpush1.bf16.msra.mxu0 %v10890_v56  ;;  %v12191_v56 = vld [vmem:[%s15043_s0 + $0x184] ss:$8 sps:$4 sm:$0xff]  }
  0x60   :  { %1432 = vmatprep.subr.bf16.mxu0 %v10901_v57  ;;  %v12198_v57 = vld [vmem:[%s15043_s0 + $0x180] ss:$8 sps:$4 sm:$0xff]  }
  0x62   :  { %736 = vmatmul.mubr.bf16.gmra.mrb[16].mxu0 %v11922_v58 }
  0x63   :  { %745 = vmatprep.mubr.bf16.mxu0 %v11927_v59  ;;  %1433 = vmatpush1.bf16.msra.mxu0 %v10899_v60  ;;  %v12203_v60 = vld [vmem:[%s15043_s0 + $0x194] ss:$8 sps:$4 sm:$0xff]  }
  0x64   :  { %1434 = vmatprep.subr.bf16.mxu0 %v10907_v61  ;;  %v12210_v61 = vld [vmem:[%s15043_s0 + $0x190] ss:$8 sps:$4 sm:$0xff]  }
  0x67   :  { %1435 = vmatpush1.bf16.msra.mxu0 %v10905_v62  ;;  %v12215_v62 = vld [vmem:[%s15043_s0 + $0x1a4] ss:$8 sps:$4 sm:$0xff]  }
  0x68   :  { %1436 = vmatprep.subr.bf16.mxu0 %v10916_v63  ;;  %v12222_v63 = vld [vmem:[%s15043_s0 + $0x1a0] ss:$8 sps:$4 sm:$0xff]  }
  0x6a   :  { %746 = vmatmul.mubr.bf16.gmra.mrb[20].mxu0 %v11946_v0 }
  0x6b   :  { %755 = vmatprep.mubr.bf16.mxu0 %v11951_v1  ;;  %1437 = vmatpush1.bf16.msra.mxu0 %v10914_v2  ;;  %v12227_v2 = vld [vmem:[%s15043_s0 + $0x1b4] ss:$8 sps:$4 sm:$0xff]  }
  0x6c   :  { %1438 = vmatprep.subr.bf16.mxu0 %v10925_v3  ;;  %v12234_v3 = vld [vmem:[%s15043_s0 + $0x1b0] ss:$8 sps:$4 sm:$0xff]  }
  0x6f   :  { %1439 = vmatpush1.bf16.msra.mxu0 %v10923_v4  ;;  %v10959_v4 = vld [vmem:[%s15043_s0 + $0x1c4] ss:$8 sps:$4 sm:$0xff]  }
  0x70   :  { %1440 = vmatprep.subr.bf16.mxu0 %v10934_v5  ;;  %v10961_v5 = vld [vmem:[%s15043_s0 + $0x1c0] ss:$8 sps:$4 sm:$0xff]  }
  0x72   :  { %756 = vmatmul.mubr.bf16.gmra.mrb[24].mxu0 %v11970_v6 }
  0x73   :  { %765 = vmatprep.mubr.bf16.mxu0 %v11975_v7  ;;  %1441 = vmatpush1.bf16.msra.mxu0 %v10932_v8  ;;  %v10964_v8 = vld [vmem:[%s15043_s0 + $0x4] ss:$8 sps:$4 sm:$0xff]  }
  0x74   :  { %1442 = vmatprep.subr.bf16.mxu0 %v10940_v9  ;;  %v10962_v9 = vld [vmem:[%s15043_s0] ss:$8 sps:$4 sm:$0xff]  }
  0x77   :  { %1443 = vmatpush1.bf16.msra.mxu0 %v10938_v10  ;;  %v10965_v10 = vld [vmem:[%s15042_s1 + $0x200] ss:$8 sps:$4 sm:$0xff]  }
  0x78   :  { %1444 = vmatprep.subr.bf16.mxu0 %v10949_v17  ;;  %v10968_v17 = vld [vmem:[%s15042_s1 + $0x210] ss:$8 sps:$4 sm:$0xff]  }
  0x7a   :  { %766 = vmatmul.mubr.bf16.gmra.mrb[28].mxu0 %v11991_v11 }
  0x7b   :  { %775 = vmatprep.mubr.bf16.mxu0 %v11996_v12  ;;  %1445 = vmatpush1.bf16.msra.mxu0 %v10947_v16  ;;  %v10970_v16 = vld [vmem:[%s15042_s1 + $0x214] ss:$8 sps:$4 sm:$0xff]  }
  0x7c   :  { %1446 = vmatprep.subr.bf16.mxu0 %v10958_v23  ;;  %v10971_v23 = vld [vmem:[%s15042_s1 + $0x220] ss:$8 sps:$4 sm:$0xff]  }
  0x7f   :  { %1447 = vmatpush1.bf16.msra.mxu0 %v10956_v22  ;;  %v10973_v22 = vld [vmem:[%s15042_s1 + $0x224] ss:$8 sps:$4 sm:$0xff]  }
  0x80   :  { %2259 = vmatprep.subr.bf16.mxu0 %v10967_v28  ;;  %v10976_v28 = vld [vmem:[%s15042_s1 + $0x234] ss:$8 sps:$4 sm:$0xff]  }
  0x82   :  { %776 = vmatmul.mubr.bf16.gmra.mrb[32].mxu0 %v12003_v14 }
  0x83   :  { %785 = vmatprep.mubr.bf16.mxu0 %v12008_v15 }
  0x8a   :  { %786 = vmatmul.mubr.bf16.gmra.mrb[36].mxu0 %v12021_v18 }
  0x8b   :  { %795 = vmatprep.mubr.bf16.mxu0 %v12026_v19 }
  0x92   :  { %796 = vmatmul.mubr.bf16.gmra.mrb[40].mxu0 %v12033_v20 }
  0x93   :  { %805 = vmatprep.mubr.bf16.mxu0 %v12038_v21 }
  0x9a   :  { %806 = vmatmul.mubr.bf16.gmra.mrb[44].mxu0 %v12051_v24 }
  0x9b   :  { %815 = vmatprep.mubr.bf16.mxu0 %v12056_v25 }
  0xa2   :  { %816 = vmatmul.mubr.bf16.gmra.mrb[48].mxu0 %v12063_v26 }
  0xa3   :  { %825 = vmatprep.mubr.bf16.mxu0 %v12068_v27 }
  0xaa   :  { %826 = vmatmul.mubr.bf16.gmra.mrb[52].mxu0 %v12078_v29 }
  0xab   :  { %835 = vmatprep.mubr.bf16.mxu0 %v12083_v30 }
  0xb2   :  { %836 = vmatmul.mubr.bf16.gmra.mrb[56].mxu0 %v12090_v31 }
  0xb3   :  { %845 = vmatprep.mubr.bf16.mxu0 %v12095_v32 }
  0xba   :  { %846 = vmatmul.mubr.bf16.gmra.mrb[60].mxu0 %v12102_v33 }
  0xbb   :  { %855 = vmatprep.mubr.bf16.mxu0 %v12107_v35 }
  0xc2   :  { %856 = vmatmul.mubr.bf16.gmra.mrb[64].mxu0 %v12114_v37 }
  0xc3   :  { %865 = vmatprep.mubr.bf16.mxu0 %v12119_v38 }
  0xca   :  { %866 = vmatmul.mubr.bf16.gmra.mrb[68].mxu0 %v12126_v39 }
  0xcb   :  { %875 = vmatprep.mubr.bf16.mxu0 %v12131_v42 }
  0xd2   :  { %876 = vmatmul.mubr.bf16.gmra.mrb[72].mxu0 %v12138_v43 }
  0xd3   :  { %885 = vmatprep.mubr.bf16.mxu0 %v12143_v44 }
  0xda   :  { %886 = vmatmul.mubr.bf16.gmra.mrb[76].mxu0 %v12150_v45 }
  0xdb   :  { %895 = vmatprep.mubr.bf16.mxu0 %v12155_v48 }
  0xe2   :  { %896 = vmatmul.mubr.bf16.gmra.mrb[80].mxu0 %v12162_v49 }
  0xe3   :  { %905 = vmatprep.mubr.bf16.mxu0 %v12167_v50 }
  0xea   :  { %906 = vmatmul.mubr.bf16.gmra.mrb[84].mxu0 %v12174_v51 }
  0xeb   :  { %915 = vmatprep.mubr.bf16.mxu0 %v12179_v54 }
  0xf2   :  { %916 = vmatmul.mubr.bf16.gmra.mrb[88].mxu0 %v12186_v55 }
  0xf3   :  { %925 = vmatprep.mubr.bf16.mxu0 %v12191_v56 }
  0xfa   :  { %926 = vmatmul.mubr.bf16.gmra.mrb[92].mxu0 %v12198_v57 }
  0xfb   :  { %935 = vmatprep.mubr.bf16.mxu0 %v12203_v60 }
 0x102   :  { %936 = vmatmul.mubr.bf16.gmra.mrb[96].mxu0 %v12210_v61 }
 0x103   :  { %945 = vmatprep.mubr.bf16.mxu0 %v12215_v62 }
 0x10a   :  { %946 = vmatmul.mubr.bf16.gmra.mrb[100].mxu0 %v12222_v63 }
 0x10b   :  { %955 = vmatprep.mubr.bf16.mxu0 %v12227_v2 }
 0x112   :  { %956 = vmatmul.mubr.bf16.gmra.mrb[104].mxu0 %v12234_v3 }
 0x113   :  { %965 = vmatprep.mubr.bf16.mxu0 %v10959_v4  ;;  %v10979_v4 = vld [vmem:[%s15042_s1 + $0x244] ss:$8 sps:$4 sm:$0xff]  }
 0x11a   :  { %966 = vmatmul.mubr.bf16.gmra.mrb[108].mxu0 %v10961_v5  ;;  %v10977_v5 = vld [vmem:[%s15042_s1 + $0x240] ss:$8 sps:$4 sm:$0xff]  }
 0x11b   :  { %1448 = vmatprep.mubr.bf16.mxu0 %v10964_v8  ;;  %v10985_v8 = vld [vmem:[%s15042_s1 + $0x264] ss:$8 sps:$4 sm:$0xff]  }
 0x122   :  { %1449 = vmatmul.mubr.bf16.vlgmr.msra.gmra.mrb[0].mxu0 %v10962_v9  ;;  %v10983_v9 = vld [vmem:[%s15042_s1 + $0x260] ss:$8 sps:$4 sm:$0xff]  }
 0x123   :  { %2260 = vmatpush1.bf16.msra.mxu0 %v10965_v10  ;;  %1458 = vmatprep.mubr.bf16.mxu0 %v11760_v13  ;;  %v10974_v13 = vld [vmem:[%s15042_s1 + $0x230] ss:$8 sps:$4 sm:$0xff]   ;;  %v10991_v10 = vld [vmem:[%s15042_s1 + $0x284] ss:$8 sps:$4 sm:$0xff]  }
 0x124   :  { %2261 = vmatprep.subr.bf16.mxu0 %v10970_v16  ;;  %v10989_v16 = vld [vmem:[%s15042_s1 + $0x280] ss:$8 sps:$4 sm:$0xff]  }
 0x127   :  { %2262 = vmatpush1.bf16.msra.mxu0 %v10968_v17  ;;  %v10997_v17 = vld [vmem:[%s15042_s1 + $0x2a4] ss:$8 sps:$4 sm:$0xff]  }
 0x128   :  { %2263 = vmatprep.subr.bf16.mxu0 %v10973_v22  ;;  %v10995_v22 = vld [vmem:[%s15042_s1 + $0x2a0] ss:$8 sps:$4 sm:$0xff]  }
 0x12a   :  { %1459 = vmatmul.mubr.bf16.gmra.mrb[4].mxu0 %v11826_v34  ;;  %v10982_v34 = vld [vmem:[%s15042_s1 + $0x254] ss:$8 sps:$4 sm:$0xff]  }
 0x12b   :  { %1468 = vmatprep.mubr.bf16.mxu0 %v11834_v36  ;;  %2264 = vmatpush1.bf16.msra.mxu0 %v10971_v23  ;;  %v10980_v36 = vld [vmem:[%s15042_s1 + $0x250] ss:$8 sps:$4 sm:$0xff]   ;;  %v11003_v23 = vld [vmem:[%s15042_s1 + $0x2c4] ss:$8 sps:$4 sm:$0xff]  }
 0x12c   :  { %2265 = vmatprep.subr.bf16.mxu0 %v10976_v28  ;;  %v11001_v28 = vld [vmem:[%s15042_s1 + $0x2c0] ss:$8 sps:$4 sm:$0xff]  }
 0x12f   :  { %2266 = vmatpush1.bf16.msra.mxu0 %v10974_v13  ;;  %v12552_v13 = vld [vmem:[%s15043_s0 + $0x80] ss:$8 sps:$4 sm:$0xff]  }
 0x130   :  { %2267 = vmatprep.subr.bf16.mxu0 %v10979_v4  ;;  %v11115_v4 = vld [vmem:[%s15042_s1 + $0x3c0] ss:$8 sps:$4 sm:$0xff]  }
 0x132   :  { %1469 = vmatmul.mubr.bf16.gmra.mrb[8].mxu0 %v11850_v40  ;;  %v10988_v40 = vld [vmem:[%s15042_s1 + $0x274] ss:$8 sps:$4 sm:$0xff]  }
 0x133   :  { %1478 = vmatprep.mubr.bf16.mxu0 %v11855_v41  ;;  %2268 = vmatpush1.bf16.msra.mxu0 %v10977_v5  ;;  %v10986_v41 = vld [vmem:[%s15042_s1 + $0x270] ss:$8 sps:$4 sm:$0xff]   ;;  %v11123_v5 = vld [vmem:[%s15042_s1 + $0x3d4] ss:$8 sps:$4 sm:$0xff]  }
 0x134   :  { %2269 = vmatprep.subr.bf16.mxu0 %v10982_v34  ;;  %v11121_v34 = vld [vmem:[%s15042_s1 + $0x3d0] ss:$8 sps:$4 sm:$0xff]  }
 0x137   :  { %2270 = vmatpush1.bf16.msra.mxu0 %v10980_v36  ;;  %v12568_v36 = vld [vmem:[%s15043_s0 + $0x90] ss:$8 sps:$4 sm:$0xff]  }
 0x138   :  { %2271 = vmatprep.subr.bf16.mxu0 %v10985_v8  ;;  %v12573_v8 = vld [vmem:[%s15043_s0 + $0xa4] ss:$8 sps:$4 sm:$0xff]  }
 0x13a   :  { %1479 = vmatmul.mubr.bf16.gmra.mrb[12].mxu0 %v11874_v46  ;;  %v10994_v46 = vld [vmem:[%s15042_s1 + $0x294] ss:$8 sps:$4 sm:$0xff]  }
 0x13b   :  { %1488 = vmatprep.mubr.bf16.mxu0 %v11879_v47  ;;  %2272 = vmatpush1.bf16.msra.mxu0 %v10983_v9  ;;  %v10992_v47 = vld [vmem:[%s15042_s1 + $0x290] ss:$8 sps:$4 sm:$0xff]   ;;  %v12580_v9 = vld [vmem:[%s15043_s0 + $0xa0] ss:$8 sps:$4 sm:$0xff]  }
 0x13c   :  { %2273 = vmatprep.subr.bf16.mxu0 %v10988_v40  ;;  %15085 = vst [vmem:[#allocation2_spill] sm:$0xff] %v12580_v9  ;;  %v12585_v40 = vld [vmem:[%s15043_s0 + $0xb4] ss:$8 sps:$4 sm:$0xff]  }
 0x13d   :  { %15086 = vst [vmem:[#allocation3_spill] sm:$0xff] %v12585_v40 }
 0x13f   :  { %2274 = vmatpush1.bf16.msra.mxu0 %v10986_v41  ;;  %v11130_v41 = vld [vmem:[%s15042_s1 + $0x3e0] ss:$8 sps:$4 sm:$0xff]  }
 0x140   :  { %2275 = vmatprep.subr.bf16.mxu0 %v10991_v10  ;;  %v11132_v10 = vld [vmem:[%s15042_s1 + $0x3e4] ss:$8 sps:$4 sm:$0xff]  }
 0x142   :  { %1489 = vmatmul.mubr.bf16.gmra.mrb[16].mxu0 %v11898_v52  ;;  %v11000_v52 = vld [vmem:[%s15042_s1 + $0x2b4] ss:$8 sps:$4 sm:$0xff]  }
 0x143   :  { %1498 = vmatprep.mubr.bf16.mxu0 %v11903_v53  ;;  %2276 = vmatpush1.bf16.msra.mxu0 %v10989_v16  ;;  %v10998_v53 = vld [vmem:[%s15042_s1 + $0x2b0] ss:$8 sps:$4 sm:$0xff]  }
 0x144   :  { %2277 = vmatprep.subr.bf16.mxu0 %v10994_v46  ;;  %v12598_v16 = vld [vmem:[%s15043_s0 + $0xb0] ss:$8 sps:$4 sm:$0xff]   ;;  %v12603_v46 = vld [vmem:[%s15043_s0 + $0xc4] ss:$8 sps:$4 sm:$0xff]  }
 0x145   :  { %15087 = vst [vmem:[#allocation4_spill] sm:$0xff] %v12598_v16  ;;  %15088 = vst [vmem:[#allocation5_spill] sm:$0xff] %v12603_v46 }
 0x147   :  { %2278 = vmatpush1.bf16.msra.mxu0 %v10992_v47  ;;  %v11136_v47 = vld [vmem:[%s15042_s1 + $0x404] ss:$8 sps:$4 sm:$0xff]  }
 0x148   :  { %2279 = vmatprep.subr.bf16.mxu0 %v10997_v17  ;;  %v12611_v17 = vld [vmem:[%s15042_s1 + $0x400] ss:$8 sps:$4 sm:$0xff]   ;;  %10140 = vmatprep.subr.bf16.mxu1 %v11136_v47 }
 0x149   :  { %10156 = vmatpush1.bf16.msra.mxu1 %v12611_v17 }
 0x14a   :  { %1499 = vmatmul.mubr.bf16.gmra.mrb[20].mxu0 %v11922_v58  ;;  %v11006_v58 = vld [vmem:[%s15042_s1 + $0x2d4] ss:$8 sps:$4 sm:$0xff]  }
 0x14b   :  { %1508 = vmatprep.mubr.bf16.mxu0 %v11927_v59  ;;  %2280 = vmatpush1.bf16.msra.mxu0 %v10995_v22  ;;  %v11004_v59 = vld [vmem:[%s15042_s1 + $0x2d0] ss:$8 sps:$4 sm:$0xff]   ;;  %v12617_v22 = vld [vmem:[%s15042_s1 + $0x414] ss:$8 sps:$4 sm:$0xff]  }
 0x14c   :  { %2281 = vmatprep.subr.bf16.mxu0 %v11000_v52  ;;  %v12624_v52 = vld [vmem:[%s15042_s1 + $0x410] ss:$8 sps:$4 sm:$0xff]   ;;  %10141 = vmatprep.subr.bf16.mxu1 %v12617_v22 }
 0x14d   :  { %10157 = vmatpush1.bf16.msra.mxu1 %v12624_v52 }
 0x14f   :  { %2282 = vmatpush1.bf16.msra.mxu0 %v10998_v53  ;;  %v12630_v53 = vld [vmem:[%s15043_s0 + $0xc0] ss:$8 sps:$4 sm:$0xff]  }
 0x150   :  { %2283 = vmatprep.subr.bf16.mxu0 %v11003_v23  ;;  %15089 = vst [vmem:[#allocation6_spill] sm:$0xff] %v12630_v53  ;;  %v12635_v23 = vld [vmem:[%s15043_s0 + $0xd4] ss:$8 sps:$4 sm:$0xff]  }
 0x151   :  { %15090 = vst [vmem:[#allocation7_spill] sm:$0xff] %v12635_v23 }
 0x152   :  { %1509 = vmatmul.mubr.bf16.gmra.mrb[24].mxu0 %v11946_v0  ;;  %v11007_v0 = vld [vmem:[%s15042_s1 + $0x2e0] ss:$8 sps:$4 sm:$0xff]  }
 0x153   :  { %1518 = vmatprep.mubr.bf16.mxu0 %v11951_v1  ;;  %2284 = vmatpush1.bf16.msra.mxu0 %v11001_v28  ;;  %v11009_v1 = vld [vmem:[%s15042_s1 + $0x2e4] ss:$8 sps:$4 sm:$0xff]  }
 0x154   :  { %2285 = vmatprep.subr.bf16.mxu0 %v11006_v58  ;;  %v12641_v28 = vld [vmem:[%s15042_s1 + $0x424] ss:$8 sps:$4 sm:$0xff]   ;;  %v12646_v58 = vld [vmem:[%s15042_s1 + $0x420] ss:$8 sps:$4 sm:$0xff]  }
 0x155   :  { %10142 = vmatprep.subr.bf16.mxu1 %v12641_v28 }
 0x156   :  { %10158 = vmatpush1.bf16.msra.mxu1 %v12646_v58 }
 0x157   :  { %2286 = vmatpush1.bf16.msra.mxu0 %v11004_v59  ;;  %v11148_v59 = vld [vmem:[%s15042_s1 + $0x3f0] ss:$8 sps:$4 sm:$0xff]  }
 0x158   :  { %2287 = vmatprep.subr.bf16.mxu0 %v11009_v1  ;;  %v12659_v1 = vld [vmem:[%s15042_s1 + $0x434] ss:$8 sps:$4 sm:$0xff]  }
 0x159   :  { %10143 = vmatprep.subr.bf16.mxu1 %v12659_v1 }
 0x15a   :  { %1519 = vmatmul.mubr.bf16.gmra.mrb[28].mxu0 %v11970_v6  ;;  %v11010_v6 = vld [vmem:[%s15042_s1 + $0x2f0] ss:$8 sps:$4 sm:$0xff]  }
 0x15b   :  { %1528 = vmatprep.mubr.bf16.mxu0 %v11975_v7  ;;  %2288 = vmatpush1.bf16.msra.mxu0 %v11007_v0  ;;  %v11012_v7 = vld [vmem:[%s15042_s1 + $0x2f4] ss:$8 sps:$4 sm:$0xff]  }
 0x15c   :  { %2289 = vmatprep.subr.bf16.mxu0 %v11012_v7  ;;  %v11150_v0 = vld [vmem:[%s15042_s1 + $0x3f4] ss:$8 sps:$4 sm:$0xff]   ;;  %v12672_v7 = vld [vmem:[%s15043_s0 + $0xd0] ss:$8 sps:$4 sm:$0xff]  }
 0x15d   :  { %15091 = vst [vmem:[#allocation8_spill] sm:$0xff] %v12672_v7 }
 0x15f   :  { %2290 = vmatpush1.bf16.msra.mxu0 %v11010_v6  ;;  %v12666_v6 = vld [vmem:[%s15042_s1 + $0x430] ss:$8 sps:$4 sm:$0xff]  }
 0x160   :  { %10159 = vmatpush1.bf16.msra.mxu1 %v12666_v6 }
 0x162   :  { %1529 = vmatmul.mubr.bf16.gmra.mrb[32].mxu0 %v11991_v11  ;;  %v11018_v11 = vld [vmem:[%s15042_s1 + $0x304] ss:$8 sps:$4 sm:$0xff]  }
 0x163   :  { %1538 = vmatprep.mubr.bf16.mxu0 %v11996_v12  ;;  %3214 = vmatprep.subr.bf16.mxu0 %v11018_v11  ;;  %v12384_v12 = vld [vmem:[%s15043_s0 + $0x94] ss:$8 sps:$4 sm:$0xff]   ;;  %v12677_v11 = vld [vmem:[%s15043_s0 + $0xe4] ss:$8 sps:$4 sm:$0xff]  }
 0x164   :  { %4251 = vmatprep.mubr.bf16.mxu1 %v12384_v12  ;;  %15092 = vst [vmem:[#allocation9_spill] sm:$0xff] %v12677_v11 }
 0x16a   :  { %1539 = vmatmul.mubr.bf16.gmra.mrb[36].mxu0 %v12003_v14  ;;  %v11015_v14 = vld [vmem:[%s15043_s0 + $0x24] ss:$8 sps:$4 sm:$0xff]  }
 0x16b   :  { %1548 = vmatprep.mubr.bf16.mxu0 %v12008_v15  ;;  %v11013_v15 = vld [vmem:[%s15043_s0 + $0x20] ss:$8 sps:$4 sm:$0xff]  }
 0x172   :  { %1549 = vmatmul.mubr.bf16.gmra.mrb[40].mxu0 %v12021_v18  ;;  %v11016_v18 = vld [vmem:[%s15042_s1 + $0x300] ss:$8 sps:$4 sm:$0xff]  }
 0x173   :  { %1558 = vmatprep.mubr.bf16.mxu0 %v12026_v19  ;;  %v12417_v19 = vld [vmem:[%s15043_s0 + $0x34] ss:$8 sps:$4 sm:$0xff]  }
 0x17a   :  { %1559 = vmatmul.mubr.bf16.gmra.mrb[44].mxu0 %v12033_v20  ;;  %v11024_v20 = vld [vmem:[%s15042_s1 + $0x314] ss:$8 sps:$4 sm:$0xff]  }
 0x17b   :  { %1568 = vmatprep.mubr.bf16.mxu0 %v12038_v21  ;;  %v11022_v21 = vld [vmem:[%s15042_s1 + $0x310] ss:$8 sps:$4 sm:$0xff]  }
 0x182   :  { %1569 = vmatmul.mubr.bf16.gmra.mrb[48].mxu0 %v12051_v24  ;;  %v11033_v24 = vld [vmem:[%s15042_s1 + $0x324] ss:$8 sps:$4 sm:$0xff]  }
 0x183   :  { %1578 = vmatprep.mubr.bf16.mxu0 %v12056_v25  ;;  %v12432_v25 = vld [vmem:[%s15043_s0 + $0x30] ss:$8 sps:$4 sm:$0xff]  }
 0x18a   :  { %1579 = vmatmul.mubr.bf16.gmra.mrb[52].mxu0 %v12063_v26  ;;  %v12437_v26 = vld [vmem:[%s15043_s0 + $0x44] ss:$8 sps:$4 sm:$0xff]  }
 0x18b   :  { %1588 = vmatprep.mubr.bf16.mxu0 %v12068_v27  ;;  %v11031_v27 = vld [vmem:[%s15042_s1 + $0x320] ss:$8 sps:$4 sm:$0xff]  }
 0x192   :  { %1589 = vmatmul.mubr.bf16.gmra.mrb[56].mxu0 %v12078_v29  ;;  %v11042_v29 = vld [vmem:[%s15042_s1 + $0x334] ss:$8 sps:$4 sm:$0xff]  }
 0x193   :  { %1598 = vmatprep.mubr.bf16.mxu0 %v12083_v30  ;;  %v11040_v30 = vld [vmem:[%s15042_s1 + $0x330] ss:$8 sps:$4 sm:$0xff]  }
 0x19a   :  { %1599 = vmatmul.mubr.bf16.gmra.mrb[60].mxu0 %v12090_v31  ;;  %v11051_v31 = vld [vmem:[%s15042_s1 + $0x344] ss:$8 sps:$4 sm:$0xff]  }
 0x19b   :  { %1608 = vmatprep.mubr.bf16.mxu0 %v12095_v32  ;;  %v12456_v32 = vld [vmem:[%s15043_s0 + $0x40] ss:$8 sps:$4 sm:$0xff]  }
 0x1a2   :  { %1609 = vmatmul.mubr.bf16.gmra.mrb[64].mxu0 %v12102_v33  ;;  %v12461_v33 = vld [vmem:[%s15043_s0 + $0x54] ss:$8 sps:$4 sm:$0xff]  }
 0x1a3   :  { %1618 = vmatprep.mubr.bf16.mxu0 %v12107_v35  ;;  %v11049_v35 = vld [vmem:[%s15042_s1 + $0x340] ss:$8 sps:$4 sm:$0xff]  }
 0x1aa   :  { %1619 = vmatmul.mubr.bf16.gmra.mrb[68].mxu0 %v12114_v37  ;;  %v11057_v37 = vld [vmem:[%s15042_s1 + $0x354] ss:$8 sps:$4 sm:$0xff]  }
 0x1ab   :  { %1628 = vmatprep.mubr.bf16.mxu0 %v12119_v38  ;;  %v11055_v38 = vld [vmem:[%s15042_s1 + $0x350] ss:$8 sps:$4 sm:$0xff]  }
 0x1b2   :  { %1629 = vmatmul.mubr.bf16.gmra.mrb[72].mxu0 %v12126_v39  ;;  %v11066_v39 = vld [vmem:[%s15042_s1 + $0x364] ss:$8 sps:$4 sm:$0xff]  }
 0x1b3   :  { %1638 = vmatprep.mubr.bf16.mxu0 %v12131_v42  ;;  %v12480_v42 = vld [vmem:[%s15043_s0 + $0x50] ss:$8 sps:$4 sm:$0xff]  }
 0x1ba   :  { %1639 = vmatmul.mubr.bf16.gmra.mrb[76].mxu0 %v12138_v43  ;;  %v12485_v43 = vld [vmem:[%s15043_s0 + $0x64] ss:$8 sps:$4 sm:$0xff]  }
 0x1bb   :  { %1648 = vmatprep.mubr.bf16.mxu0 %v12143_v44  ;;  %v11064_v44 = vld [vmem:[%s15042_s1 + $0x360] ss:$8 sps:$4 sm:$0xff]  }
 0x1c2   :  { %1649 = vmatmul.mubr.bf16.gmra.mrb[80].mxu0 %v12150_v45  ;;  %v11075_v45 = vld [vmem:[%s15042_s1 + $0x374] ss:$8 sps:$4 sm:$0xff]  }
 0x1c3   :  { %1658 = vmatprep.mubr.bf16.mxu0 %v12155_v48  ;;  %v11073_v48 = vld [vmem:[%s15042_s1 + $0x370] ss:$8 sps:$4 sm:$0xff]  }
 0x1ca   :  { %1659 = vmatmul.mubr.bf16.gmra.mrb[84].mxu0 %v12162_v49  ;;  %v11084_v49 = vld [vmem:[%s15042_s1 + $0x384] ss:$8 sps:$4 sm:$0xff]  }
 0x1cb   :  { %1668 = vmatprep.mubr.bf16.mxu0 %v12167_v50  ;;  %v12504_v50 = vld [vmem:[%s15043_s0 + $0x60] ss:$8 sps:$4 sm:$0xff]  }
 0x1d2   :  { %1669 = vmatmul.mubr.bf16.gmra.mrb[88].mxu0 %v12174_v51  ;;  %v12509_v51 = vld [vmem:[%s15043_s0 + $0x74] ss:$8 sps:$4 sm:$0xff]  }
 0x1d3   :  { %1678 = vmatprep.mubr.bf16.mxu0 %v12179_v54  ;;  %v11082_v54 = vld [vmem:[%s15042_s1 + $0x380] ss:$8 sps:$4 sm:$0xff]  }
 0x1da   :  { %1679 = vmatmul.mubr.bf16.gmra.mrb[92].mxu0 %v12186_v55  ;;  %v11090_v55 = vld [vmem:[%s15042_s1 + $0x394] ss:$8 sps:$4 sm:$0xff]  }
 0x1db   :  { %1688 = vmatprep.mubr.bf16.mxu0 %v12191_v56  ;;  %v11088_v56 = vld [vmem:[%s15042_s1 + $0x390] ss:$8 sps:$4 sm:$0xff]  }
 0x1e2   :  { %1689 = vmatmul.mubr.bf16.gmra.mrb[96].mxu0 %v12198_v57  ;;  %v11099_v57 = vld [vmem:[%s15042_s1 + $0x3a4] ss:$8 sps:$4 sm:$0xff]  }
 0x1e3   :  { %1698 = vmatprep.mubr.bf16.mxu0 %v12203_v60  ;;  %v12528_v60 = vld [vmem:[%s15043_s0 + $0x70] ss:$8 sps:$4 sm:$0xff]  }
 0x1ea   :  { %1699 = vmatmul.mubr.bf16.gmra.mrb[100].mxu0 %v12210_v61  ;;  %v12533_v61 = vld [vmem:[%s15043_s0 + $0x84] ss:$8 sps:$4 sm:$0xff]  }
 0x1eb   :  { %1708 = vmatprep.mubr.bf16.mxu0 %v12215_v62  ;;  %v11097_v62 = vld [vmem:[%s15042_s1 + $0x3a0] ss:$8 sps:$4 sm:$0xff]  }
 0x1f2   :  { %1709 = vmatmul.mubr.bf16.gmra.mrb[104].mxu0 %v12222_v63  ;;  %v11108_v63 = vld [vmem:[%s15042_s1 + $0x3b4] ss:$8 sps:$4 sm:$0xff]  }
 0x1f3   :  { %1718 = vmatprep.mubr.bf16.mxu0 %v12227_v2  ;;  %v11106_v2 = vld [vmem:[%s15042_s1 + $0x3b0] ss:$8 sps:$4 sm:$0xff]  }
 0x1fa   :  { %1719 = vmatmul.mubr.bf16.gmra.mrb[108].mxu0 %v12234_v3  ;;  %v11117_v3 = vld [vmem:[%s15042_s1 + $0x3c4] ss:$8 sps:$4 sm:$0xff]  }
 0x1fb   :  { %2291 = vmatprep.mubr.bf16.mxu0 %v11015_v14  ;;  %v12683_v14 = vld [vmem:[%s15042_s1 + $0x444] ss:$8 sps:$4 sm:$0xff]  }
 0x1fc   :  { %10144 = vmatprep.subr.bf16.mxu1 %v12683_v14 }
 0x202   :  { %2292 = vmatmul.mubr.bf16.vlgmr.msra.gmra.mrb[0].mxu0 %v11013_v15  ;;  %v12688_v15 = vld [vmem:[%s15042_s1 + $0x440] ss:$8 sps:$4 sm:$0xff]  }
 0x203   :  { %3215 = vmatpush1.bf16.msra.mxu0 %v11016_v18  ;;  %2301 = vmatprep.mubr.bf16.mxu0 %v12417_v19  ;;  %v12695_v18 = vld [vmem:[%s15042_s1 + $0x454] ss:$8 sps:$4 sm:$0xff]  }
 0x204   :  { %3216 = vmatprep.subr.bf16.mxu0 %v11024_v20  ;;  %10160 = vmatpush1.bf16.msra.mxu1 %v12688_v15  ;;  %v12702_v20 = vld [vmem:[%s15042_s1 + $0x450] ss:$8 sps:$4 sm:$0xff]  }
 0x205   :  { %10145 = vmatprep.subr.bf16.mxu1 %v12695_v18 }
 0x207   :  { %3217 = vmatpush1.bf16.msra.mxu0 %v11022_v21  ;;  %v12708_v21 = vld [vmem:[%s15043_s0 + $0xe0] ss:$8 sps:$4 sm:$0xff]  }
 0x208   :  { %3218 = vmatprep.subr.bf16.mxu0 %v11033_v24  ;;  %15093 = vst [vmem:[#allocation10_spill] sm:$0xff] %v12708_v21  ;;  %v12713_v24 = vld [vmem:[%s15043_s0 + $0xf4] ss:$8 sps:$4 sm:$0xff]   ;;  %10161 = vmatpush1.bf16.msra.mxu1 %v12702_v20 }
 0x209   :  { %15094 = vst [vmem:[#allocation11_spill] sm:$0xff] %v12713_v24 }
 0x20a   :  { %2302 = vmatmul.mubr.bf16.gmra.mrb[4].mxu0 %v12432_v25 }
 0x20b   :  { %2311 = vmatprep.mubr.bf16.mxu0 %v12437_v26  ;;  %3219 = vmatpush1.bf16.msra.mxu0 %v11031_v27  ;;  %v12719_v27 = vld [vmem:[%s15042_s1 + $0x464] ss:$8 sps:$4 sm:$0xff]  }
 0x20c   :  { %3220 = vmatprep.subr.bf16.mxu0 %v11042_v29  ;;  %v12724_v29 = vld [vmem:[%s15042_s1 + $0x460] ss:$8 sps:$4 sm:$0xff]   ;;  %10146 = vmatprep.subr.bf16.mxu1 %v12719_v27 }
 0x20d   :  { %10162 = vmatpush1.bf16.msra.mxu1 %v12724_v29 }
 0x20f   :  { %3221 = vmatpush1.bf16.msra.mxu0 %v11040_v30  ;;  %v12733_v30 = vld [vmem:[%s15042_s1 + $0x474] ss:$8 sps:$4 sm:$0xff]  }
 0x210   :  { %3222 = vmatprep.subr.bf16.mxu0 %v11051_v31  ;;  %v12738_v31 = vld [vmem:[%s15042_s1 + $0x470] ss:$8 sps:$4 sm:$0xff]   ;;  %10147 = vmatprep.subr.bf16.mxu1 %v12733_v30 }
 0x211   :  { %10163 = vmatpush1.bf16.msra.mxu1 %v12738_v31 }
 0x212   :  { %2312 = vmatmul.mubr.bf16.gmra.mrb[8].mxu0 %v12456_v32 }
 0x213   :  { %2321 = vmatprep.mubr.bf16.mxu0 %v12461_v33  ;;  %3223 = vmatpush1.bf16.msra.mxu0 %v11049_v35  ;;  %v12744_v35 = vld [vmem:[%s15043_s0 + $0xf0] ss:$8 sps:$4 sm:$0xff]  }
 0x214   :  { %3224 = vmatprep.subr.bf16.mxu0 %v11057_v37  ;;  %15095 = vst [vmem:[#allocation12_spill] sm:$0xff] %v12744_v35  ;;  %v12749_v37 = vld [vmem:[%s15043_s0 + $0x104] ss:$8 sps:$4 sm:$0xff]  }
 0x215   :  { %15096 = vst [vmem:[#allocation13_spill] sm:$0xff] %v12749_v37 }
 0x217   :  { %3225 = vmatpush1.bf16.msra.mxu0 %v11055_v38  ;;  %v12755_v38 = vld [vmem:[%s15042_s1 + $0x484] ss:$8 sps:$4 sm:$0xff]  }
 0x218   :  { %3226 = vmatprep.subr.bf16.mxu0 %v11066_v39  ;;  %v12760_v39 = vld [vmem:[%s15042_s1 + $0x480] ss:$8 sps:$4 sm:$0xff]   ;;  %10148 = vmatprep.subr.bf16.mxu1 %v12755_v38 }
 0x219   :  { %10164 = vmatpush1.bf16.msra.mxu1 %v12760_v39 }
 0x21a   :  { %2322 = vmatmul.mubr.bf16.gmra.mrb[12].mxu0 %v12480_v42 }
 0x21b   :  { %2331 = vmatprep.mubr.bf16.mxu0 %v12485_v43  ;;  %3227 = vmatpush1.bf16.msra.mxu0 %v11064_v44  ;;  %v12767_v44 = vld [vmem:[%s15042_s1 + $0x494] ss:$8 sps:$4 sm:$0xff]  }
 0x21c   :  { %3228 = vmatprep.subr.bf16.mxu0 %v11075_v45  ;;  %v12774_v45 = vld [vmem:[%s15042_s1 + $0x490] ss:$8 sps:$4 sm:$0xff]   ;;  %10149 = vmatprep.subr.bf16.mxu1 %v12767_v44 }
 0x21d   :  { %10165 = vmatpush1.bf16.msra.mxu1 %v12774_v45 }
 0x21f   :  { %3229 = vmatpush1.bf16.msra.mxu0 %v11073_v48  ;;  %v12780_v48 = vld [vmem:[%s15043_s0 + $0x100] ss:$8 sps:$4 sm:$0xff]  }
 0x220   :  { %3230 = vmatprep.subr.bf16.mxu0 %v11084_v49  ;;  %15097 = vst [vmem:[#allocation14_spill] sm:$0xff] %v12780_v48  ;;  %v12785_v49 = vld [vmem:[%s15043_s0 + $0x114] ss:$8 sps:$4 sm:$0xff]  }
 0x221   :  { %15098 = vst [vmem:[#allocation15_spill] sm:$0xff] %v12785_v49 }
 0x222   :  { %2332 = vmatmul.mubr.bf16.gmra.mrb[16].mxu0 %v12504_v50 }
 0x223   :  { %2341 = vmatprep.mubr.bf16.mxu0 %v12509_v51  ;;  %3231 = vmatpush1.bf16.msra.mxu0 %v11082_v54  ;;  %v12791_v54 = vld [vmem:[%s15042_s1 + $0x4a4] ss:$8 sps:$4 sm:$0xff]  }
 0x224   :  { %3232 = vmatprep.subr.bf16.mxu0 %v11090_v55  ;;  %v12796_v55 = vld [vmem:[%s15042_s1 + $0x4a0] ss:$8 sps:$4 sm:$0xff]   ;;  %10150 = vmatprep.subr.bf16.mxu1 %v12791_v54 }
 0x225   :  { %10166 = vmatpush1.bf16.msra.mxu1 %v12796_v55 }
 0x227   :  { %3233 = vmatpush1.bf16.msra.mxu0 %v11088_v56  ;;  %v12803_v56 = vld [vmem:[%s15042_s1 + $0x4b4] ss:$8 sps:$4 sm:$0xff]  }
 0x228   :  { %3234 = vmatprep.subr.bf16.mxu0 %v11099_v57  ;;  %v12810_v57 = vld [vmem:[%s15042_s1 + $0x4b0] ss:$8 sps:$4 sm:$0xff]   ;;  %10151 = vmatprep.subr.bf16.mxu1 %v12803_v56 }
 0x229   :  { %10167 = vmatpush1.bf16.msra.mxu1 %v12810_v57 }
 0x22a   :  { %2342 = vmatmul.mubr.bf16.gmra.mrb[20].mxu0 %v12528_v60 }
 0x22b   :  { %2351 = vmatprep.mubr.bf16.mxu0 %v12533_v61  ;;  %3235 = vmatpush1.bf16.msra.mxu0 %v11097_v62  ;;  %v12816_v62 = vld [vmem:[%s15043_s0 + $0x110] ss:$8 sps:$4 sm:$0xff]  }
 0x22c   :  { %3236 = vmatprep.subr.bf16.mxu0 %v11108_v63  ;;  %v12821_v63 = vld [vmem:[%s15043_s0 + $0x124] ss:$8 sps:$4 sm:$0xff]  }
 0x22d   :  { %15099 = vst [vmem:[#allocation16_spill] sm:$0xff] %v12821_v63 }
 0x22f   :  { %3237 = vmatpush1.bf16.msra.mxu0 %v11106_v2  ;;  %v12827_v2 = vld [vmem:[%s15042_s1 + $0x4c4] ss:$8 sps:$4 sm:$0xff]  }
 0x230   :  { %3238 = vmatprep.subr.bf16.mxu0 %v11117_v3  ;;  %v12832_v3 = vld [vmem:[%s15042_s1 + $0x4c0] ss:$8 sps:$4 sm:$0xff]   ;;  %10152 = vmatprep.subr.bf16.mxu1 %v12827_v2 }
 0x231   :  { %10168 = vmatpush1.bf16.msra.mxu1 %v12832_v3 }
 0x232   :  { %2352 = vmatmul.mubr.bf16.gmra.mrb[24].mxu0 %v12552_v13 }
 0x233   :  { %2361 = vmatprep.mubr.bf16.mxu0 %v12384_v12  ;;  %3239 = vmatpush1.bf16.msra.mxu0 %v11115_v4  ;;  %v12839_v4 = vld [vmem:[%s15042_s1 + $0x4d4] ss:$8 sps:$4 sm:$0xff]  }
 0x234   :  { %3240 = vmatprep.subr.bf16.mxu0 %v11123_v5  ;;  %15100 = vst [vmem:[#allocation17_spill] sm:$0xff] %v12839_v4  ;;  %v12846_v5 = vld [vmem:[%s15042_s1 + $0x4d0] ss:$8 sps:$4 sm:$0xff]   ;;  %10153 = vmatprep.subr.bf16.mxu1 %v12839_v4  ;;  %v12922_v4 = vld [vmem:[%s15043_s0 + $0x164] ss:$8 sps:$4 sm:$0xff]  }
 0x235   :  { %15101 = vst [vmem:[#allocation18_spill] sm:$0xff] %v12846_v5  ;;  %10169 = vmatpush1.bf16.msra.mxu1 %v12846_v5  ;;  %v12893_v5 = vld [vmem:[%s15043_s0 + $0x144] ss:$8 sps:$4 sm:$0xff]  }
 0x237   :  { %3241 = vmatpush1.bf16.msra.mxu0 %v11121_v34  ;;  %v12852_v34 = vld [vmem:[%s15043_s0 + $0x120] ss:$8 sps:$4 sm:$0xff]  }
 0x238   :  { %3242 = vmatprep.subr.bf16.mxu0 %v11132_v10  ;;  %v12863_v10 = vld [vmem:[%s15042_s1 + $0x4e4] ss:$8 sps:$4 sm:$0xff]  }
 0x239   :  { %15102 = vst [vmem:[#allocation19_spill] sm:$0xff] %v12863_v10  ;;  %10154 = vmatprep.subr.bf16.mxu1 %v12863_v10  ;;  %v12888_v10 = vld [vmem:[%s15043_s0 + $0x130] ss:$8 sps:$4 sm:$0xff]  }
 0x23a   :  { %2362 = vmatmul.mubr.bf16.gmra.mrb[28].mxu0 %v12568_v36 }
 0x23b   :  { %2371 = vmatprep.mubr.bf16.mxu0 %v12573_v8  ;;  %3243 = vmatpush1.bf16.msra.mxu0 %v11130_v41  ;;  %v12857_v41 = vld [vmem:[%s15043_s0 + $0x134] ss:$8 sps:$4 sm:$0xff]  }
 0x23c   :  { %3244 = vmatprep.subr.bf16.mxu0 %v11150_v0  ;;  %v12882_v0 = vld [vmem:[%s15042_s1 + $0x4f0] ss:$8 sps:$4 sm:$0xff]  }
 0x23d   :  { %15105 = vst [vmem:[#allocation22_spill] sm:$0xff] %v12882_v0 }
 0x23f   :  { %3245 = vmatpush1.bf16.msra.mxu0 %v11148_v59  ;;  %v12875_v59 = vld [vmem:[%s15042_s1 + $0x4f4] ss:$8 sps:$4 sm:$0xff]  }
 0x240   :  { %4169 = vmatprep.subr.bf16.mxu0 %v11136_v47  ;;  %v12868_v47 = vld [vmem:[%s15042_s1 + $0x4e0] ss:$8 sps:$4 sm:$0xff]   ;;  %15104 = vst [vmem:[#allocation21_spill] sm:$0xff] %v12875_v59 }
 0x241   :  { %15103 = vst [vmem:[#allocation20_spill] sm:$0xff] %v12868_v47  ;;  %10170 = vmatpush1.bf16.msra.mxu1 %v12868_v47  ;;  %v12908_v47 = vld [vmem:[%s15043_s0 + $0x154] ss:$8 sps:$4 sm:$0xff]  }
 0x242   :  { %2372 = vmatmul.mubr.bf16.gmra.mrb[32].mxu0 %v12580_v9  ;;  %10155 = vmatprep.subr.bf16.mxu1 %v12875_v59  ;;  %v12903_v59 = vld [vmem:[%s15043_s0 + $0x140] ss:$8 sps:$4 sm:$0xff]  }
 0x243   :  { %2381 = vmatprep.mubr.bf16.mxu0 %v12585_v40 }
 0x245   :  { %10171 = vmatpush1.bf16.msra.mxu1 %v12882_v0  ;;  %v12917_v0 = vld [vmem:[%s15043_s0 + $0x150] ss:$8 sps:$4 sm:$0xff]  }
 0x248   :  { %4252 = vmatmul.mubr.bf16.vlgmr.msra.gmra.mrb[0].mxu1 %v12568_v36 }
 0x249   :  { %4261 = vmatprep.mubr.bf16.mxu1 %v12573_v8 }
 0x24a   :  { %2382 = vmatmul.mubr.bf16.gmra.mrb[36].mxu0 %v12598_v16 }
 0x24b   :  { %2391 = vmatprep.mubr.bf16.mxu0 %v12603_v46 }
 0x250   :  { %4262 = vmatmul.mubr.bf16.gmra.mrb[4].mxu1 %v12580_v9  ;;  %v12936_v9 = vld [vmem:[%s15043_s0 + $0x174] ss:$8 sps:$4 sm:$0xff]  }
 0x251   :  { %4271 = vmatprep.mubr.bf16.mxu1 %v12585_v40  ;;  %v12931_v40 = vld [vmem:[%s15043_s0 + $0x160] ss:$8 sps:$4 sm:$0xff]  }
 0x252   :  { %2392 = vmatmul.mubr.bf16.gmra.mrb[40].mxu0 %v12630_v53 }
 0x253   :  { %2401 = vmatprep.mubr.bf16.mxu0 %v12635_v23 }
 0x258   :  { %4272 = vmatmul.mubr.bf16.gmra.mrb[8].mxu1 %v12598_v16  ;;  %v12950_v16 = vld [vmem:[%s15043_s0 + $0x184] ss:$8 sps:$4 sm:$0xff]  }
 0x259   :  { %4281 = vmatprep.mubr.bf16.mxu1 %v12603_v46  ;;  %v12945_v46 = vld [vmem:[%s15043_s0 + $0x170] ss:$8 sps:$4 sm:$0xff]  }
 0x25a   :  { %2402 = vmatmul.mubr.bf16.gmra.mrb[44].mxu0 %v12672_v7 }
 0x25b   :  { %2411 = vmatprep.mubr.bf16.mxu0 %v12677_v11 }
 0x260   :  { %4282 = vmatmul.mubr.bf16.gmra.mrb[12].mxu1 %v12630_v53  ;;  %v12964_v53 = vld [vmem:[%s15043_s0 + $0x194] ss:$8 sps:$4 sm:$0xff]  }
 0x261   :  { %4291 = vmatprep.mubr.bf16.mxu1 %v12635_v23  ;;  %v12959_v23 = vld [vmem:[%s15043_s0 + $0x180] ss:$8 sps:$4 sm:$0xff]  }
 0x262   :  { %2412 = vmatmul.mubr.bf16.gmra.mrb[48].mxu0 %v12708_v21 }
 0x263   :  { %2421 = vmatprep.mubr.bf16.mxu0 %v12713_v24 }
 0x268   :  { %4292 = vmatmul.mubr.bf16.gmra.mrb[16].mxu1 %v12672_v7  ;;  %v12978_v7 = vld [vmem:[%s15043_s0 + $0x1a4] ss:$8 sps:$4 sm:$0xff]  }
 0x269   :  { %4301 = vmatprep.mubr.bf16.mxu1 %v12677_v11  ;;  %v12973_v11 = vld [vmem:[%s15043_s0 + $0x190] ss:$8 sps:$4 sm:$0xff]  }
 0x26a   :  { %2422 = vmatmul.mubr.bf16.gmra.mrb[52].mxu0 %v12744_v35 }
 0x26b   :  { %2431 = vmatprep.mubr.bf16.mxu0 %v12749_v37 }
 0x270   :  { %4302 = vmatmul.mubr.bf16.gmra.mrb[20].mxu1 %v12708_v21  ;;  %v12992_v21 = vld [vmem:[%s15043_s0 + $0x1b4] ss:$8 sps:$4 sm:$0xff]  }
 0x271   :  { %4311 = vmatprep.mubr.bf16.mxu1 %v12713_v24  ;;  %v12987_v24 = vld [vmem:[%s15043_s0 + $0x1a0] ss:$8 sps:$4 sm:$0xff]  }
 0x272   :  { %2432 = vmatmul.mubr.bf16.gmra.mrb[56].mxu0 %v12780_v48 }
 0x273   :  { %2441 = vmatprep.mubr.bf16.mxu0 %v12785_v49 }
 0x278   :  { %4312 = vmatmul.mubr.bf16.gmra.mrb[24].mxu1 %v12744_v35  ;;  %v13006_v35 = vld [vmem:[%s15043_s0 + $0x1c4] ss:$8 sps:$4 sm:$0xff]  }
 0x279   :  { %4321 = vmatprep.mubr.bf16.mxu1 %v12749_v37  ;;  %v13001_v37 = vld [vmem:[%s15043_s0 + $0x1b0] ss:$8 sps:$4 sm:$0xff]  }
 0x27a   :  { %2442 = vmatmul.mubr.bf16.gmra.mrb[60].mxu0 %v12816_v62 }
 0x27b   :  { %2451 = vmatprep.mubr.bf16.mxu0 %v12821_v63 }
 0x280   :  { %4322 = vmatmul.mubr.bf16.gmra.mrb[28].mxu1 %v12780_v48  ;;  %v13020_v48 = vld [vmem:[%s15043_s0 + $0x1d4] ss:$8 sps:$4 sm:$0xff]  }
 0x281   :  { %4331 = vmatprep.mubr.bf16.mxu1 %v12785_v49  ;;  %v13015_v49 = vld [vmem:[%s15043_s0 + $0x1c0] ss:$8 sps:$4 sm:$0xff]  }
 0x282   :  { %2452 = vmatmul.mubr.bf16.gmra.mrb[64].mxu0 %v12852_v34 }
 0x283   :  { %2461 = vmatprep.mubr.bf16.mxu0 %v12857_v41 }
 0x288   :  { %4332 = vmatmul.mubr.bf16.gmra.mrb[32].mxu1 %v12816_v62 }
 0x289   :  { %4341 = vmatprep.mubr.bf16.mxu1 %v12821_v63  ;;  %v13029_v63 = vld [vmem:[%s15043_s0 + $0x1d0] ss:$8 sps:$4 sm:$0xff]  }
 0x28a   :  { %2462 = vmatmul.mubr.bf16.gmra.mrb[68].mxu0 %v12888_v10 }
 0x28b   :  { %2471 = vmatprep.mubr.bf16.mxu0 %v12893_v5 }
 0x290   :  { %4342 = vmatmul.mubr.bf16.gmra.mrb[36].mxu1 %v12852_v34 }
 0x291   :  { %4351 = vmatprep.mubr.bf16.mxu1 %v12857_v41 }
 0x292   :  { %2472 = vmatmul.mubr.bf16.gmra.mrb[72].mxu0 %v12903_v59 }
 0x293   :  { %2481 = vmatprep.mubr.bf16.mxu0 %v12908_v47 }
 0x298   :  { %4352 = vmatmul.mubr.bf16.gmra.mrb[40].mxu1 %v12888_v10 }
 0x299   :  { %4361 = vmatprep.mubr.bf16.mxu1 %v12893_v5 }
 0x29a   :  { %2482 = vmatmul.mubr.bf16.gmra.mrb[76].mxu0 %v12917_v0 }
 0x29b   :  { %2491 = vmatprep.mubr.bf16.mxu0 %v12922_v4 }
 0x2a0   :  { %4362 = vmatmul.mubr.bf16.gmra.mrb[44].mxu1 %v12903_v59 }
 0x2a1   :  { %4371 = vmatprep.mubr.bf16.mxu1 %v12908_v47 }
 0x2a2   :  { %2492 = vmatmul.mubr.bf16.gmra.mrb[80].mxu0 %v12931_v40 }
 0x2a3   :  { %2501 = vmatprep.mubr.bf16.mxu0 %v12936_v9 }
 0x2a8   :  { %4372 = vmatmul.mubr.bf16.gmra.mrb[48].mxu1 %v12917_v0 }
 0x2a9   :  { %4381 = vmatprep.mubr.bf16.mxu1 %v12922_v4 }
 0x2aa   :  { %2502 = vmatmul.mubr.bf16.gmra.mrb[84].mxu0 %v12945_v46 }
 0x2ab   :  { %2511 = vmatprep.mubr.bf16.mxu0 %v12950_v16 }
 0x2b0   :  { %4382 = vmatmul.mubr.bf16.gmra.mrb[52].mxu1 %v12931_v40 }
 0x2b1   :  { %4391 = vmatprep.mubr.bf16.mxu1 %v12936_v9 }
 0x2b2   :  { %2512 = vmatmul.mubr.bf16.gmra.mrb[88].mxu0 %v12959_v23 }
 0x2b3   :  { %2521 = vmatprep.mubr.bf16.mxu0 %v12964_v53 }
 0x2b8   :  { %4392 = vmatmul.mubr.bf16.gmra.mrb[56].mxu1 %v12945_v46 }
 0x2b9   :  { %4401 = vmatprep.mubr.bf16.mxu1 %v12950_v16 }
 0x2ba   :  { %2522 = vmatmul.mubr.bf16.gmra.mrb[92].mxu0 %v12973_v11 }
 0x2bb   :  { %2531 = vmatprep.mubr.bf16.mxu0 %v12978_v7 }
 0x2c0   :  { %4402 = vmatmul.mubr.bf16.gmra.mrb[60].mxu1 %v12959_v23 }
 0x2c1   :  { %4411 = vmatprep.mubr.bf16.mxu1 %v12964_v53 }
 0x2c2   :  { %2532 = vmatmul.mubr.bf16.gmra.mrb[96].mxu0 %v12987_v24 }
 0x2c3   :  { %2541 = vmatprep.mubr.bf16.mxu0 %v12992_v21 }
 0x2c8   :  { %4412 = vmatmul.mubr.bf16.gmra.mrb[64].mxu1 %v12973_v11 }
 0x2c9   :  { %4421 = vmatprep.mubr.bf16.mxu1 %v12978_v7 }
 0x2ca   :  { %2542 = vmatmul.mubr.bf16.gmra.mrb[100].mxu0 %v13001_v37 }
 0x2cb   :  { %2551 = vmatprep.mubr.bf16.mxu0 %v13006_v35 }
 0x2d0   :  { %4422 = vmatmul.mubr.bf16.gmra.mrb[68].mxu1 %v12987_v24 }
 0x2d1   :  { %4431 = vmatprep.mubr.bf16.mxu1 %v12992_v21 }
 0x2d2   :  { %2552 = vmatmul.mubr.bf16.gmra.mrb[104].mxu0 %v13015_v49 }
 0x2d3   :  { %2561 = vmatprep.mubr.bf16.mxu0 %v13020_v48 }
 0x2d8   :  { %4432 = vmatmul.mubr.bf16.gmra.mrb[72].mxu1 %v13001_v37 }
 0x2d9   :  { %4441 = vmatprep.mubr.bf16.mxu1 %v13006_v35 }
 0x2da   :  { %2562 = vmatmul.mubr.bf16.gmra.mrb[108].mxu0 %v13029_v63 }
 0x2db   :  { %3246 = vmatprep.mubr.bf16.mxu0 %v12417_v19  ;;  %v15106_v19 = vld [vmem:[#allocation17_spill] sm:$0xff] }
 0x2e0   :  { %4442 = vmatmul.mubr.bf16.gmra.mrb[76].mxu1 %v13015_v49 }
 0x2e1   :  { %4451 = vmatprep.mubr.bf16.mxu1 %v13020_v48 }
 0x2e2   :  { %3247 = vmatmul.mubr.bf16.vlgmr.msra.gmra.mrb[0].mxu0 %v12432_v25  ;;  %v15108_v25 = vld [vmem:[#allocation19_spill] sm:$0xff] }
 0x2e3   :  { %4170 = vmatpush1.bf16.msra.mxu0 %v12611_v17  ;;  %3256 = vmatprep.mubr.bf16.mxu0 %v12437_v26  ;;  %v15109_v26 = vld [vmem:[#allocation2_spill] sm:$0xff]  ;;  %v15119_v17 = vld [vmem:[#allocation9_spill] sm:$0xff] }
 0x2e4   :  { %4171 = vmatprep.subr.bf16.mxu0 %v12617_v22  ;;  %v11196_v22 = vld [vmem:[%s15043_s0 + $0x1f4] ss:$8 sps:$4 sm:$0xff]  }
 0x2e7   :  { %4172 = vmatpush1.bf16.msra.mxu0 %v12624_v52  ;;  %v11198_v52 = vld [vmem:[%s15043_s0 + $0x1f0] ss:$8 sps:$4 sm:$0xff]  }
 0x2e8   :  { %4173 = vmatprep.subr.bf16.mxu0 %v12641_v28  ;;  %4452 = vmatmul.mubr.bf16.gmra.mrb[80].mxu1 %v13029_v63  ;;  %v15120_v28 = vld [vmem:[#allocation10_spill] sm:$0xff] }
 0x2ea   :  { %3257 = vmatmul.mubr.bf16.gmra.mrb[4].mxu0 %v12456_v32  ;;  %v15110_v32 = vld [vmem:[#allocation3_spill] sm:$0xff] }
 0x2eb   :  { %3266 = vmatprep.mubr.bf16.mxu0 %v12461_v33  ;;  %4174 = vmatpush1.bf16.msra.mxu0 %v12646_v58  ;;  %v15111_v33 = vld [vmem:[#allocation20_spill] sm:$0xff]  ;;  %v15121_v58 = vld [vmem:[#allocation11_spill] sm:$0xff] }
 0x2ec   :  { %4175 = vmatprep.subr.bf16.mxu0 %v12659_v1  ;;  %v15122_v1 = vld [vmem:[#allocation12_spill] sm:$0xff] }
 0x2ef   :  { %4176 = vmatpush1.bf16.msra.mxu0 %v12666_v6  ;;  %v15123_v6 = vld [vmem:[#allocation13_spill] sm:$0xff] }
 0x2f0   :  { %4177 = vmatprep.subr.bf16.mxu0 %v12683_v14  ;;  %v15124_v14 = vld [vmem:[#allocation14_spill] sm:$0xff] }
 0x2f2   :  { %3267 = vmatmul.mubr.bf16.gmra.mrb[8].mxu0 %v12480_v42  ;;  %v15112_v42 = vld [vmem:[#allocation21_spill] sm:$0xff] }
 0x2f3   :  { %3276 = vmatprep.mubr.bf16.mxu0 %v12485_v43  ;;  %4178 = vmatpush1.bf16.msra.mxu0 %v12688_v15  ;;  %v15113_v43 = vld [vmem:[#allocation22_spill] sm:$0xff]  ;;  %v15125_v15 = vld [vmem:[#allocation15_spill] sm:$0xff] }
 0x2f4   :  { %4179 = vmatprep.subr.bf16.mxu0 %v12695_v18  ;;  %v15126_v18 = vld [vmem:[#allocation16_spill] sm:$0xff] }
 0x2f7   :  { %4180 = vmatpush1.bf16.msra.mxu0 %v12702_v20 }
 0x2f8   :  { %4181 = vmatprep.subr.bf16.mxu0 %v12719_v27 }
 0x2fa   :  { %3277 = vmatmul.mubr.bf16.gmra.mrb[12].mxu0 %v12504_v50  ;;  %v15114_v50 = vld [vmem:[#allocation4_spill] sm:$0xff] }
 0x2fb   :  { %3286 = vmatprep.mubr.bf16.mxu0 %v12509_v51  ;;  %4182 = vmatpush1.bf16.msra.mxu0 %v12724_v29  ;;  %v15115_v51 = vld [vmem:[#allocation5_spill] sm:$0xff] }
 0x2fc   :  { %4183 = vmatprep.subr.bf16.mxu0 %v12733_v30 }
 0x2ff   :  { %4184 = vmatpush1.bf16.msra.mxu0 %v12738_v31 }
 0x300   :  { %4185 = vmatprep.subr.bf16.mxu0 %v12755_v38 }
 0x302   :  { %3287 = vmatmul.mubr.bf16.gmra.mrb[16].mxu0 %v12528_v60  ;;  %v15116_v60 = vld [vmem:[#allocation6_spill] sm:$0xff] }
 0x303   :  { %3296 = vmatprep.mubr.bf16.mxu0 %v12533_v61  ;;  %4186 = vmatpush1.bf16.msra.mxu0 %v12760_v39  ;;  %v15117_v61 = vld [vmem:[#allocation7_spill] sm:$0xff] }
 0x304   :  { %4187 = vmatprep.subr.bf16.mxu0 %v12767_v44 }
 0x307   :  { %4188 = vmatpush1.bf16.msra.mxu0 %v12774_v45 }
 0x308   :  { %4189 = vmatprep.subr.bf16.mxu0 %v12791_v54 }
 0x30a   :  { %3297 = vmatmul.mubr.bf16.gmra.mrb[20].mxu0 %v12552_v13  ;;  %v13108_v13 = vld [vmem:[%s15043_s0 + $0x1e4] ss:$8 sps:$4 sm:$0xff]  }
 0x30b   :  { %3306 = vmatprep.mubr.bf16.mxu0 %v12384_v12  ;;  %4190 = vmatpush1.bf16.msra.mxu0 %v12796_v55  ;;  %v15107_v12 = vld [vmem:[#allocation18_spill] sm:$0xff] }
 0x30c   :  { %4191 = vmatprep.subr.bf16.mxu0 %v12803_v56  ;;  %4461 = vmatprep.mubr.bf16.mxu1 %v13108_v13 }
 0x30f   :  { %4192 = vmatpush1.bf16.msra.mxu0 %v12810_v57 }
 0x310   :  { %4193 = vmatprep.subr.bf16.mxu0 %v12827_v2 }
 0x312   :  { %3307 = vmatmul.mubr.bf16.gmra.mrb[24].mxu0 %v12568_v36  ;;  %v13114_v36 = vld [vmem:[%s15043_s0 + $0x1e0] ss:$8 sps:$4 sm:$0xff]  }
 0x313   :  { %3316 = vmatprep.mubr.bf16.mxu0 %v12573_v8  ;;  %4194 = vmatpush1.bf16.msra.mxu0 %v12832_v3  ;;  %v15118_v8 = vld [vmem:[#allocation8_spill] sm:$0xff] }
 0x314   :  { %4195 = vmatprep.subr.bf16.mxu0 %v15106_v19  ;;  %4462 = vmatmul.mubr.bf16.gmra.mrb[84].mxu1 %v13114_v36  ;;  %v11217_v19 = vld [vmem:[%s15044_s2 + $0x10] ss:$8 sps:$4 sm:$0xff]  }
 0x315   :  { %4471 = vmatprep.mubr.bf16.mxu1 %v11196_v22 }
 0x317   :  { %4196 = vmatpush1.bf16.msra.mxu0 %v15107_v12 }
 0x318   :  { %4197 = vmatprep.subr.bf16.mxu0 %v15108_v25 }
 0x31a   :  { %3317 = vmatmul.mubr.bf16.gmra.mrb[28].mxu0 %v15109_v26 }
 0x31b   :  { %3326 = vmatprep.mubr.bf16.mxu0 %v15110_v32  ;;  %4198 = vmatpush1.bf16.msra.mxu0 %v15111_v33  ;;  %v13135_v20 = vpop.f32.mrb[0].mxu1  ;;  %v11220_v32 = vld [vmem:[%s15044_s2 + $0x20] ss:$8 sps:$4 sm:$0xff]   ;;  %v11222_v33 = vld [vmem:[%s15044_s2 + $0x24] ss:$8 sps:$4 sm:$0xff]  }
 0x31c   :  { %4199 = vmatprep.subr.bf16.mxu0 %v15112_v42  ;;  %4472 = vmatmul.mubr.bf16.gmra.mrb[88].mxu1 %v11198_v52  ;;  %v13137_v27 = vpop.f32.mrb[1].mxu1 }
 0x31d   :  { %v13139_v29 = vpop.f32.mrb[2].mxu1 }
 0x31e   :  { %v13141_v30 = vpop.f32.mrb[3].mxu1 }
 0x31f   :  { %4200 = vmatpush1.bf16.msra.mxu0 %v15113_v43 }
 0x322   :  { %3327 = vmatmul.mubr.bf16.gmra.mrb[32].mxu0 %v15114_v50 }
 0x323   :  { %3336 = vmatprep.mubr.bf16.mxu0 %v15115_v51  ;;  %v13145_v31 = vpop.f32.mrb[4].mxu1 }
 0x324   :  { %v13147_v38 = vpop.f32.mrb[5].mxu1 }
 0x325   :  { %v13149_v39 = vpop.f32.mrb[6].mxu1 }
 0x326   :  { %v13151_v44 = vpop.f32.mrb[7].mxu1 }
 0x32a   :  { %3337 = vmatmul.mubr.bf16.gmra.mrb[36].mxu0 %v15116_v60  ;;  %v11223_v60 = vld [vmem:[%s15044_s2 + $0x30] ss:$8 sps:$4 sm:$0xff]  }
 0x32b   :  { %3346 = vmatprep.mubr.bf16.mxu0 %v15117_v61  ;;  %v13155_v45 = vpop.f32.mrb[8].mxu1 }
 0x32c   :  { %v13157_v54 = vpop.f32.mrb[9].mxu1 }
 0x32d   :  { %v13159_v55 = vpop.f32.mrb[10].mxu1 }
 0x32e   :  { %v13161_v56 = vpop.f32.mrb[11].mxu1 }
 0x332   :  { %3347 = vmatmul.mubr.bf16.gmra.mrb[40].mxu0 %v15118_v8 }
 0x333   :  { %3356 = vmatprep.mubr.bf16.mxu0 %v15119_v17  ;;  %v13165_v57 = vpop.f32.mrb[12].mxu1 }
 0x33a   :  { %3357 = vmatmul.mubr.bf16.gmra.mrb[44].mxu0 %v15120_v28 }
 0x33b   :  { %3366 = vmatprep.mubr.bf16.mxu0 %v15121_v58 }
 0x342   :  { %3367 = vmatmul.mubr.bf16.gmra.mrb[48].mxu0 %v15122_v1 }
 0x343   :  { %3376 = vmatprep.mubr.bf16.mxu0 %v15123_v6  ;;  %v11229_v6 = vld [vmem:[%s15044_s2 + $0x50] ss:$8 sps:$4 sm:$0xff]  }
 0x34a   :  { %3377 = vmatmul.mubr.bf16.gmra.mrb[52].mxu0 %v15124_v14  ;;  %v11231_v14 = vld [vmem:[%s15044_s2 + $0x54] ss:$8 sps:$4 sm:$0xff]  }
 0x34b   :  { %3386 = vmatprep.mubr.bf16.mxu0 %v15125_v15 }
 0x352   :  { %3387 = vmatmul.mubr.bf16.gmra.mrb[56].mxu0 %v12816_v62  ;;  %v13167_v62 = vpop.f32.mrb[13].mxu1 }
 0x353   :  { %3396 = vmatprep.mubr.bf16.mxu0 %v15126_v18  ;;  %v13169_v2 = vpop.f32.mrb[14].mxu1  ;;  %v11199_v18 = vld [vmem:[%s15043_s0 + $0x40] ss:$8 sps:$4 sm:$0xff]  }
 0x354   :  { %v13171_v3 = vpop.f32.mrb[15].mxu1 }
 0x35a   :  { %3397 = vmatmul.mubr.bf16.gmra.mrb[60].mxu0 %v12852_v34  ;;  %v11214_v34 = vld [vmem:[%s15044_s2] ss:$8 sps:$4 sm:$0xff]  }
 0x35b   :  { %3406 = vmatprep.mubr.bf16.mxu0 %v12857_v41 }
 0x362   :  { %3407 = vmatmul.mubr.bf16.gmra.mrb[64].mxu0 %v12888_v10 }
 0x363   :  { %3416 = vmatprep.mubr.bf16.mxu0 %v12893_v5  ;;  %v13175_v5 = vpop.f32.mrb[16].mxu1 }
 0x364   :  { %v13180_v41 = vpop.f32.mrb[17].mxu1 }
 0x365   :  { %v13185_v10 = vpop.f32.mrb[18].mxu1 }
 0x36a   :  { %3417 = vmatmul.mubr.bf16.gmra.mrb[68].mxu0 %v12903_v59 }
 0x36b   :  { %3426 = vmatprep.mubr.bf16.mxu0 %v12908_v47  ;;  %v13187_v47 = vpop.f32.mrb[19].mxu1 }
 0x372   :  { %3427 = vmatmul.mubr.bf16.gmra.mrb[72].mxu0 %v12917_v0 }
 0x373   :  { %3436 = vmatprep.mubr.bf16.mxu0 %v12922_v4  ;;  %v11216_v4 = vld [vmem:[%s15044_s2 + $0x4] ss:$8 sps:$4 sm:$0xff]  }
 0x374   :  { %5106 = vmatprep.subr.bf16.mxu1 %v11216_v4  ;;  %v11202_v4 = vld [vmem:[%s15043_s0 + $0x54] ss:$8 sps:$4 sm:$0xff]  }
 0x375   :  { %5107 = vmatpush1.bf16.msra.mxu1 %v11214_v34 }
 0x37a   :  { %3437 = vmatmul.mubr.bf16.gmra.mrb[76].mxu0 %v12931_v40 }
 0x37b   :  { %3446 = vmatprep.mubr.bf16.mxu0 %v12936_v9  ;;  %v13191_v9 = vpop.f32.mrb[20].mxu1 }
 0x37c   :  { %v13193_v40 = vpop.f32.mrb[21].mxu1 }
 0x37d   :  { %v13195_v59 = vpop.f32.mrb[22].mxu1 }
 0x37e   :  { %v13197_v0 = vpop.f32.mrb[23].mxu1 }
 0x382   :  { %3447 = vmatmul.mubr.bf16.gmra.mrb[80].mxu0 %v12945_v46  ;;  %v13207_v46 = vpop.f32.mrb[24].mxu1 }
 0x383   :  { %3456 = vmatprep.mubr.bf16.mxu0 %v12950_v16  ;;  %v11219_v16 = vld [vmem:[%s15044_s2 + $0x14] ss:$8 sps:$4 sm:$0xff]   ;;  %v13209_v12 = vpop.f32.mrb[25].mxu1 }
 0x384   :  { %5108 = vmatprep.subr.bf16.mxu1 %v11219_v16  ;;  %v13211_v25 = vpop.f32.mrb[26].mxu1 }
 0x385   :  { %5109 = vmatpush1.bf16.msra.mxu1 %v11217_v19  ;;  %v13213_v26 = vpop.f32.mrb[27].mxu1 }
 0x386   :  { %5110 = vmatprep.subr.bf16.mxu1 %v11222_v33  ;;  %v11232_v33 = vld [vmem:[%s15044_s2 + $0x60] ss:$8 sps:$4 sm:$0xff]  }
 0x389   :  { %5111 = vmatpush1.bf16.msra.mxu1 %v11220_v32 }
 0x38a   :  { %3457 = vmatmul.mubr.bf16.gmra.mrb[84].mxu0 %v12959_v23 }
 0x38b   :  { %3466 = vmatprep.mubr.bf16.mxu0 %v12964_v53  ;;  %v13217_v53 = vpop.f32.mrb[28].mxu1 }
 0x38c   :  { %v13219_v23 = vpop.f32.mrb[29].mxu1 }
 0x38d   :  { %v13227_v42 = vpop.f32.mrb[30].mxu1 }
 0x38e   :  { %v13229_v43 = vpop.f32.mrb[31].mxu1 }
 0x392   :  { %3467 = vmatmul.mubr.bf16.gmra.mrb[88].mxu0 %v12973_v11 }
 0x393   :  { %3476 = vmatprep.mubr.bf16.mxu0 %v12978_v7  ;;  %v13233_v7 = vpop.f32.mrb[32].mxu1 }
 0x394   :  { %v13235_v11 = vpop.f32.mrb[33].mxu1 }
 0x395   :  { %v13237_v50 = vpop.f32.mrb[34].mxu1 }
 0x396   :  { %v13239_v51 = vpop.f32.mrb[35].mxu1 }
 0x39a   :  { %3477 = vmatmul.mubr.bf16.gmra.mrb[92].mxu0 %v12987_v24  ;;  %v13249_v24 = vpop.f32.mrb[36].mxu1 }
 0x39b   :  { %3486 = vmatprep.mubr.bf16.mxu0 %v12992_v21  ;;  %v11225_v21 = vld [vmem:[%s15044_s2 + $0x34] ss:$8 sps:$4 sm:$0xff]   ;;  %v13251_v61 = vpop.f32.mrb[37].mxu1 }
 0x39c   :  { %5112 = vmatprep.subr.bf16.mxu1 %v11225_v21  ;;  %v13253_v8 = vpop.f32.mrb[38].mxu1 }
 0x39d   :  { %5113 = vmatpush1.bf16.msra.mxu1 %v11223_v60  ;;  %v13255_v17 = vpop.f32.mrb[39].mxu1  ;;  %v11234_v60 = vld [vmem:[%s15044_s2 + $0x64] ss:$8 sps:$4 sm:$0xff]  }
 0x39e   :  { %v13265_v22 = vpop.f32.mrb[40].mxu1 }
 0x39f   :  { %v13267_v52 = vpop.f32.mrb[41].mxu1 }
 0x3a0   :  { %v13269_v28 = vpop.f32.mrb[42].mxu1 }
 0x3a1   :  { %v13271_v58 = vpop.f32.mrb[43].mxu1 }
 0x3a2   :  { %3487 = vmatmul.mubr.bf16.gmra.mrb[96].mxu0 %v13001_v37  ;;  %v11228_v37 = vld [vmem:[%s15044_s2 + $0x44] ss:$8 sps:$4 sm:$0xff]  }
 0x3a3   :  { %3496 = vmatprep.mubr.bf16.mxu0 %v13006_v35  ;;  %v11226_v35 = vld [vmem:[%s15044_s2 + $0x40] ss:$8 sps:$4 sm:$0xff]   ;;  %5114 = vmatprep.subr.bf16.mxu1 %v11228_v37 }
 0x3a4   :  { %5115 = vmatpush1.bf16.msra.mxu1 %v11226_v35  ;;  %v11205_v35 = vld [vmem:[%s15043_s0 + $0x64] ss:$8 sps:$4 sm:$0xff]  }
 0x3a5   :  { %5116 = vmatprep.subr.bf16.mxu1 %v11231_v14  ;;  %v11237_v14 = vld [vmem:[%s15044_s2 + $0x74] ss:$8 sps:$4 sm:$0xff]  }
 0x3a8   :  { %5117 = vmatpush1.bf16.msra.mxu1 %v11229_v6  ;;  %v11235_v6 = vld [vmem:[%s15044_s2 + $0x70] ss:$8 sps:$4 sm:$0xff]  }
 0x3a9   :  { %5118 = vmatprep.subr.bf16.mxu1 %v11234_v60 }
 0x3aa   :  { %3497 = vmatmul.mubr.bf16.gmra.mrb[100].mxu0 %v13015_v49  ;;  %v11201_v49 = vld [vmem:[%s15043_s0 + $0x44] ss:$8 sps:$4 sm:$0xff]  }
 0x3ab   :  { %3506 = vmatprep.mubr.bf16.mxu0 %v13020_v48  ;;  %v13275_v48 = vpop.f32.mrb[44].mxu1 }
 0x3ac   :  { %v13280_v1 = vpop.f32.mrb[45].mxu1  ;;  %5119 = vmatpush1.bf16.msra.mxu1 %v11232_v33 }
 0x3ad   :  { %v13288_v15 = vpop.f32.mrb[46].mxu1  ;;  %5120 = vmatprep.subr.bf16.mxu1 %v11237_v14 }
 0x3b0   :  { %5121 = vmatpush1.bf16.msra.mxu1 %v11235_v6  ;;  %v11238_v6 = vld [vmem:[%s15044_s2 + $0x80] ss:$8 sps:$4 sm:$0xff]  }
 0x3b2   :  { %3507 = vmatmul.mubr.bf16.gmra.mrb[104].mxu0 %v13029_v63  ;;  %v13290_v63 = vpop.f32.mrb[47].mxu1 }
 0x3b3   :  { %3516 = vmatprep.mubr.bf16.mxu0 %v13108_v13  ;;  %v13293_v13 = vpop.f32.mrb[48].mxu1 }
 0x3b4   :  { %v13298_v34 = vpop.f32.mrb[49].mxu1 }
 0x3b5   :  { %v13303_v19 = vpop.f32.mrb[50].mxu1 }
 0x3b6   :  { %v13305_v16 = vpop.f32.mrb[51].mxu1 }
 0x3b7   :  { %15127 = vst [vmem:[#allocation17_spill] sm:$0xff] %v13305_v16  ;;  %v13310_v32 = vpop.f32.mrb[52].mxu1 }
 0x3b8   :  { %15128 = vst [vmem:[#allocation18_spill] sm:$0xff] %v13310_v32  ;;  %v13318_v21 = vpop.f32.mrb[53].mxu1 }
 0x3b9   :  { %15129 = vst [vmem:[#allocation19_spill] sm:$0xff] %v13318_v21  ;;  %v13323_v37 = vpop.f32.mrb[54].mxu1 }
 0x3ba   :  { %3517 = vmatmul.mubr.bf16.gmra.mrb[108].mxu0 %v13114_v36  ;;  %v11204_v36 = vld [vmem:[%s15043_s0 + $0x50] ss:$8 sps:$4 sm:$0xff]   ;;  %15130 = vst [vmem:[#allocation2_spill] sm:$0xff] %v13323_v37 }
 0x3bb   :  { %4201 = vmatprep.mubr.bf16.mxu0 %v11201_v49  ;;  %v13325_v49 = vpop.f32.mrb[55].mxu1 }
 0x3bc   :  { %15131 = vst [vmem:[#allocation3_spill] sm:$0xff] %v13325_v49 }
 0x3c2   :  { %4202 = vmatmul.mubr.bf16.vlgmr.msra.gmra.mrb[0].mxu0 %v11199_v18  ;;  %v13333_v18 = vpop.f32.mrb[56].mxu1 }
 0x3c3   :  { %4211 = vmatprep.mubr.bf16.mxu0 %v11202_v4  ;;  %15132 = vst [vmem:[#allocation20_spill] sm:$0xff] %v13333_v18  ;;  %v11207_v4 = vld [vmem:[%s15043_s0 + $0x60] ss:$8 sps:$4 sm:$0xff]   ;;  %v13338_v60 = vpop.f32.mrb[57].mxu1  ;;  %v11210_v18 = vld [vmem:[%s15043_s0 + $0x70] ss:$8 sps:$4 sm:$0xff]  }
 0x3c4   :  { %15133 = vst [vmem:[#allocation21_spill] sm:$0xff] %v13338_v60  ;;  %v13343_v33 = vpop.f32.mrb[58].mxu1  ;;  %v11211_v60 = vld [vmem:[%s15043_s0 + $0x84] ss:$8 sps:$4 sm:$0xff]  }
 0x3c5   :  { %15134 = vst [vmem:[#allocation22_spill] sm:$0xff] %v13343_v33 }
 0x3ca   :  { %4212 = vmatmul.mubr.bf16.gmra.mrb[4].mxu0 %v11204_v36  ;;  %v11208_v36 = vld [vmem:[%s15043_s0 + $0x74] ss:$8 sps:$4 sm:$0xff]  }
 0x3cb   :  { %4221 = vmatprep.mubr.bf16.mxu0 %v11205_v35  ;;  %v13345_v35 = vpop.f32.mrb[59].mxu1 }
 0x3cc   :  { %15135 = vst [vmem:[#allocation4_spill] sm:$0xff] %v13345_v35  ;;  %v13347_v49 = vpop.f32.mrb[60].mxu1 }
 0x3cd   :  { %15136 = vst [vmem:[#allocation5_spill] sm:$0xff] %v13347_v49  ;;  %v13352_v37 = vpop.f32.mrb[61].mxu1 }
 0x3ce   :  { %15137 = vst [vmem:[#allocation6_spill] sm:$0xff] %v13352_v37  ;;  %v13357_v14 = vpop.f32.mrb[62].mxu1 }
 0x3cf   :  { %15138 = vst [vmem:[#allocation7_spill] sm:$0xff] %v13357_v14  ;;  %v13359_v33 = vpop.f32.mrb[63].mxu1 }
 0x3d0   :  { %15139 = vst [vmem:[#allocation8_spill] sm:$0xff] %v13359_v33  ;;  %v13367_v37 = vpop.f32.mrb[64].mxu1 }
 0x3d1   :  { %15140 = vst [vmem:[#allocation9_spill] sm:$0xff] %v13367_v37 }
 0x3d2   :  { %4222 = vmatmul.mubr.bf16.gmra.mrb[8].mxu0 %v11207_v4  ;;  %v11240_v4 = vld [vmem:[%s15044_s2 + $0x84] ss:$8 sps:$4 sm:$0xff]  }
 0x3d3   :  { %4231 = vmatprep.mubr.bf16.mxu0 %v11208_v36  ;;  %5122 = vmatprep.subr.bf16.mxu1 %v11240_v4  ;;  %v4596_v4 = vlaneseq }
 0x3d4   :  { %5123 = vmatpush1.bf16.msra.mxu1 %v11238_v6 }
 0x3d5   :  { %v13390_v6 = vshrl.u32 %v4596_v4, 7 }
 0x3d7   :  { %15148 = vst [vmem:[#allocation23_spill] sm:$0xff] %v13390_v6  ;;  %v15078_v4 = vsub.s32 0, %v13390_v6 }
 0x3da   :  { %4232 = vmatmul.mubr.bf16.gmra.mrb[12].mxu0 %v11210_v18  ;;  %v11213_v18 = vld [vmem:[%s15043_s0 + $0x80] ss:$8 sps:$4 sm:$0xff]  }
 0x3db   :  { %4241 = vmatprep.mubr.bf16.mxu0 %v11211_v60  ;;  %v13375_v60 = vpop.f32.mrb[65].mxu1 }
 0x3dc   :  { %15142 = vst [vmem:[#allocation11_spill] sm:$0xff] %v13375_v60  ;;  %v13380_v21 = vpop.f32.mrb[66].mxu1 }
 0x3dd   :  { %v3298_v36 = vpop.f32.mrb[20].mxu0  ;;  %15144 = vst [vmem:[#allocation13_spill] sm:$0xff] %v13380_v21 }
 0x3de   :  { %v13370_v49 = vadd.f32 %v13135_v20, %v3298_v36  ;;  %v3300_v14 = vpop.f32.mrb[21].mxu0  ;;  %v13385_v36 = vpop.f32.mrb[67].mxu1 }
 0x3df   :  { %v13378_v33 = vadd.f32 %v13137_v27, %v3300_v14  ;;  %v3302_v35 = vpop.f32.mrb[22].mxu0  ;;  %15146 = vst [vmem:[#allocation15_spill] sm:$0xff] %v13385_v36  ;;  %v13392_v32 = vpop.f32.mrb[68].mxu1 }
 0x3e0   :  { %15141 = vst [vmem:[#allocation10_spill] sm:$0xff] %v13370_v49  ;;  %v13383_v37 = vadd.f32 %v13139_v29, %v3302_v35  ;;  %v3304_v20 = vpop.f32.mrb[23].mxu0  ;;  %15149 = vst [vmem:[#allocation24_spill] sm:$0xff] %v13392_v32 }
 0x3e1   :  { %15143 = vst [vmem:[#allocation12_spill] sm:$0xff] %v13378_v33  ;;  %v13388_v49 = vadd.f32 %v13141_v30, %v3304_v20  ;;  %v13395_v33 = vpop.f32.mrb[69].mxu1  ;;  %v11243_v30 = vld [vmem:[%s15044_s2 + $0x94] ss:$8 sps:$4 sm:$0xff]  }
 0x3e2   :  { %15145 = vst [vmem:[#allocation14_spill] sm:$0xff] %v13383_v37  ;;  %4242 = vmatmul.mubr.bf16.gmra.mrb[16].mxu0 %v11213_v18  ;;  %15150 = vst [vmem:[#allocation25_spill] sm:$0xff] %v13395_v33  ;;  %v11241_v37 = vld [vmem:[%s15044_s2 + $0x90] ss:$8 sps:$4 sm:$0xff]   ;;  %v13404_v18 = vpop.f32.mrb[70].mxu1  ;;  %5124 = vmatprep.subr.bf16.mxu1 %v11243_v30 }
 0x3e3   :  { %15147 = vst [vmem:[#allocation16_spill] sm:$0xff] %v13388_v49  ;;  %15151 = vst [vmem:[#allocation26_spill] sm:$0xff] %v13404_v18  ;;  %v13408_v20 = vpop.f32.mrb[71].mxu1  ;;  %5125 = vmatpush1.bf16.msra.mxu1 %v11241_v37 }
 0x3e4   :  { %15152 = vst [vmem:[#allocation27_spill] sm:$0xff] %v13408_v20  ;;  %v13423_v20 = vpop.f32.mrb[72].mxu1 }
 0x3e5   :  { %v3308_v60 = vpop.f32.mrb[24].mxu0  ;;  %15153 = vst [vmem:[#allocation28_spill] sm:$0xff] %v13423_v20  ;;  %v13427_v21 = vpop.f32.mrb[73].mxu1 }
 0x3e6   :  { %v10176_v27 = vadd.f32 %v13145_v31, %v3308_v60  ;;  %v3310_v14 = vpop.f32.mrb[25].mxu0  ;;  %15154 = vst [vmem:[#allocation29_spill] sm:$0xff] %v13427_v21 }
 0x3e7   :  { %v10177_v29 = vadd.f32 %v13147_v38, %v3310_v14  ;;  %v3312_v35 = vpop.f32.mrb[26].mxu0  ;;  %v4594_v38 = vld [vmem:[%s15045_s3] sm:$0x3]  ;;  %v15077_v14 = vsub.s32 1, %v13390_v6 }
 0x3e8   :  { %v10178_v31 = vadd.f32 %v13149_v39, %v3312_v35  ;;  %v3314_v60 = vpop.f32.mrb[27].mxu0  ;;  %v13417_v18 = vrot.slane %v4594_v38, %v15078_v4 }
 0x3e9   :  { %v10179_v49 = vadd.f32 %v13151_v44, %v3314_v60  ;;  %v13421_v39 = vrot.slane %v4594_v38, %v15077_v14  ;;  %v13431_v60 = vpop.f32.mrb[74].mxu1 }
 0x3ea   :  { %v4630_v33 = vadd.f32 %v10176_v27, %v13417_v18  ;;  %15155 = vst [vmem:[#allocation30_spill] sm:$0xff] %v13431_v60  ;;  %v4632_v38 = vadd.f32 %v10178_v31, %v13417_v18  ;;  %v13436_v27 = vpop.f32.mrb[75].mxu1 }
 0x3eb   :  { %v4631_v44 = vadd.f32 %v10177_v29, %v13421_v39 }
 0x3ec   :  { %v4742_v21 = vmax.f32 %v4630_v33, 0.0 }
 0x3ed   :  { %v3318_v35 = vpop.f32.mrb[28].mxu0  ;;  %v4743_v60 = vmax.f32 %v4631_v44, 0.0 }
 0x3ee   :  { %v10180_v32 = vadd.f32 %v13155_v45, %v3318_v35  ;;  %v3320_v36 = vpop.f32.mrb[29].mxu0  ;;  %v4633_v45 = vadd.f32 %v10179_v49, %v13421_v39  ;;  %v11246_v49 = vld [vmem:[%s15044_s2 + $0xa4] ss:$8 sps:$4 sm:$0xff]  }
 0x3ef   :  { %v10181_v37 = vadd.f32 %v13157_v54, %v3320_v36  ;;  %v3322_v30 = vpop.f32.mrb[30].mxu0  ;;  %5126 = vmatprep.subr.bf16.mxu1 %v11246_v49 }
 0x3f0   :  { %v4634_v14 = vadd.f32 %v10180_v32, %v13417_v18  ;;  %v10182_v4 = vadd.f32 %v13159_v55, %v3322_v30  ;;  %v3324_v6 = vpop.f32.mrb[31].mxu0  ;;  %v4744_v32 = vmax.f32 %v4632_v38, 0.0  ;;  %v11244_v30 = vld [vmem:[%s15044_s2 + $0xa0] ss:$8 sps:$4 sm:$0xff]  }
 0x3f1   :  { %v4635_v35 = vadd.f32 %v10181_v37, %v13421_v39  ;;  %v10183_v29 = vadd.f32 %v13161_v56, %v3324_v6  ;;  %v4745_v56 = vmax.f32 %v4633_v45, 0.0  ;;  %5127 = vmatpush1.bf16.msra.mxu1 %v11244_v30  ;;  %v11249_v30 = vld [vmem:[%s15044_s2 + $0xb4] ss:$8 sps:$4 sm:$0xff]  }
 0x3f2   :  { %v4746_v54 = vmax.f32 %v4634_v14, 0.0  ;;  %v4636_v36 = vadd.f32 %v10182_v4, %v13417_v18  ;;  %v13449_v4 = vpop.f32.mrb[76].mxu1  ;;  %5128 = vmatprep.subr.bf16.mxu1 %v11249_v30 }
 0x3f3   :  { %v4747_v20 = vmax.f32 %v4635_v35, 0.0  ;;  %v4637_v31 = vadd.f32 %v10183_v29, %v13421_v39 }
 0x3f4   :  { %v4842_v16 = vmax.f32 %v4742_v21, %v4746_v54  ;;  %v4748_v55 = vmax.f32 %v4636_v36, 0.0  ;;  %v13452_v21 = vpop.f32.mrb[77].mxu1 }
 0x3f5   :  { %v4843_v33 = vmax.f32 %v4743_v60, %v4747_v20  ;;  %v4749_v6 = vmax.f32 %v4637_v31, 0.0  ;;  %v3328_v14 = vpop.f32.mrb[32].mxu0  ;;  %v13455_v36 = vpop.f32.mrb[78].mxu1 }
 0x3f6   :  { %v4844_v44 = vmax.f32 %v4744_v32, %v4748_v55  ;;  %v10184_v37 = vadd.f32 %v13165_v57, %v3328_v14  ;;  %v3330_v38 = vpop.f32.mrb[33].mxu0  ;;  %v13458_v45 = vpop.f32.mrb[79].mxu1 }
 0x3f7   :  { %v4845_v35 = vmax.f32 %v4745_v56, %v4749_v6  ;;  %v10185_v29 = vadd.f32 %v13167_v62, %v3330_v38  ;;  %v3332_v54 = vpop.f32.mrb[34].mxu0  ;;  %v11247_v62 = vld [vmem:[%s15044_s2 + $0xb0] ss:$8 sps:$4 sm:$0xff]  }
 0x3f8   :  { %v10186_v20 = vadd.f32 %v13169_v2, %v3332_v54  ;;  %v3334_v60 = vpop.f32.mrb[35].mxu0  ;;  %v13460_v31 = vpack.c.bf16 %v4844_v44, %v4842_v16  ;;  %v4638_v2 = vadd.f32 %v10184_v37, %v13417_v18  ;;  %v13473_v16 = vpop.f32.mrb[80].mxu1  ;;  %5129 = vmatpush1.bf16.msra.mxu1 %v11247_v62 }
 0x3f9   :  { %v10187_v57 = vadd.f32 %v13171_v3, %v3334_v60  ;;  %v13463_v32 = vpack.c.bf16 %v4845_v35, %v4843_v33  ;;  %v4639_v3 = vadd.f32 %v10185_v29, %v13421_v39  ;;  %v13477_v14 = vpop.f32.mrb[81].mxu1 }
 0x3fa   :  { %15156 = vst [vmem:[#allocation31_spill] sm:$0xff] %v13460_v31  ;;  %15158 = vst [vmem:[#allocation33_spill] sm:$0xff] %v13477_v14  ;;  %v4640_v44 = vadd.f32 %v10186_v20, %v13417_v18 }
 0x3fb   :  { %15157 = vst [vmem:[#allocation32_spill] sm:$0xff] %v13463_v32  ;;  %v4641_v54 = vadd.f32 %v10187_v57, %v13421_v39 }
 0x3fd   :  { %v3338_v55 = vpop.f32.mrb[36].mxu0  ;;  %v4753_v32 = vmax.f32 %v4641_v54, 0.0  ;;  %v11252_v54 = vld [vmem:[%s15044_s2 + $0xc4] ss:$8 sps:$4 sm:$0xff]  }
 0x3fe   :  { %v10188_v49 = vadd.f32 %v13175_v5, %v3338_v55  ;;  %v3340_v56 = vpop.f32.mrb[37].mxu0  ;;  %v13482_v5 = vpop.f32.mrb[82].mxu1  ;;  %v4750_v55 = vmax.f32 %v4638_v2, 0.0  ;;  %5130 = vmatprep.subr.bf16.mxu1 %v11252_v54 }
 0x3ff   :  { %v10189_v33 = vadd.f32 %v13180_v41, %v3340_v56  ;;  %v3342_v6 = vpop.f32.mrb[38].mxu0  ;;  %15159 = vst [vmem:[#allocation34_spill] sm:$0xff] %v13482_v5  ;;  %v13487_v60 = vpop.f32.mrb[83].mxu1  ;;  %v4751_v56 = vmax.f32 %v4639_v3, 0.0 }
 0x400   :  { %v4642_v38 = vadd.f32 %v10188_v49, %v13417_v18  ;;  %v10190_v35 = vadd.f32 %v13185_v10, %v3342_v6  ;;  %v3344_v37 = vpop.f32.mrb[39].mxu0  ;;  %v4752_v6 = vmax.f32 %v4640_v44, 0.0  ;;  %v11250_v44 = vld [vmem:[%s15044_s2 + $0xc0] ss:$8 sps:$4 sm:$0xff]  }
 0x401   :  { %v4643_v29 = vadd.f32 %v10189_v33, %v13421_v39  ;;  %v10191_v41 = vadd.f32 %v13187_v47, %v3344_v37  ;;  %v13491_v33 = vpop.f32.mrb[84].mxu1  ;;  %5131 = vmatpush1.bf16.msra.mxu1 %v11250_v44 }
 0x402   :  { %v4754_v30 = vmax.f32 %v4642_v38, 0.0  ;;  %v4644_v20 = vadd.f32 %v10190_v35, %v13417_v18  ;;  %v13494_v38 = vpop.f32.mrb[85].mxu1 }
 0x403   :  { %v4755_v49 = vmax.f32 %v4643_v29, 0.0  ;;  %v4645_v10 = vadd.f32 %v10191_v41, %v13421_v39  ;;  %v13503_v41 = vpop.f32.mrb[86].mxu1 }
 0x404   :  { %v4846_v62 = vmax.f32 %v4750_v55, %v4754_v30  ;;  %v4756_v31 = vmax.f32 %v4644_v20, 0.0 }
 0x405   :  { %v4847_v5 = vmax.f32 %v4751_v56, %v4755_v49  ;;  %v4757_v57 = vmax.f32 %v4645_v10, 0.0  ;;  %v3348_v14 = vpop.f32.mrb[40].mxu0 }
 0x406   :  { %v4848_v47 = vmax.f32 %v4752_v6, %v4756_v31  ;;  %v10192_v37 = vadd.f32 %v13191_v9, %v3348_v14  ;;  %v3350_v2 = vpop.f32.mrb[41].mxu0  ;;  %v13506_v14 = vpop.f32.mrb[87].mxu1 }
 0x407   :  { %v4849_v35 = vmax.f32 %v4753_v32, %v4757_v57  ;;  %v10193_v3 = vadd.f32 %v13193_v40, %v3350_v2  ;;  %v3352_v29 = vpop.f32.mrb[42].mxu0  ;;  %v13513_v20 = vpop.f32.mrb[88].mxu1 }
 0x408   :  { %v10194_v31 = vadd.f32 %v13195_v59, %v3352_v29  ;;  %v3354_v9 = vpop.f32.mrb[43].mxu0  ;;  %v13508_v55 = vpack.c.bf16 %v4848_v47, %v4846_v62  ;;  %v4646_v56 = vadd.f32 %v10192_v37, %v13417_v18  ;;  %v13517_v59 = vpop.f32.mrb[89].mxu1 }
 0x409   :  { %v10195_v40 = vadd.f32 %v13197_v0, %v3354_v9  ;;  %v13511_v32 = vpack.c.bf16 %v4849_v35, %v4847_v5  ;;  %v4647_v6 = vadd.f32 %v10193_v3, %v13421_v39  ;;  %v13521_v0 = vpop.f32.mrb[90].mxu1 }
 0x40a   :  { %15160 = vst [vmem:[#allocation35_spill] sm:$0xff] %v13508_v55  ;;  %15162 = vst [vmem:[#allocation37_spill] sm:$0xff] %v13521_v0  ;;  %v4648_v5 = vadd.f32 %v10194_v31, %v13417_v18  ;;  %v13526_v37 = vpop.f32.mrb[91].mxu1  ;;  %v4758_v44 = vmax.f32 %v4646_v56, 0.0 }
 0x40b   :  { %15161 = vst [vmem:[#allocation36_spill] sm:$0xff] %v13511_v32  ;;  %15163 = vst [vmem:[#allocation38_spill] sm:$0xff] %v13526_v37  ;;  %v4759_v9 = vmax.f32 %v4647_v6, 0.0  ;;  %v11253_v6 = vld [vmem:[%s15044_s2 + $0xd0] ss:$8 sps:$4 sm:$0xff]  }
 0x40d   :  { %v3358_v30 = vpop.f32.mrb[44].mxu0 }
 0x40e   :  { %v10196_v49 = vadd.f32 %v13207_v46, %v3358_v30  ;;  %v3360_v10 = vpop.f32.mrb[45].mxu0  ;;  %v4649_v46 = vadd.f32 %v10195_v40, %v13421_v39 }
 0x40f   :  { %v10197_v62 = vadd.f32 %v13209_v12, %v3360_v10  ;;  %v3362_v57 = vpop.f32.mrb[46].mxu0 }
 0x410   :  { %v4650_v47 = vadd.f32 %v10196_v49, %v13417_v18  ;;  %v10198_v2 = vadd.f32 %v13211_v25, %v3362_v57  ;;  %v3364_v35 = vpop.f32.mrb[47].mxu0  ;;  %v4760_v49 = vmax.f32 %v4648_v5, 0.0  ;;  %v4761_v57 = vmax.f32 %v4649_v46, 0.0  ;;  %v11255_v5 = vld [vmem:[%s15044_s2 + $0xd4] ss:$8 sps:$4 sm:$0xff]  }
 0x411   :  { %v4651_v29 = vadd.f32 %v10197_v62, %v13421_v39  ;;  %v10199_v3 = vadd.f32 %v13213_v26, %v3364_v35  ;;  %5132 = vmatprep.subr.bf16.mxu1 %v11255_v5 }
 0x412   :  { %v4762_v12 = vmax.f32 %v4650_v47, 0.0  ;;  %v4652_v54 = vadd.f32 %v10198_v2, %v13417_v18  ;;  %5133 = vmatpush1.bf16.msra.mxu1 %v11253_v6 }
 0x413   :  { %v4763_v30 = vmax.f32 %v4651_v29, 0.0  ;;  %v4653_v31 = vadd.f32 %v10199_v3, %v13421_v39 }
 0x414   :  { %v4850_v10 = vmax.f32 %v4758_v44, %v4762_v12  ;;  %v4764_v25 = vmax.f32 %v4652_v54, 0.0 }
 0x415   :  { %v4851_v55 = vmax.f32 %v4759_v9, %v4763_v30  ;;  %v4765_v32 = vmax.f32 %v4653_v31, 0.0  ;;  %v3368_v37 = vpop.f32.mrb[48].mxu0 }
 0x416   :  { %v4852_v40 = vmax.f32 %v4760_v49, %v4764_v25  ;;  %v10200_v62 = vadd.f32 %v13217_v53, %v3368_v37  ;;  %v3370_v0 = vpop.f32.mrb[49].mxu0 }
 0x417   :  { %v4853_v26 = vmax.f32 %v4761_v57, %v4765_v32  ;;  %v10201_v56 = vadd.f32 %v13219_v23, %v3370_v0  ;;  %v3372_v47 = vpop.f32.mrb[50].mxu0  ;;  %v11256_v23 = vld [vmem:[%s15044_s2 + $0xe0] ss:$8 sps:$4 sm:$0xff]   ;;  %v11258_v0 = vld [vmem:[%s15044_s2 + $0xe4] ss:$8 sps:$4 sm:$0xff]  }
 0x418   :  { %v10202_v2 = vadd.f32 %v13227_v42, %v3372_v47  ;;  %v3374_v35 = vpop.f32.mrb[51].mxu0  ;;  %v13542_v46 = vpack.c.bf16 %v4852_v40, %v4850_v10  ;;  %5134 = vmatprep.subr.bf16.mxu1 %v11258_v0  ;;  %v4654_v42 = vadd.f32 %v10200_v62, %v13417_v18 }
 0x419   :  { %v10203_v53 = vadd.f32 %v13229_v43, %v3374_v35  ;;  %v13545_v32 = vpack.c.bf16 %v4853_v26, %v4851_v55  ;;  %5135 = vmatpush1.bf16.msra.mxu1 %v11256_v23  ;;  %v4655_v43 = vadd.f32 %v10201_v56, %v13421_v39 }
 0x41a   :  { %v4656_v12 = vadd.f32 %v10202_v2, %v13417_v18  ;;  %v4766_v10 = vmax.f32 %v4654_v42, 0.0 }
 0x41b   :  { %v4657_v31 = vadd.f32 %v10203_v53, %v13421_v39  ;;  %v4767_v40 = vmax.f32 %v4655_v43, 0.0 }
 0x41c   :  { %v4768_v26 = vmax.f32 %v4656_v12, 0.0 }
 0x41d   :  { %v3378_v37 = vpop.f32.mrb[52].mxu0  ;;  %v4769_v6 = vmax.f32 %v4657_v31, 0.0 }
 0x41e   :  { %v10204_v29 = vadd.f32 %v13233_v7, %v3378_v37  ;;  %v3380_v3 = vpop.f32.mrb[53].mxu0 }
 0x41f   :  { %v10205_v55 = vadd.f32 %v13235_v11, %v3380_v3  ;;  %v3382_v44 = vpop.f32.mrb[54].mxu0 }
 0x420   :  { %v4658_v54 = vadd.f32 %v10204_v29, %v13417_v18  ;;  %v10206_v9 = vadd.f32 %v13237_v50, %v3382_v44  ;;  %v3384_v30 = vpop.f32.mrb[55].mxu0  ;;  %v11261_v50 = vld [vmem:[%s15044_s2 + $0xf4] ss:$8 sps:$4 sm:$0xff]  }
 0x421   :  { %v4659_v49 = vadd.f32 %v10205_v55, %v13421_v39  ;;  %v10207_v7 = vadd.f32 %v13239_v51, %v3384_v30  ;;  %v11259_v51 = vld [vmem:[%s15044_s2 + $0xf0] ss:$8 sps:$4 sm:$0xff]   ;;  %5136 = vmatprep.subr.bf16.mxu1 %v11261_v50 }
 0x422   :  { %v4770_v25 = vmax.f32 %v4658_v54, 0.0  ;;  %v4660_v57 = vadd.f32 %v10206_v9, %v13417_v18  ;;  %5137 = vmatpush1.bf16.msra.mxu1 %v11259_v51 }
 0x423   :  { %v4771_v11 = vmax.f32 %v4659_v49, 0.0  ;;  %v4661_v62 = vadd.f32 %v10207_v7, %v13421_v39 }
 0x424   :  { %v4854_v56 = vmax.f32 %v4766_v10, %v4770_v25  ;;  %v4772_v47 = vmax.f32 %v4660_v57, 0.0 }
 0x425   :  { %v4855_v5 = vmax.f32 %v4767_v40, %v4771_v11  ;;  %v4773_v2 = vmax.f32 %v4661_v62, 0.0  ;;  %v3388_v35 = vpop.f32.mrb[56].mxu0 }
 0x426   :  { %v4856_v53 = vmax.f32 %v4768_v26, %v4772_v47  ;;  %v10208_v23 = vadd.f32 %v13249_v24, %v3388_v35  ;;  %v3390_v0 = vpop.f32.mrb[57].mxu0 }
 0x427   :  { %v4857_v37 = vmax.f32 %v4769_v6, %v4773_v2  ;;  %v10209_v42 = vadd.f32 %v13251_v61, %v3390_v0  ;;  %v3392_v29 = vpop.f32.mrb[58].mxu0 }
 0x428   :  { %v10210_v3 = vadd.f32 %v13253_v8, %v3392_v29  ;;  %v3394_v43 = vpop.f32.mrb[59].mxu0  ;;  %v13574_v55 = vpack.c.bf16 %v4856_v53, %v4854_v56  ;;  %v4662_v9 = vadd.f32 %v10208_v23, %v13417_v18 }
 0x429   :  { %v10211_v44 = vadd.f32 %v13255_v17, %v3394_v43  ;;  %v13577_v12 = vpack.c.bf16 %v4857_v37, %v4855_v5  ;;  %v4663_v31 = vadd.f32 %v10209_v42, %v13421_v39 }
 0x42a   :  { %v4664_v8 = vadd.f32 %v10210_v3, %v13417_v18 }
 0x42b   :  { %v4665_v25 = vadd.f32 %v10211_v44, %v13421_v39  ;;  %v4775_v26 = vmax.f32 %v4663_v31, 0.0 }
 0x42c   :  { %v4776_v47 = vmax.f32 %v4664_v8, 0.0 }
 0x42d   :  { %v3398_v54 = vpop.f32.mrb[60].mxu0  ;;  %v4777_v5 = vmax.f32 %v4665_v25, 0.0 }
 0x42e   :  { %v10212_v24 = vadd.f32 %v13265_v22, %v3398_v54  ;;  %v3400_v30 = vpop.f32.mrb[61].mxu0  ;;  %v4774_v22 = vmax.f32 %v4662_v9, 0.0 }
 0x42f   :  { %v10213_v61 = vadd.f32 %v13267_v52, %v3400_v30  ;;  %v3402_v49 = vpop.f32.mrb[62].mxu0 }
 0x430   :  { %v4666_v7 = vadd.f32 %v10212_v24, %v13417_v18  ;;  %v10214_v10 = vadd.f32 %v13269_v28, %v3402_v49  ;;  %v3404_v17 = vpop.f32.mrb[63].mxu0 }
 0x431   :  { %v4667_v57 = vadd.f32 %v10213_v61, %v13421_v39  ;;  %v10215_v40 = vadd.f32 %v13271_v58, %v3404_v17 }
 0x432   :  { %v4778_v11 = vmax.f32 %v4666_v7, 0.0  ;;  %v4668_v62 = vadd.f32 %v10214_v10, %v13417_v18  ;;  %v15164_v10 = vld [vmem:[#allocation17_spill] sm:$0xff] }
 0x433   :  { %v4779_v52 = vmax.f32 %v4667_v57, 0.0  ;;  %v4669_v56 = vadd.f32 %v10215_v40, %v13421_v39 }
 0x434   :  { %v4858_v50 = vmax.f32 %v4774_v22, %v4778_v11  ;;  %v4780_v6 = vmax.f32 %v4668_v62, 0.0 }
 0x435   :  { %v4859_v28 = vmax.f32 %v4775_v26, %v4779_v52  ;;  %v4781_v2 = vmax.f32 %v4669_v56, 0.0  ;;  %v3408_v35 = vpop.f32.mrb[64].mxu0 }
 0x436   :  { %v4860_v51 = vmax.f32 %v4776_v47, %v4780_v6  ;;  %v10216_v53 = vadd.f32 %v13275_v48, %v3408_v35  ;;  %v3410_v23 = vpop.f32.mrb[65].mxu0  ;;  %v15165_v6 = vld [vmem:[#allocation18_spill] sm:$0xff]  ;;  %v15166_v35 = vld [vmem:[#allocation19_spill] sm:$0xff] }
 0x437   :  { %v4861_v58 = vmax.f32 %v4777_v5, %v4781_v2  ;;  %v10217_v0 = vadd.f32 %v13280_v1, %v3410_v23  ;;  %v3412_v37 = vpop.f32.mrb[66].mxu0  ;;  %v15167_v23 = vld [vmem:[#allocation2_spill] sm:$0xff] }
 0x438   :  { %v10218_v42 = vadd.f32 %v13288_v15, %v3412_v37  ;;  %v3414_v29 = vpop.f32.mrb[67].mxu0  ;;  %v13594_v3 = vpack.c.bf16 %v4860_v51, %v4858_v50  ;;  %v4670_v9 = vadd.f32 %v10216_v53, %v13417_v18 }
 0x439   :  { %v10219_v43 = vadd.f32 %v13290_v63, %v3414_v29  ;;  %v13597_v44 = vpack.c.bf16 %v4861_v58, %v4859_v28  ;;  %v4671_v30 = vadd.f32 %v10217_v0, %v13421_v39 }
 0x43a   :  { %v4672_v15 = vadd.f32 %v10218_v42, %v13417_v18  ;;  %v15168_v42 = vld [vmem:[#allocation3_spill] sm:$0xff] }
 0x43b   :  { %v4673_v8 = vadd.f32 %v10219_v43, %v13421_v39  ;;  %v4783_v40 = vmax.f32 %v4671_v30, 0.0 }
 0x43c   :  { %v4784_v11 = vmax.f32 %v4672_v15, 0.0 }
 0x43d   :  { %v3418_v54 = vpop.f32.mrb[68].mxu0  ;;  %v4785_v52 = vmax.f32 %v4673_v8, 0.0  ;;  %v15171_v8 = vld [vmem:[#allocation22_spill] sm:$0xff] }
 0x43e   :  { %v10220_v24 = vadd.f32 %v13293_v13, %v3418_v54  ;;  %v3420_v48 = vpop.f32.mrb[69].mxu0  ;;  %v4782_v13 = vmax.f32 %v4670_v9, 0.0 }
 0x43f   :  { %v10221_v1 = vadd.f32 %v13298_v34, %v3420_v48  ;;  %v3422_v31 = vpop.f32.mrb[70].mxu0 }
 0x440   :  { %v4674_v61 = vadd.f32 %v10220_v24, %v13417_v18  ;;  %v10222_v49 = vadd.f32 %v13303_v19, %v3422_v31  ;;  %v3424_v63 = vpop.f32.mrb[71].mxu0  ;;  %v15169_v24 = vld [vmem:[#allocation20_spill] sm:$0xff]  ;;  %v15170_v31 = vld [vmem:[#allocation21_spill] sm:$0xff] }
 0x441   :  { %v4675_v7 = vadd.f32 %v10221_v1, %v13421_v39  ;;  %v10223_v17 = vadd.f32 %v15164_v10, %v3424_v63 }
 0x442   :  { %v4786_v25 = vmax.f32 %v4674_v61, 0.0  ;;  %v4676_v57 = vadd.f32 %v10222_v49, %v13417_v18 }
 0x443   :  { %v4787_v34 = vmax.f32 %v4675_v7, 0.0  ;;  %v4677_v22 = vadd.f32 %v10223_v17, %v13421_v39 }
 0x444   :  { %v4862_v62 = vmax.f32 %v4782_v13, %v4786_v25  ;;  %v4788_v26 = vmax.f32 %v4676_v57, 0.0  ;;  %v15172_v25 = vld [vmem:[#allocation4_spill] sm:$0xff] }
 0x445   :  { %v4863_v19 = vmax.f32 %v4783_v40, %v4787_v34  ;;  %v4789_v56 = vmax.f32 %v4677_v22, 0.0  ;;  %v3428_v47 = vpop.f32.mrb[72].mxu0 }
 0x446   :  { %v4864_v50 = vmax.f32 %v4784_v11, %v4788_v26  ;;  %v10224_v5 = vadd.f32 %v15165_v6, %v3428_v47  ;;  %v3430_v28 = vpop.f32.mrb[73].mxu0 }
 0x447   :  { %v4865_v2 = vmax.f32 %v4785_v52, %v4789_v56  ;;  %v10225_v51 = vadd.f32 %v15166_v35, %v3430_v28  ;;  %v3432_v53 = vpop.f32.mrb[74].mxu0 }
 0x448   :  { %v10226_v58 = vadd.f32 %v15167_v23, %v3432_v53  ;;  %v3434_v0 = vpop.f32.mrb[75].mxu0  ;;  %v13614_v37 = vpack.c.bf16 %v4864_v50, %v4862_v62  ;;  %v4678_v9 = vadd.f32 %v10224_v5, %v13417_v18  ;;  %v15174_v23 = vld [vmem:[#allocation6_spill] sm:$0xff] }
 0x449   :  { %v10227_v29 = vadd.f32 %v15168_v42, %v3434_v0  ;;  %v13617_v43 = vpack.c.bf16 %v4865_v2, %v4863_v19  ;;  %v4679_v1 = vadd.f32 %v10225_v51, %v13421_v39  ;;  %v15173_v2 = vld [vmem:[#allocation5_spill] sm:$0xff]  ;;  %v15175_v42 = vld [vmem:[#allocation7_spill] sm:$0xff] }
 0x44a   :  { %v4680_v49 = vadd.f32 %v10226_v58, %v13417_v18  ;;  %v4790_v40 = vmax.f32 %v4678_v9, 0.0 }
 0x44b   :  { %v4681_v17 = vadd.f32 %v10227_v29, %v13421_v39  ;;  %v4791_v11 = vmax.f32 %v4679_v1, 0.0 }
 0x44c   :  { %v4792_v52 = vmax.f32 %v4680_v49, 0.0 }
 0x44d   :  { %v3438_v54 = vpop.f32.mrb[76].mxu0  ;;  %v4793_v47 = vmax.f32 %v4681_v17, 0.0 }
 0x44e   :  { %v10228_v48 = vadd.f32 %v15169_v24, %v3438_v54  ;;  %v3440_v30 = vpop.f32.mrb[77].mxu0  ;;  %v15176_v24 = vld [vmem:[#allocation8_spill] sm:$0xff] }
 0x44f   :  { %v10229_v15 = vadd.f32 %v15170_v31, %v3440_v30  ;;  %v3442_v61 = vpop.f32.mrb[78].mxu0 }
 0x450   :  { %v4682_v63 = vadd.f32 %v10228_v48, %v13417_v18  ;;  %v10230_v7 = vadd.f32 %v15171_v8, %v3442_v61  ;;  %v3444_v10 = vpop.f32.mrb[79].mxu0  ;;  %v15178_v8 = vld [vmem:[#allocation11_spill] sm:$0xff] }
 0x451   :  { %v4683_v13 = vadd.f32 %v10229_v15, %v13421_v39  ;;  %v10231_v57 = vadd.f32 %v15172_v25, %v3444_v10  ;;  %v15177_v15 = vld [vmem:[#allocation9_spill] sm:$0xff] }
 0x452   :  { %v4794_v34 = vmax.f32 %v4682_v63, 0.0  ;;  %v4684_v22 = vadd.f32 %v10230_v7, %v13417_v18  ;;  %v15179_v25 = vld [vmem:[#allocation13_spill] sm:$0xff] }
 0x453   :  { %v4795_v62 = vmax.f32 %v4683_v13, 0.0  ;;  %v4685_v26 = vadd.f32 %v10231_v57, %v13421_v39 }
 0x454   :  { %v4866_v19 = vmax.f32 %v4790_v40, %v4794_v34  ;;  %v4796_v56 = vmax.f32 %v4684_v22, 0.0 }
 0x455   :  { %v4867_v50 = vmax.f32 %v4791_v11, %v4795_v62  ;;  %v4797_v6 = vmax.f32 %v4685_v26, 0.0  ;;  %v3448_v5 = vpop.f32.mrb[80].mxu0  ;;  %v15180_v11 = vld [vmem:[#allocation15_spill] sm:$0xff] }
 0x456   :  { %v4868_v28 = vmax.f32 %v4792_v52, %v4796_v56  ;;  %v10232_v35 = vadd.f32 %v15173_v2, %v3448_v5  ;;  %v3450_v51 = vpop.f32.mrb[81].mxu0 }
 0x457   :  { %v4869_v53 = vmax.f32 %v4793_v47, %v4797_v6  ;;  %v10233_v58 = vadd.f32 %v15174_v23, %v3450_v51  ;;  %v3452_v0 = vpop.f32.mrb[82].mxu0 }
 0x458   :  { %v10234_v29 = vadd.f32 %v15175_v42, %v3452_v0  ;;  %v3454_v54 = vpop.f32.mrb[83].mxu0  ;;  %v13634_v9 = vpack.c.bf16 %v4868_v28, %v4866_v19  ;;  %v4686_v31 = vadd.f32 %v10232_v35, %v13417_v18 }
 0x459   :  { %v10235_v48 = vadd.f32 %v15176_v24, %v3454_v54  ;;  %v13637_v30 = vpack.c.bf16 %v4869_v53, %v4867_v50  ;;  %v4687_v63 = vadd.f32 %v10233_v58, %v13421_v39  ;;  %v15181_v58 = vld [vmem:[#allocation24_spill] sm:$0xff]  ;;  %v15182_v54 = vld [vmem:[#allocation25_spill] sm:$0xff] }
 0x45a   :  { %v4688_v17 = vadd.f32 %v10234_v29, %v13417_v18  ;;  %v4798_v26 = vmax.f32 %v4686_v31, 0.0 }
 0x45b   :  { %v4689_v34 = vadd.f32 %v10235_v48, %v13421_v39  ;;  %v4799_v56 = vmax.f32 %v4687_v63, 0.0 }
 0x45c   :  { %v4800_v6 = vmax.f32 %v4688_v17, 0.0  ;;  %v15185_v17 = vld [vmem:[#allocation28_spill] sm:$0xff] }
 0x45d   :  { %v3458_v1 = vpop.f32.mrb[84].mxu0  ;;  %v4801_v2 = vmax.f32 %v4689_v34, 0.0 }
 0x45e   :  { %v10236_v61 = vadd.f32 %v15177_v15, %v3458_v1  ;;  %v3460_v49 = vpop.f32.mrb[85].mxu0  ;;  %v15183_v1 = vld [vmem:[#allocation26_spill] sm:$0xff] }
 0x45f   :  { %v10237_v7 = vadd.f32 %v15178_v8, %v3460_v49  ;;  %v3462_v10 = vpop.f32.mrb[86].mxu0  ;;  %v15184_v49 = vld [vmem:[#allocation27_spill] sm:$0xff] }
 0x460   :  { %v4690_v13 = vadd.f32 %v10236_v61, %v13417_v18  ;;  %v10238_v57 = vadd.f32 %v15179_v25, %v3462_v10  ;;  %v3464_v40 = vpop.f32.mrb[87].mxu0 }
 0x461   :  { %v4691_v22 = vadd.f32 %v10237_v7, %v13421_v39  ;;  %v10239_v62 = vadd.f32 %v15180_v11, %v3464_v40  ;;  %v15186_v40 = vld [vmem:[#allocation29_spill] sm:$0xff] }
 0x462   :  { %v4802_v52 = vmax.f32 %v4690_v13, 0.0  ;;  %v4692_v19 = vadd.f32 %v10238_v57, %v13417_v18 }
 0x463   :  { %v4803_v47 = vmax.f32 %v4691_v22, 0.0  ;;  %v4693_v50 = vadd.f32 %v10239_v62, %v13421_v39 }
 0x464   :  { %v4870_v5 = vmax.f32 %v4798_v26, %v4802_v52  ;;  %v4804_v28 = vmax.f32 %v4692_v19, 0.0  ;;  %v15187_v26 = vld [vmem:[#allocation30_spill] sm:$0xff] }
 0x465   :  { %v4871_v35 = vmax.f32 %v4799_v56, %v4803_v47  ;;  %v4805_v51 = vmax.f32 %v4693_v50, 0.0  ;;  %v3468_v53 = vpop.f32.mrb[88].mxu0 }
 0x466   :  { %v4872_v23 = vmax.f32 %v4800_v6, %v4804_v28  ;;  %v10240_v0 = vadd.f32 %v15181_v58, %v3468_v53  ;;  %v3470_v42 = vpop.f32.mrb[89].mxu0 }
 0x467   :  { %v4873_v29 = vmax.f32 %v4801_v2, %v4805_v51  ;;  %v10241_v24 = vadd.f32 %v15182_v54, %v3470_v42  ;;  %v3472_v48 = vpop.f32.mrb[90].mxu0 }
 0x468   :  { %v10242_v31 = vadd.f32 %v15183_v1, %v3472_v48  ;;  %v3474_v15 = vpop.f32.mrb[91].mxu0  ;;  %v13654_v61 = vpack.c.bf16 %v4872_v23, %v4870_v5  ;;  %v4694_v10 = vadd.f32 %v10240_v0, %v13417_v18 }
 0x469   :  { %v10243_v63 = vadd.f32 %v15184_v49, %v3474_v15  ;;  %v13657_v8 = vpack.c.bf16 %v4873_v29, %v4871_v35  ;;  %v4695_v57 = vadd.f32 %v10241_v24, %v13421_v39 }
 0x46a   :  { %v4696_v11 = vadd.f32 %v10242_v31, %v13417_v18  ;;  %v4806_v6 = vmax.f32 %v4694_v10, 0.0 }
 0x46b   :  { %v4697_v56 = vadd.f32 %v10243_v63, %v13421_v39  ;;  %v4807_v2 = vmax.f32 %v4695_v57, 0.0 }
 0x46c   :  { %v4808_v53 = vmax.f32 %v4696_v11, 0.0 }
 0x46d   :  { %v3478_v7 = vpop.f32.mrb[92].mxu0  ;;  %v4809_v0 = vmax.f32 %v4697_v56, 0.0 }
 0x46e   :  { %v10244_v13 = vadd.f32 %v15185_v17, %v3478_v7  ;;  %v3480_v25 = vpop.f32.mrb[93].mxu0 }
 0x46f   :  { %v10245_v34 = vadd.f32 %v15186_v40, %v3480_v25  ;;  %v3482_v22 = vpop.f32.mrb[94].mxu0 }
 0x470   :  { %v4698_v62 = vadd.f32 %v10244_v13, %v13417_v18  ;;  %v10246_v52 = vadd.f32 %v15187_v26, %v3482_v22  ;;  %v3484_v19 = vpop.f32.mrb[95].mxu0 }
 0x471   :  { %v4699_v47 = vadd.f32 %v10245_v34, %v13421_v39  ;;  %v10247_v50 = vadd.f32 %v13436_v27, %v3484_v19  ;;  %v15188_v34 = vld [vmem:[#allocation33_spill] sm:$0xff] }
 0x472   :  { %v4810_v5 = vmax.f32 %v4698_v62, 0.0  ;;  %v4700_v28 = vadd.f32 %v10246_v52, %v13417_v18  ;;  %v15189_v62 = vld [vmem:[#allocation34_spill] sm:$0xff] }
 0x473   :  { %v4811_v35 = vmax.f32 %v4699_v47, 0.0  ;;  %v4701_v51 = vadd.f32 %v10247_v50, %v13421_v39 }
 0x474   :  { %v4874_v23 = vmax.f32 %v4806_v6, %v4810_v5  ;;  %v4812_v58 = vmax.f32 %v4700_v28, 0.0 }
 0x475   :  { %v4875_v42 = vmax.f32 %v4807_v2, %v4811_v35  ;;  %v4813_v29 = vmax.f32 %v4701_v51, 0.0  ;;  %v3488_v54 = vpop.f32.mrb[96].mxu0 }
 0x476   :  { %v4876_v24 = vmax.f32 %v4808_v53, %v4812_v58  ;;  %v10248_v48 = vadd.f32 %v13449_v4, %v3488_v54  ;;  %v3490_v1 = vpop.f32.mrb[97].mxu0 }
 0x477   :  { %v4877_v27 = vmax.f32 %v4809_v0, %v4813_v29  ;;  %v10249_v31 = vadd.f32 %v13452_v21, %v3490_v1  ;;  %v3492_v15 = vpop.f32.mrb[98].mxu0 }
 0x478   :  { %v10250_v49 = vadd.f32 %v13455_v36, %v3492_v15  ;;  %v3494_v63 = vpop.f32.mrb[99].mxu0  ;;  %v13674_v7 = vpack.c.bf16 %v4876_v24, %v4874_v23  ;;  %v4702_v25 = vadd.f32 %v10248_v48, %v13417_v18 }
 0x479   :  { %v10251_v10 = vadd.f32 %v13458_v45, %v3494_v63  ;;  %v13677_v17 = vpack.c.bf16 %v4877_v27, %v4875_v42  ;;  %v4703_v40 = vadd.f32 %v10249_v31, %v13421_v39 }
 0x47a   :  { %v4704_v36 = vadd.f32 %v10250_v49, %v13417_v18 }
 0x47b   :  { %v4705_v52 = vadd.f32 %v10251_v10, %v13421_v39  ;;  %v4815_v6 = vmax.f32 %v4703_v40, 0.0  ;;  %v15190_v40 = vld [vmem:[#allocation37_spill] sm:$0xff] }
 0x47c   :  { %v4816_v2 = vmax.f32 %v4704_v36, 0.0  ;;  %v15191_v36 = vld [vmem:[#allocation38_spill] sm:$0xff] }
 0x47d   :  { %v3498_v13 = vpop.f32.mrb[100].mxu0  ;;  %v4817_v53 = vmax.f32 %v4705_v52, 0.0 }
 0x47e   :  { %v10252_v57 = vadd.f32 %v13473_v16, %v3498_v13  ;;  %v3500_v4 = vpop.f32.mrb[101].mxu0  ;;  %v4814_v16 = vmax.f32 %v4702_v25, 0.0 }
 0x47f   :  { %v10253_v21 = vadd.f32 %v15188_v34, %v3500_v4  ;;  %v3502_v22 = vpop.f32.mrb[102].mxu0 }
 0x480   :  { %v4706_v11 = vadd.f32 %v10252_v57, %v13417_v18  ;;  %v10254_v26 = vadd.f32 %v15189_v62, %v3502_v22  ;;  %v3504_v45 = vpop.f32.mrb[103].mxu0 }
 0x481   :  { %v4707_v19 = vadd.f32 %v10253_v21, %v13421_v39  ;;  %v10255_v56 = vadd.f32 %v13487_v60, %v3504_v45 }
 0x482   :  { %v4818_v47 = vmax.f32 %v4706_v11, 0.0  ;;  %v4708_v50 = vadd.f32 %v10254_v26, %v13417_v18 }
 0x483   :  { %v4819_v5 = vmax.f32 %v4707_v19, 0.0  ;;  %v4709_v28 = vadd.f32 %v10255_v56, %v13421_v39 }
 0x484   :  { %v4878_v35 = vmax.f32 %v4814_v16, %v4818_v47  ;;  %v4820_v51 = vmax.f32 %v4708_v50, 0.0 }
 0x485   :  { %v4879_v23 = vmax.f32 %v4815_v6, %v4819_v5  ;;  %v4821_v58 = vmax.f32 %v4709_v28, 0.0  ;;  %v3508_v0 = vpop.f32.mrb[104].mxu0 }
 0x486   :  { %v4880_v42 = vmax.f32 %v4816_v2, %v4820_v51  ;;  %v10256_v29 = vadd.f32 %v13491_v33, %v3508_v0  ;;  %v3510_v54 = vpop.f32.mrb[105].mxu0 }
 0x487   :  { %v4881_v60 = vmax.f32 %v4817_v53, %v4821_v58  ;;  %v10257_v24 = vadd.f32 %v13494_v38, %v3510_v54  ;;  %v3512_v48 = vpop.f32.mrb[106].mxu0 }
 0x488   :  { %v10258_v1 = vadd.f32 %v13503_v41, %v3512_v48  ;;  %v3514_v27 = vpop.f32.mrb[107].mxu0  ;;  %v13694_v31 = vpack.c.bf16 %v4880_v42, %v4878_v35  ;;  %v4710_v10 = vadd.f32 %v10256_v29, %v13417_v18  ;;  %v11264_v42 = vld [vmem:[%s15046_s4 + $0x104] ss:$8 sps:$4 sm:$0xff]  }
 0x489   :  { %v10259_v15 = vadd.f32 %v13506_v14, %v3514_v27  ;;  %v13697_v49 = vpack.c.bf16 %v4881_v60, %v4879_v23  ;;  %v4711_v25 = vadd.f32 %v10257_v24, %v13421_v39  ;;  %5560 = vmatprep.subr.bf16.mxu1 %v11264_v42 }
 0x48a   :  { %v4712_v41 = vadd.f32 %v10258_v1, %v13417_v18 }
 0x48b   :  { %v4713_v21 = vadd.f32 %v10259_v15, %v13421_v39  ;;  %v4823_v45 = vmax.f32 %v4711_v25, 0.0 }
 0x48c   :  { %v4824_v19 = vmax.f32 %v4712_v41, 0.0 }
 0x48d   :  { %v3518_v63 = vpop.f32.mrb[108].mxu0  ;;  %v4825_v47 = vmax.f32 %v4713_v21, 0.0 }
 0x48e   :  { %v10260_v13 = vadd.f32 %v13513_v20, %v3518_v63  ;;  %v3520_v33 = vpop.f32.mrb[109].mxu0  ;;  %v4822_v20 = vmax.f32 %v4710_v10, 0.0 }
 0x48f   :  { %v10261_v38 = vadd.f32 %v13517_v59, %v3520_v33  ;;  %v3522_v57 = vpop.f32.mrb[110].mxu0 }
 0x490   :  { %v4714_v4 = vadd.f32 %v10260_v13, %v13417_v18  ;;  %v10262_v34 = vadd.f32 %v15190_v40, %v3522_v57  ;;  %v3524_v14 = vpop.f32.mrb[111].mxu0 }
 0x491   :  { %v4715_v22 = vadd.f32 %v10261_v38, %v13421_v39  ;;  %v10263_v11 = vadd.f32 %v15191_v36, %v3524_v14 }
 0x492   :  { %v4826_v62 = vmax.f32 %v4714_v4, 0.0  ;;  %v4716_v26 = vadd.f32 %v10262_v34, %v13417_v18 }
 0x493   :  { %v4827_v59 = vmax.f32 %v4715_v22, 0.0  ;;  %v4717_v52 = vadd.f32 %v10263_v11, %v13421_v39 }
 0x494   :  { %v4882_v56 = vmax.f32 %v4822_v20, %v4826_v62  ;;  %v4828_v16 = vmax.f32 %v4716_v26, 0.0 }
 0x495   :  { %v4883_v50 = vmax.f32 %v4823_v45, %v4827_v59  ;;  %v4829_v6 = vmax.f32 %v4717_v52, 0.0  ;;  %v4203_v5 = vpop.f32.mrb[0].mxu0  ;;  %v11262_v59 = vld [vmem:[%s15046_s4 + $0x100] ss:$8 sps:$4 sm:$0xff]  }
 0x496   :  { %v4884_v28 = vmax.f32 %v4824_v19, %v4828_v16  ;;  %v4205_v2 = vpop.f32.mrb[1].mxu0  ;;  %v4606_v0 = vadd.f32 %v13417_v18, %v4203_v5  ;;  %v11267_v19 = vld [vmem:[%s15046_s4 + $0x114] ss:$8 sps:$4 sm:$0xff]   ;;  %v11268_v5 = vld [vmem:[%s15046_s4 + $0x120] ss:$8 sps:$4 sm:$0xff]  }
 0x497   :  { %v4885_v35 = vmax.f32 %v4825_v47, %v4829_v6  ;;  %v4207_v51 = vpop.f32.mrb[2].mxu0  ;;  %v4607_v29 = vadd.f32 %v13421_v39, %v4205_v2  ;;  %v11270_v47 = vld [vmem:[%s15046_s4 + $0x124] ss:$8 sps:$4 sm:$0xff]  }
 0x498   :  { %v4209_v53 = vpop.f32.mrb[3].mxu0  ;;  %v13711_v23 = vpack.c.bf16 %v4884_v28, %v4882_v56  ;;  %v4608_v60 = vadd.f32 %v13417_v18, %v4207_v51  ;;  %v4718_v63 = vmax.f32 %v4606_v0, 0.0  ;;  %v11265_v56 = vld [vmem:[%s15046_s4 + $0x110] ss:$8 sps:$4 sm:$0xff]   ;;  %v11273_v51 = vld [vmem:[%s15046_s4 + $0x134] ss:$8 sps:$4 sm:$0xff]  }
 0x499   :  { %v13713_v58 = vpack.c.bf16 %v4885_v35, %v4883_v50  ;;  %v4609_v1 = vadd.f32 %v13421_v39, %v4209_v53  ;;  %v4719_v25 = vmax.f32 %v4607_v29, 0.0 }
 0x49a   :  { %v4720_v41 = vmax.f32 %v4608_v60, 0.0 }
 0x49b   :  { %v4721_v34 = vmax.f32 %v4609_v1, 0.0 }
 0x49d   :  { %v4213_v54 = vpop.f32.mrb[4].mxu0 }
 0x49e   :  { %v4610_v24 = vadd.f32 %v13417_v18, %v4213_v54  ;;  %v4215_v48 = vpop.f32.mrb[5].mxu0 }
 0x49f   :  { %v4611_v27 = vadd.f32 %v13421_v39, %v4215_v48  ;;  %v4217_v15 = vpop.f32.mrb[6].mxu0 }
 0x4a0   :  { %v4722_v10 = vmax.f32 %v4610_v24, 0.0  ;;  %v4612_v13 = vadd.f32 %v13417_v18, %v4217_v15  ;;  %v4219_v33 = vpop.f32.mrb[7].mxu0  ;;  %v11271_v15 = vld [vmem:[%s15046_s4 + $0x130] ss:$8 sps:$4 sm:$0xff]  }
 0x4a1   :  { %v4723_v38 = vmax.f32 %v4611_v27, 0.0  ;;  %v4613_v57 = vadd.f32 %v13421_v39, %v4219_v33  ;;  %v11276_v33 = vld [vmem:[%s15046_s4 + $0x144] ss:$8 sps:$4 sm:$0xff]  }
 0x4a2   :  { %v4830_v4 = vmax.f32 %v4718_v63, %v4722_v10  ;;  %v4724_v40 = vmax.f32 %v4612_v13, 0.0 }
 0x4a3   :  { %v4831_v14 = vmax.f32 %v4719_v25, %v4723_v38  ;;  %v4725_v21 = vmax.f32 %v4613_v57, 0.0 }
 0x4a4   :  { %v4832_v22 = vmax.f32 %v4720_v41, %v4724_v40  ;;  %v15192_v41 = vld [vmem:[#allocation10_spill] sm:$0xff] }
 0x4a5   :  { %v4833_v36 = vmax.f32 %v4721_v34, %v4725_v21  ;;  %v4223_v11 = vpop.f32.mrb[8].mxu0  ;;  %v15193_v34 = vld [vmem:[#allocation12_spill] sm:$0xff] }
 0x4a6   :  { %v13726_v20 = vpack.c.bf16 %v4832_v22, %v4830_v4  ;;  %v4225_v62 = vpop.f32.mrb[9].mxu0  ;;  %v4614_v16 = vadd.f32 %v13417_v18, %v4223_v11  ;;  %v4626_v4 = vadd.f32 %v15192_v41, %v13417_v18  ;;  %v15194_v11 = vld [vmem:[#allocation14_spill] sm:$0xff]  ;;  %v11291_v41 = vld [vmem:[%s15046_s4 + $0x194] ss:$8 sps:$4 sm:$0xff]  }
 0x4a7   :  { %v4227_v26 = vpop.f32.mrb[10].mxu0  ;;  %v13728_v45 = vpack.c.bf16 %v4833_v36, %v4831_v14  ;;  %v4615_v50 = vadd.f32 %v13421_v39, %v4225_v62  ;;  %v4627_v14 = vadd.f32 %v15193_v34, %v13421_v39  ;;  %v11274_v36 = vld [vmem:[%s15046_s4 + $0x140] ss:$8 sps:$4 sm:$0xff]   ;;  %v4628_v62 = vadd.f32 %v15194_v11, %v13417_v18  ;;  %v11294_v34 = vld [vmem:[%s15046_s4 + $0x1a4] ss:$8 sps:$4 sm:$0xff]  }
 0x4a8   :  { %v4229_v52 = vpop.f32.mrb[11].mxu0  ;;  %v4616_v28 = vadd.f32 %v13417_v18, %v4227_v26  ;;  %v4726_v29 = vmax.f32 %v4614_v16, 0.0  ;;  %v15199_v11 = vld [vmem:[#allocation35_spill] sm:$0xff] }
 0x4a9   :  { %5138 = vmatprep.mubr.bf16.mxu1 %v13728_v45  ;;  %v4617_v53 = vadd.f32 %v13421_v39, %v4229_v52  ;;  %v4727_v48 = vmax.f32 %v4615_v50, 0.0 }
 0x4aa   :  { %5139 = vmatmul.mubr.bf16.vlgmr.msra.gmra.mrb[92].mxu1 %v13726_v20  ;;  %v4728_v63 = vmax.f32 %v4616_v28, 0.0 }
 0x4ab   :  { %5561 = vmatpush1.bf16.msra.mxu1 %v11262_v59  ;;  %v4729_v25 = vmax.f32 %v4617_v53, 0.0 }
 0x4ac   :  { %5562 = vmatprep.subr.bf16.mxu1 %v11267_v19  ;;  %v11279_v19 = vld [vmem:[%s15046_s4 + $0x154] ss:$8 sps:$4 sm:$0xff]  }
 0x4ad   :  { %v4233_v6 = vpop.f32.mrb[12].mxu0 }
 0x4ae   :  { %v4618_v2 = vadd.f32 %v13417_v18, %v4233_v6  ;;  %v4235_v35 = vpop.f32.mrb[13].mxu0 }
 0x4af   :  { %v4619_v0 = vadd.f32 %v13421_v39, %v4235_v35  ;;  %v4237_v42 = vpop.f32.mrb[14].mxu0  ;;  %5563 = vmatpush1.bf16.msra.mxu1 %v11265_v56  ;;  %v15195_v56 = vld [vmem:[#allocation16_spill] sm:$0xff] }
 0x4b0   :  { %v4730_v54 = vmax.f32 %v4618_v2, 0.0  ;;  %v4620_v60 = vadd.f32 %v13417_v18, %v4237_v42  ;;  %v4239_v24 = vpop.f32.mrb[15].mxu0  ;;  %5564 = vmatprep.subr.bf16.mxu1 %v11270_v47  ;;  %v4629_v16 = vadd.f32 %v15195_v56, %v13421_v39  ;;  %v11277_v42 = vld [vmem:[%s15046_s4 + $0x150] ss:$8 sps:$4 sm:$0xff]   ;;  %v11306_v56 = vld [vmem:[%s15046_s4 + $0x1e4] ss:$8 sps:$4 sm:$0xff]  }
 0x4b1   :  { %v4731_v1 = vmax.f32 %v4619_v0, 0.0  ;;  %v4621_v27 = vadd.f32 %v13421_v39, %v4239_v24 }
 0x4b2   :  { %v4834_v10 = vmax.f32 %v4726_v29, %v4730_v54  ;;  %v4732_v13 = vmax.f32 %v4620_v60, 0.0  ;;  %v4740_v29 = vmax.f32 %v4628_v62, 0.0  ;;  %v4741_v24 = vmax.f32 %v4629_v16, 0.0  ;;  %v11300_v62 = vld [vmem:[%s15046_s4 + $0x1c4] ss:$8 sps:$4 sm:$0xff]  }
 0x4b3   :  { %v4835_v38 = vmax.f32 %v4727_v48, %v4731_v1  ;;  %v4733_v57 = vmax.f32 %v4621_v27, 0.0  ;;  %5565 = vmatpush1.bf16.msra.mxu1 %v11268_v5  ;;  %v4738_v5 = vmax.f32 %v4626_v4, 0.0  ;;  %v11289_v4 = vld [vmem:[%s15046_s4 + $0x190] ss:$8 sps:$4 sm:$0xff]   ;;  %v11304_v16 = vld [vmem:[%s15046_s4 + $0x1e0] ss:$8 sps:$4 sm:$0xff]  }
 0x4b4   :  { %v4836_v40 = vmax.f32 %v4728_v63, %v4732_v13  ;;  %5566 = vmatprep.subr.bf16.mxu1 %v11273_v51  ;;  %v4739_v51 = vmax.f32 %v4627_v14, 0.0  ;;  %v15198_v14 = vld [vmem:[#allocation36_spill] sm:$0xff] }
 0x4b5   :  { %v4837_v21 = vmax.f32 %v4729_v25, %v4733_v57  ;;  %v4243_v22 = vpop.f32.mrb[16].mxu0  ;;  %v11288_v25 = vld [vmem:[%s15046_s4 + $0x184] ss:$8 sps:$4 sm:$0xff]   ;;  %v11286_v57 = vld [vmem:[%s15046_s4 + $0x180] ss:$8 sps:$4 sm:$0xff]  }
 0x4b6   :  { %v4622_v26 = vadd.f32 %v13417_v18, %v4243_v22  ;;  %v4245_v59 = vpop.f32.mrb[17].mxu0  ;;  %v13774_v52 = vpack.c.bf16 %v4836_v40, %v4834_v10  ;;  %v11285_v10 = vld [vmem:[%s15046_s4 + $0x174] ss:$8 sps:$4 sm:$0xff]   ;;  %v15197_v40 = vld [vmem:[#allocation31_spill] sm:$0xff] }
 0x4b7   :  { %v4623_v47 = vadd.f32 %v13421_v39, %v4245_v59  ;;  %v4247_v50 = vpop.f32.mrb[18].mxu0  ;;  %v13782_v6 = vpack.c.bf16 %v4837_v21, %v4835_v38  ;;  %5567 = vmatpush1.bf16.msra.mxu1 %v11271_v15  ;;  %v11280_v15 = vld [vmem:[%s15046_s4 + $0x160] ss:$8 sps:$4 sm:$0xff]   ;;  %v15196_v38 = vld [vmem:[#allocation32_spill] sm:$0xff] }
 0x4b8   :  { %v4734_v28 = vmax.f32 %v4622_v26, 0.0  ;;  %v4624_v2 = vadd.f32 %v13417_v18, %v4247_v50  ;;  %v4249_v35 = vpop.f32.mrb[19].mxu0  ;;  %5568 = vmatprep.subr.bf16.mxu1 %v11276_v33  ;;  %v11282_v18 = vld [vmem:[%s15046_s4 + $0x164] ss:$8 sps:$4 sm:$0xff]   ;;  %v11283_v33 = vld [vmem:[%s15046_s4 + $0x170] ss:$8 sps:$4 sm:$0xff]  }
 0x4b9   :  { %v4735_v53 = vmax.f32 %v4623_v47, 0.0  ;;  %v4625_v0 = vadd.f32 %v13421_v39, %v4249_v35  ;;  %5148 = vmatprep.mubr.bf16.mxu1 %v13782_v6  ;;  %v11292_v21 = vld [vmem:[%s15046_s4 + $0x1a0] ss:$8 sps:$4 sm:$0xff]   ;;  %v11297_v22 = vld [vmem:[%s15046_s4 + $0x1b4] ss:$8 sps:$4 sm:$0xff]  }
 0x4ba   :  { %v4838_v54 = vmax.f32 %v4734_v28, %v4738_v5  ;;  %v4736_v60 = vmax.f32 %v4624_v2, 0.0  ;;  %5149 = vmatmul.mubr.bf16.gmra.mrb[96].mxu1 %v13774_v52  ;;  %v11298_v26 = vld [vmem:[%s15046_s4 + $0x1c0] ss:$8 sps:$4 sm:$0xff]   ;;  %v11301_v59 = vld [vmem:[%s15046_s4 + $0x1d0] ss:$8 sps:$4 sm:$0xff]  }
 0x4bb   :  { %v4839_v48 = vmax.f32 %v4735_v53, %v4739_v51  ;;  %v4737_v1 = vmax.f32 %v4625_v0, 0.0  ;;  %5569 = vmatpush1.bf16.msra.mxu1 %v11274_v36  ;;  %v11295_v36 = vld [vmem:[%s15046_s4 + $0x1b0] ss:$8 sps:$4 sm:$0xff]   ;;  %v11309_v47 = vld [vmem:[%s15046_s4 + $0x1f4] ss:$8 sps:$4 sm:$0xff]  }
 0x4bc   :  { %v4840_v39 = vmax.f32 %v4736_v60, %v4740_v29  ;;  %5570 = vmatprep.subr.bf16.mxu1 %v11279_v19  ;;  %v11303_v19 = vld [vmem:[%s15046_s4 + $0x1d4] ss:$8 sps:$4 sm:$0xff]   ;;  %v11307_v50 = vld [vmem:[%s15046_s4 + $0x1f0] ss:$8 sps:$4 sm:$0xff]   ;;  %v11312_v5 = vld [vmem:[%s15046_s4 + $0x4] ss:$8 sps:$4 sm:$0xff]  }
 0x4bd   :  { %v4841_v27 = vmax.f32 %v4737_v1, %v4741_v24  ;;  %v11310_v1 = vld [vmem:[%s15046_s4] ss:$8 sps:$4 sm:$0xff]  }
 0x4be   :  { %v13797_v63 = vpack.c.bf16 %v4840_v39, %v4838_v54 }
 0x4bf   :  { %v13802_v13 = vpack.c.bf16 %v4841_v27, %v4839_v48  ;;  %5571 = vmatpush1.bf16.msra.mxu1 %v11277_v42  ;;  %v11315_v27 = vld [vmem:[%s15046_s4 + $0x14] ss:$8 sps:$4 sm:$0xff]  }
 0x4c0   :  { %5572 = vmatprep.subr.bf16.mxu1 %v11282_v18 }
 0x4c1   :  { %5158 = vmatprep.mubr.bf16.mxu1 %v13802_v13 }
 0x4c2   :  { %5159 = vmatmul.mubr.bf16.gmra.mrb[100].mxu1 %v13797_v63 }
 0x4c3   :  { %5168 = vmatprep.mubr.bf16.mxu1 %v15196_v38  ;;  %5573 = vmatpush1.bf16.msra.mxu1 %v11280_v15 }
 0x4c4   :  { %5574 = vmatprep.subr.bf16.mxu1 %v11285_v10 }
 0x4c7   :  { %5575 = vmatpush1.bf16.msra.mxu1 %v11283_v33 }
 0x4c8   :  { %5576 = vmatprep.subr.bf16.mxu1 %v11288_v25 }
 0x4ca   :  { %5169 = vmatmul.mubr.bf16.gmra.mrb[104].mxu1 %v15197_v40 }
 0x4cb   :  { %5178 = vmatprep.mubr.bf16.mxu1 %v15198_v14  ;;  %5577 = vmatpush1.bf16.msra.mxu1 %v11286_v57 }
 0x4cc   :  { %5578 = vmatprep.subr.bf16.mxu1 %v11291_v41 }
 0x4cf   :  { %5579 = vmatpush1.bf16.msra.mxu1 %v11289_v4 }
 0x4d0   :  { %5580 = vmatprep.subr.bf16.mxu1 %v11294_v34  ;;  %v11316_v34 = vld [vmem:[%s15046_s4 + $0x20] ss:$8 sps:$4 sm:$0xff]  }
 0x4d2   :  { %5179 = vmatmul.mubr.bf16.gmra.mrb[108].mxu1 %v15199_v11 }
 0x4d3   :  { %5188 = vmatprep.mubr.bf16.mxu1 %v13545_v32  ;;  %5581 = vmatpush1.bf16.msra.mxu1 %v11292_v21 }
 0x4d4   :  { %5582 = vmatprep.subr.bf16.mxu1 %v11297_v22  ;;  %v11321_v22 = vld [vmem:[%s15046_s4 + $0x34] ss:$8 sps:$4 sm:$0xff]  }
 0x4d7   :  { %5583 = vmatpush1.bf16.msra.mxu1 %v11295_v36 }
 0x4d8   :  { %5584 = vmatprep.subr.bf16.mxu1 %v11300_v62 }
 0x4da   :  { %5189 = vmatmul.mubr.bf16.gmra.mrb[112].mxu1 %v13542_v46 }
 0x4db   :  { %5198 = vmatprep.mubr.bf16.mxu1 %v13577_v12  ;;  %5585 = vmatpush1.bf16.msra.mxu1 %v11298_v26  ;;  %v11319_v26 = vld [vmem:[%s15046_s4 + $0x30] ss:$8 sps:$4 sm:$0xff]  }
 0x4dc   :  { %5586 = vmatprep.subr.bf16.mxu1 %v11303_v19  ;;  %v11324_v19 = vld [vmem:[%s15046_s4 + $0x44] ss:$8 sps:$4 sm:$0xff]  }
 0x4df   :  { %5587 = vmatpush1.bf16.msra.mxu1 %v11301_v59 }
 0x4e0   :  { %5588 = vmatprep.subr.bf16.mxu1 %v11306_v56 }
 0x4e2   :  { %5199 = vmatmul.mubr.bf16.gmra.mrb[116].mxu1 %v13574_v55 }
 0x4e3   :  { %5208 = vmatprep.mubr.bf16.mxu1 %v13597_v44  ;;  %5589 = vmatpush1.bf16.msra.mxu1 %v11304_v16 }
 0x4e4   :  { %5590 = vmatprep.subr.bf16.mxu1 %v11309_v47  ;;  %v11322_v47 = vld [vmem:[%s15046_s4 + $0x40] ss:$8 sps:$4 sm:$0xff]  }
 0x4e7   :  { %5591 = vmatpush1.bf16.msra.mxu1 %v11307_v50 }
 0x4e8   :  { %5853 = vmatprep.subr.bf16.mxu1 %v11312_v5  ;;  %v11327_v5 = vld [vmem:[%s15046_s4 + $0x54] ss:$8 sps:$4 sm:$0xff]  }
 0x4ea   :  { %5209 = vmatmul.mubr.bf16.gmra.mrb[120].mxu1 %v13594_v3 }
 0x4eb   :  { %5218 = vmatprep.mubr.bf16.mxu1 %v13617_v43 }
 0x4f2   :  { %5219 = vmatmul.mubr.bf16.gmra.mrb[124].mxu1 %v13614_v37 }
 0x4f3   :  { %5228 = vmatprep.mubr.bf16.mxu1 %v13637_v30 }
 0x4fa   :  { %5229 = vmatmul.mubr.bf16.gmra.mrb[128].mxu1 %v13634_v9 }
 0x4fb   :  { %5238 = vmatprep.mubr.bf16.mxu1 %v13657_v8 }
 0x502   :  { %5239 = vmatmul.mubr.bf16.gmra.mrb[132].mxu1 %v13654_v61 }
 0x503   :  { %5248 = vmatprep.mubr.bf16.mxu1 %v13677_v17 }
 0x50a   :  { %5249 = vmatmul.mubr.bf16.gmra.mrb[136].mxu1 %v13674_v7 }
 0x50b   :  { %5258 = vmatprep.mubr.bf16.mxu1 %v13697_v49 }
 0x512   :  { %5259 = vmatmul.mubr.bf16.gmra.mrb[140].mxu1 %v13694_v31 }
 0x513   :  { %5268 = vmatprep.mubr.bf16.mxu1 %v13713_v58 }
 0x51a   :  { %5269 = vmatmul.mubr.bf16.gmra.mrb[144].mxu1 %v13711_v23 }
 0x57d   :  { %v13882_v28 = vpop.f32.mrb[92].mxu1 }
 0x57e   :  { %v13884_v2 = vpop.f32.mrb[93].mxu1 }
 0x57f   :  { %v13886_v35 = vpop.f32.mrb[94].mxu1 }
 0x580   :  { %v5279_v51 = vpack.c.bf16 %v13886_v35, %v13882_v28  ;;  %v13890_v53 = vpop.f32.mrb[95].mxu1  ;;  %v11366_v35 = vld [vmem:[%s15046_s4 + $0x224] ss:$8 sps:$4 sm:$0xff]  }
 0x581   :  { %v5280_v0 = vpack.c.bf16 %v13890_v53, %v13884_v2 }
 0x582   :  { %v5307_v53 = vmax.bf16 %v5279_v51, %v13726_v20 }
 0x58d   :  { %v5150_v42 = vpop.f32.mrb[96].mxu1 }
 0x58e   :  { %v5152_v29 = vpop.f32.mrb[97].mxu1 }
 0x58f   :  { %v5154_v54 = vpop.f32.mrb[98].mxu1 }
 0x590   :  { %v5281_v60 = vpack.c.bf16 %v5154_v54, %v5150_v42  ;;  %v5156_v18 = vpop.f32.mrb[99].mxu1  ;;  %v11325_v54 = vld [vmem:[%s15046_s4 + $0x50] ss:$8 sps:$4 sm:$0xff]  }
 0x591   :  { %v5282_v24 = vpack.c.bf16 %v5156_v18, %v5152_v29  ;;  %v11330_v18 = vld [vmem:[%s15046_s4 + $0x64] ss:$8 sps:$4 sm:$0xff]  }
 0x592   :  { %v13901_v39 = vmax.bf16 %v5281_v60, %v13774_v52  ;;  %v11318_v52 = vld [vmem:[%s15046_s4 + $0x24] ss:$8 sps:$4 sm:$0xff]  }
 0x593   :  { %v13895_v48 = vmax.bf16 %v5282_v24, %v13782_v6  ;;  %v11313_v6 = vld [vmem:[%s15046_s4 + $0x10] ss:$8 sps:$4 sm:$0xff]  }
 0x595   :  { %v5160_v15 = vpop.f32.mrb[100].mxu1  ;;  %5592 = vmatprep.mubr.bf16.mxu1 %v13895_v48 }
 0x596   :  { %v5162_v10 = vpop.f32.mrb[101].mxu1  ;;  %5593 = vmatmul.mubr.bf16.vlgmr.msra.gmra.mrb[148].mxu1 %v13901_v39 }
 0x597   :  { %v5164_v33 = vpop.f32.mrb[102].mxu1  ;;  %5854 = vmatpush1.bf16.msra.mxu1 %v11310_v1 }
 0x598   :  { %v5283_v25 = vpack.c.bf16 %v5164_v33, %v5160_v15  ;;  %v5166_v57 = vpop.f32.mrb[103].mxu1  ;;  %5855 = vmatprep.subr.bf16.mxu1 %v11315_v27  ;;  %v11328_v27 = vld [vmem:[%s15046_s4 + $0x60] ss:$8 sps:$4 sm:$0xff]  }
 0x599   :  { %v5284_v41 = vpack.c.bf16 %v5166_v57, %v5162_v10  ;;  %v11333_v10 = vld [vmem:[%s15046_s4 + $0x74] ss:$8 sps:$4 sm:$0xff]  }
 0x59a   :  { %v13921_v21 = vmax.bf16 %v5283_v25, %v13797_v63  ;;  %v11331_v25 = vld [vmem:[%s15046_s4 + $0x70] ss:$8 sps:$4 sm:$0xff]  }
 0x59b   :  { %v13915_v4 = vmax.bf16 %v5284_v41, %v13802_v13  ;;  %5856 = vmatpush1.bf16.msra.mxu1 %v11313_v6 }
 0x59c   :  { %5857 = vmatprep.subr.bf16.mxu1 %v11318_v52  ;;  %v11336_v52 = vld [vmem:[%s15046_s4 + $0x84] ss:$8 sps:$4 sm:$0xff]  }
 0x59d   :  { %v5170_v36 = vpop.f32.mrb[104].mxu1  ;;  %5602 = vmatprep.mubr.bf16.mxu1 %v13915_v4 }
 0x59e   :  { %v5172_v62 = vpop.f32.mrb[105].mxu1  ;;  %5603 = vmatmul.mubr.bf16.gmra.mrb[152].mxu1 %v13921_v21 }
 0x59f   :  { %v5174_v13 = vpop.f32.mrb[106].mxu1  ;;  %5858 = vmatpush1.bf16.msra.mxu1 %v11316_v34 }
 0x5a0   :  { %v5285_v59 = vpack.c.bf16 %v5174_v13, %v5170_v36  ;;  %v5176_v63 = vpop.f32.mrb[107].mxu1  ;;  %5859 = vmatprep.subr.bf16.mxu1 %v11321_v22  ;;  %v11334_v22 = vld [vmem:[%s15046_s4 + $0x80] ss:$8 sps:$4 sm:$0xff]  }
 0x5a1   :  { %v5286_v56 = vpack.c.bf16 %v5176_v63, %v5172_v62  ;;  %v11339_v62 = vld [vmem:[%s15046_s4 + $0x94] ss:$8 sps:$4 sm:$0xff]  }
 0x5a2   :  { %v13941_v50 = vmax.bf16 %v5285_v59, %v15197_v40  ;;  %v11337_v59 = vld [vmem:[%s15046_s4 + $0x90] ss:$8 sps:$4 sm:$0xff]  }
 0x5a3   :  { %v13935_v16 = vmax.bf16 %v5286_v56, %v15196_v38  ;;  %5860 = vmatpush1.bf16.msra.mxu1 %v11319_v26 }
 0x5a4   :  { %5861 = vmatprep.subr.bf16.mxu1 %v11324_v19  ;;  %v11342_v19 = vld [vmem:[%s15046_s4 + $0xa4] ss:$8 sps:$4 sm:$0xff]  }
 0x5a5   :  { %v5180_v42 = vpop.f32.mrb[108].mxu1  ;;  %5612 = vmatprep.mubr.bf16.mxu1 %v13935_v16 }
 0x5a6   :  { %v5182_v29 = vpop.f32.mrb[109].mxu1  ;;  %5613 = vmatmul.mubr.bf16.gmra.mrb[156].mxu1 %v13941_v50 }
 0x5a7   :  { %v5184_v38 = vpop.f32.mrb[110].mxu1  ;;  %5862 = vmatpush1.bf16.msra.mxu1 %v11322_v47 }
 0x5a8   :  { %v5287_v60 = vpack.c.bf16 %v5184_v38, %v5180_v42  ;;  %v5186_v40 = vpop.f32.mrb[111].mxu1  ;;  %5863 = vmatprep.subr.bf16.mxu1 %v11327_v5  ;;  %v11340_v5 = vld [vmem:[%s15046_s4 + $0xa0] ss:$8 sps:$4 sm:$0xff]  }
 0x5a9   :  { %v5288_v24 = vpack.c.bf16 %v5186_v40, %v5182_v29  ;;  %v11345_v29 = vld [vmem:[%s15046_s4 + $0xb4] ss:$8 sps:$4 sm:$0xff]  }
 0x5aa   :  { %v13961_v15 = vmax.bf16 %v5287_v60, %v15199_v11  ;;  %v11343_v60 = vld [vmem:[%s15046_s4 + $0xb0] ss:$8 sps:$4 sm:$0xff]  }
 0x5ab   :  { %v13955_v1 = vmax.bf16 %v5288_v24, %v15198_v14  ;;  %5864 = vmatpush1.bf16.msra.mxu1 %v11325_v54 }
 0x5ac   :  { %5865 = vmatprep.subr.bf16.mxu1 %v11330_v18  ;;  %v11348_v18 = vld [vmem:[%s15046_s4 + $0xc4] ss:$8 sps:$4 sm:$0xff]  }
 0x5ad   :  { %v5190_v33 = vpop.f32.mrb[112].mxu1  ;;  %5622 = vmatprep.mubr.bf16.mxu1 %v13955_v1 }
 0x5ae   :  { %v5192_v6 = vpop.f32.mrb[113].mxu1  ;;  %5623 = vmatmul.mubr.bf16.gmra.mrb[160].mxu1 %v13961_v15 }
 0x5af   :  { %v5194_v14 = vpop.f32.mrb[114].mxu1  ;;  %5866 = vmatpush1.bf16.msra.mxu1 %v11328_v27 }
 0x5b0   :  { %v5289_v57 = vpack.c.bf16 %v5194_v14, %v5190_v33  ;;  %v5196_v11 = vpop.f32.mrb[115].mxu1  ;;  %5867 = vmatprep.subr.bf16.mxu1 %v11333_v10  ;;  %v11346_v10 = vld [vmem:[%s15046_s4 + $0xc0] ss:$8 sps:$4 sm:$0xff]  }
 0x5b1   :  { %v5290_v41 = vpack.c.bf16 %v5196_v11, %v5192_v6  ;;  %v11351_v6 = vld [vmem:[%s15046_s4 + $0xd4] ss:$8 sps:$4 sm:$0xff]  }
 0x5b2   :  { %v13981_v36 = vmax.bf16 %v5289_v57, %v13542_v46  ;;  %v11349_v57 = vld [vmem:[%s15046_s4 + $0xd0] ss:$8 sps:$4 sm:$0xff]  }
 0x5b3   :  { %v13975_v34 = vmax.bf16 %v5290_v41, %v13545_v32  ;;  %5868 = vmatpush1.bf16.msra.mxu1 %v11331_v25 }
 0x5b4   :  { %5869 = vmatprep.subr.bf16.mxu1 %v11336_v52  ;;  %v11354_v52 = vld [vmem:[%s15046_s4 + $0xe4] ss:$8 sps:$4 sm:$0xff]  }
 0x5b5   :  { %v5200_v13 = vpop.f32.mrb[116].mxu1  ;;  %5632 = vmatprep.mubr.bf16.mxu1 %v13975_v34 }
 0x5b6   :  { %v5202_v26 = vpop.f32.mrb[117].mxu1  ;;  %5633 = vmatmul.mubr.bf16.gmra.mrb[164].mxu1 %v13981_v36 }
 0x5b7   :  { %v5204_v32 = vpop.f32.mrb[118].mxu1  ;;  %5870 = vmatpush1.bf16.msra.mxu1 %v11334_v22 }
 0x5b8   :  { %v5291_v63 = vpack.c.bf16 %v5204_v32, %v5200_v13  ;;  %v5206_v46 = vpop.f32.mrb[119].mxu1  ;;  %5871 = vmatprep.subr.bf16.mxu1 %v11339_v62  ;;  %v11352_v62 = vld [vmem:[%s15046_s4 + $0xe0] ss:$8 sps:$4 sm:$0xff]  }
 0x5b9   :  { %v5292_v56 = vpack.c.bf16 %v5206_v46, %v5202_v26  ;;  %v11357_v26 = vld [vmem:[%s15046_s4 + $0xf4] ss:$8 sps:$4 sm:$0xff]  }
 0x5ba   :  { %v14001_v42 = vmax.bf16 %v5291_v63, %v13574_v55  ;;  %v11355_v63 = vld [vmem:[%s15046_s4 + $0xf0] ss:$8 sps:$4 sm:$0xff]  }
 0x5bb   :  { %v13995_v47 = vmax.bf16 %v5292_v56, %v13577_v12  ;;  %5872 = vmatpush1.bf16.msra.mxu1 %v11337_v59 }
 0x5bc   :  { %5873 = vmatprep.subr.bf16.mxu1 %v11342_v19  ;;  %v11360_v19 = vld [vmem:[%s15046_s4 + $0x204] ss:$8 sps:$4 sm:$0xff]  }
 0x5bd   :  { %v5210_v38 = vpop.f32.mrb[120].mxu1  ;;  %5642 = vmatprep.mubr.bf16.mxu1 %v13995_v47 }
 0x5be   :  { %v5212_v54 = vpop.f32.mrb[121].mxu1  ;;  %5643 = vmatmul.mubr.bf16.gmra.mrb[168].mxu1 %v14001_v42 }
 0x5bf   :  { %v5214_v12 = vpop.f32.mrb[122].mxu1  ;;  %5874 = vmatpush1.bf16.msra.mxu1 %v11340_v5 }
 0x5c0   :  { %v5293_v40 = vpack.c.bf16 %v5214_v12, %v5210_v38  ;;  %v5216_v55 = vpop.f32.mrb[123].mxu1  ;;  %5875 = vmatprep.subr.bf16.mxu1 %v11345_v29 }
 0x5c1   :  { %v5294_v24 = vpack.c.bf16 %v5216_v55, %v5212_v54 }
 0x5c2   :  { %v14021_v33 = vmax.bf16 %v5293_v40, %v13594_v3 }
 0x5c3   :  { %v14015_v27 = vmax.bf16 %v5294_v24, %v13597_v44  ;;  %5876 = vmatpush1.bf16.msra.mxu1 %v11343_v60 }
 0x5c4   :  { %5877 = vmatprep.subr.bf16.mxu1 %v11348_v18 }
 0x5c5   :  { %v5220_v14 = vpop.f32.mrb[124].mxu1  ;;  %5652 = vmatprep.mubr.bf16.mxu1 %v14015_v27 }
 0x5c6   :  { %v5222_v25 = vpop.f32.mrb[125].mxu1  ;;  %5653 = vmatmul.mubr.bf16.gmra.mrb[172].mxu1 %v14021_v33 }
 0x5c7   :  { %v5224_v44 = vpop.f32.mrb[126].mxu1  ;;  %5878 = vmatpush1.bf16.msra.mxu1 %v11346_v10 }
 0x5c8   :  { %v5295_v11 = vpack.c.bf16 %v5224_v44, %v5220_v14  ;;  %v5226_v3 = vpop.f32.mrb[127].mxu1  ;;  %5879 = vmatprep.subr.bf16.mxu1 %v11351_v6 }
 0x5c9   :  { %v5296_v41 = vpack.c.bf16 %v5226_v3, %v5222_v25 }
 0x5ca   :  { %v14041_v13 = vmax.bf16 %v5295_v11, %v13614_v37  ;;  %v11369_v11 = vld [vmem:[%s15046_s4 + $0x234] ss:$8 sps:$4 sm:$0xff]  }
 0x5cb   :  { %v14035_v22 = vmax.bf16 %v5296_v41, %v13617_v43  ;;  %5880 = vmatpush1.bf16.msra.mxu1 %v11349_v57  ;;  %v11361_v57 = vld [vmem:[%s15046_s4 + $0x210] ss:$8 sps:$4 sm:$0xff]  }
 0x5cc   :  { %5881 = vmatprep.subr.bf16.mxu1 %v11354_v52 }
 0x5cd   :  { %v5230_v32 = vpop.f32.mrb[128].mxu1  ;;  %5662 = vmatprep.mubr.bf16.mxu1 %v14035_v22 }
 0x5ce   :  { %v5232_v59 = vpop.f32.mrb[129].mxu1  ;;  %5663 = vmatmul.mubr.bf16.gmra.mrb[176].mxu1 %v14041_v13 }
 0x5cf   :  { %v5234_v43 = vpop.f32.mrb[130].mxu1  ;;  %5882 = vmatpush1.bf16.msra.mxu1 %v11352_v62  ;;  %v11367_v62 = vld [vmem:[%s15046_s4 + $0x230] ss:$8 sps:$4 sm:$0xff]  }
 0x5d0   :  { %v5297_v46 = vpack.c.bf16 %v5234_v43, %v5230_v32  ;;  %v5236_v37 = vpop.f32.mrb[131].mxu1  ;;  %5883 = vmatprep.subr.bf16.mxu1 %v11357_v26  ;;  %v11370_v43 = vld [vmem:[%s15046_s4 + $0x240] ss:$8 sps:$4 sm:$0xff]  }
 0x5d1   :  { %v5298_v56 = vpack.c.bf16 %v5236_v37, %v5232_v59  ;;  %v11372_v59 = vld [vmem:[%s15046_s4 + $0x244] ss:$8 sps:$4 sm:$0xff]  }
 0x5d2   :  { %v14058_v29 = vmax.bf16 %v5297_v46, %v13634_v9  ;;  %v5308_v9 = vmax.bf16 %v5280_v0, %v13728_v45  ;;  %v11358_v45 = vld [vmem:[%s15046_s4 + $0x200] ss:$8 sps:$4 sm:$0xff]   ;;  %v11363_v0 = vld [vmem:[%s15046_s4 + $0x214] ss:$8 sps:$4 sm:$0xff]   ;;  %v11373_v46 = vld [vmem:[%s15046_s4 + $0x250] ss:$8 sps:$4 sm:$0xff]  }
 0x5d3   :  { %v14055_v5 = vmax.bf16 %v5298_v56, %v13637_v30  ;;  %5884 = vmatpush1.bf16.msra.mxu1 %v11355_v63  ;;  %v11375_v63 = vld [vmem:[%s15046_s4 + $0x254] ss:$8 sps:$4 sm:$0xff]   ;;  %v11378_v37 = vld [vmem:[%s15046_s4 + $0x264] ss:$8 sps:$4 sm:$0xff]  }
 0x5d4   :  { %6179 = vmatprep.subr.bf16.mxu1 %v11360_v19  ;;  %v11376_v19 = vld [vmem:[%s15046_s4 + $0x260] ss:$8 sps:$4 sm:$0xff]   ;;  %v11381_v56 = vld [vmem:[%s15046_s4 + $0x274] ss:$8 sps:$4 sm:$0xff]  }
 0x5d5   :  { %v5240_v38 = vpop.f32.mrb[132].mxu1  ;;  %5672 = vmatprep.mubr.bf16.mxu1 %v14055_v5 }
 0x5d6   :  { %v5242_v54 = vpop.f32.mrb[133].mxu1  ;;  %5673 = vmatmul.mubr.bf16.gmra.mrb[180].mxu1 %v14058_v29 }
 0x5d7   :  { %v5244_v12 = vpop.f32.mrb[134].mxu1 }
 0x5d8   :  { %v5299_v60 = vpack.c.bf16 %v5244_v12, %v5240_v38  ;;  %v5246_v40 = vpop.f32.mrb[135].mxu1  ;;  %v11379_v38 = vld [vmem:[%s15046_s4 + $0x270] ss:$8 sps:$4 sm:$0xff]   ;;  %v11382_v12 = vld [vmem:[%s15046_s4 + $0x280] ss:$8 sps:$4 sm:$0xff]  }
 0x5d9   :  { %v5300_v55 = vpack.c.bf16 %v5246_v40, %v5242_v54  ;;  %v11384_v54 = vld [vmem:[%s15046_s4 + $0x284] ss:$8 sps:$4 sm:$0xff]   ;;  %v11385_v40 = vld [vmem:[%s15046_s4 + $0x290] ss:$8 sps:$4 sm:$0xff]  }
 0x5da   :  { %v14066_v30 = vmax.bf16 %v5299_v60, %v13654_v61  ;;  %v11387_v60 = vld [vmem:[%s15046_s4 + $0x294] ss:$8 sps:$4 sm:$0xff]  }
 0x5db   :  { %v14063_v18 = vmax.bf16 %v5300_v55, %v13657_v8  ;;  %v11390_v55 = vld [vmem:[%s15046_s4 + $0x2a4] ss:$8 sps:$4 sm:$0xff]  }
 0x5dd   :  { %v14072_v24 = vpop.f32.mrb[136].mxu1  ;;  %5682 = vmatprep.mubr.bf16.mxu1 %v14063_v18 }
 0x5de   :  { %v14075_v10 = vpop.f32.mrb[137].mxu1  ;;  %5683 = vmatmul.mubr.bf16.gmra.mrb[184].mxu1 %v14066_v30 }
 0x5df   :  { %v14078_v6 = vpop.f32.mrb[138].mxu1  ;;  %5885 = vmatprep.mubr.bf16.mxu1 %v5308_v9  ;;  %v11388_v9 = vld [vmem:[%s15046_s4 + $0x2a0] ss:$8 sps:$4 sm:$0xff]  }
 0x5e0   :  { %v5301_v61 = vpack.c.bf16 %v14078_v6, %v14072_v24  ;;  %v14082_v8 = vpop.f32.mrb[139].mxu1  ;;  %v11460_v24 = vld [vmem:[%s15046_s4 + $0x420] ss:$8 sps:$4 sm:$0xff]   ;;  %v11463_v6 = vld [vmem:[%s15046_s4 + $0x430] ss:$8 sps:$4 sm:$0xff]  }
 0x5e1   :  { %v5302_v2 = vpack.c.bf16 %v14082_v8, %v14075_v10  ;;  %v11454_v10 = vld [vmem:[%s15046_s4 + $0x400] ss:$8 sps:$4 sm:$0xff]  }
 0x5e2   :  { %v11466_v8 = vld [vmem:[%s15046_s4 + $0x440] ss:$8 sps:$4 sm:$0xff]  }
 0x5e5   :  { %v14096_v14 = vpop.f32.mrb[140].mxu1 }
 0x5e6   :  { %v14098_v25 = vpop.f32.mrb[141].mxu1  ;;  %5886 = vmatmul.mubr.bf16.vlgmr.msra.gmra.mrb[148].mxu1 %v5307_v53  ;;  %v11391_v53 = vld [vmem:[%s15046_s4 + $0x2b0] ss:$8 sps:$4 sm:$0xff]  }
 0x5e7   :  { %v14100_v44 = vpop.f32.mrb[142].mxu1  ;;  %5895 = vmatprep.mubr.bf16.mxu1 %v13895_v48  ;;  %6180 = vmatpush1.bf16.msra.mxu1 %v11358_v45  ;;  %v11364_v48 = vld [vmem:[%s15046_s4 + $0x220] ss:$8 sps:$4 sm:$0xff]   ;;  %v11393_v45 = vld [vmem:[%s15046_s4 + $0x2b4] ss:$8 sps:$4 sm:$0xff]  }
 0x5e8   :  { %v5303_v20 = vpack.c.bf16 %v14100_v44, %v14096_v14  ;;  %v14108_v28 = vpop.f32.mrb[143].mxu1  ;;  %6181 = vmatprep.subr.bf16.mxu1 %v11363_v0  ;;  %v11396_v0 = vld [vmem:[%s15046_s4 + $0x2c4] ss:$8 sps:$4 sm:$0xff]   ;;  %v11514_v44 = vld [vmem:[%s15047_s5 + $0x40] ss:$8 sps:$4 sm:$0xff]  }
 0x5e9   :  { %v5304_v51 = vpack.c.bf16 %v14108_v28, %v14098_v25  ;;  %v11507_v25 = vld [vmem:[%s15047_s5 + $0x14] ss:$8 sps:$4 sm:$0xff]   ;;  %v11516_v14 = vld [vmem:[%s15047_s5 + $0x44] ss:$8 sps:$4 sm:$0xff]   ;;  %v11520_v28 = vld [vmem:[%s15047_s5 + $0x60] ss:$8 sps:$4 sm:$0xff]  }
 0x5eb   :  { %6182 = vmatpush1.bf16.msra.mxu1 %v11361_v57  ;;  %v11394_v57 = vld [vmem:[%s15046_s4 + $0x2c0] ss:$8 sps:$4 sm:$0xff]  }
 0x5ec   :  { %6183 = vmatprep.subr.bf16.mxu1 %v11366_v35  ;;  %v11399_v35 = vld [vmem:[%s15046_s4 + $0x2d4] ss:$8 sps:$4 sm:$0xff]  }
 0x5ed   :  { %v14121_v3 = vpop.f32.mrb[144].mxu1 }
 0x5ee   :  { %v14123_v52 = vpop.f32.mrb[145].mxu1  ;;  %5896 = vmatmul.mubr.bf16.gmra.mrb[152].mxu1 %v13901_v39 }
 0x5ef   :  { %v14126_v41 = vpop.f32.mrb[146].mxu1  ;;  %5905 = vmatprep.mubr.bf16.mxu1 %v13915_v4  ;;  %6184 = vmatpush1.bf16.msra.mxu1 %v11364_v48  ;;  %v11397_v48 = vld [vmem:[%s15046_s4 + $0x2d0] ss:$8 sps:$4 sm:$0xff]  }
 0x5f0   :  { %v5305_v26 = vpack.c.bf16 %v14126_v41, %v14121_v3  ;;  %v14134_v32 = vpop.f32.mrb[147].mxu1  ;;  %6185 = vmatprep.subr.bf16.mxu1 %v11369_v11  ;;  %v11402_v11 = vld [vmem:[%s15046_s4 + $0x2e4] ss:$8 sps:$4 sm:$0xff]   ;;  %v11541_v3 = vld [vmem:[%s15047_s5 + $0xd0] ss:$8 sps:$4 sm:$0xff]  }
 0x5f1   :  { %v5306_v39 = vpack.c.bf16 %v14134_v32, %v14123_v52  ;;  %v11546_v52 = vld [vmem:[%s15047_s5 + $0xe4] ss:$8 sps:$4 sm:$0xff]   ;;  %v11544_v41 = vld [vmem:[%s15047_s5 + $0xe0] ss:$8 sps:$4 sm:$0xff]   ;;  %v11547_v32 = vld [vmem:[%s15047_s5 + $0xf0] ss:$8 sps:$4 sm:$0xff]  }
 0x5f3   :  { %6186 = vmatpush1.bf16.msra.mxu1 %v11367_v62  ;;  %v11400_v62 = vld [vmem:[%s15046_s4 + $0x2e0] ss:$8 sps:$4 sm:$0xff]  }
 0x5f4   :  { %6187 = vmatprep.subr.bf16.mxu1 %v11372_v59  ;;  %v11405_v59 = vld [vmem:[%s15046_s4 + $0x2f4] ss:$8 sps:$4 sm:$0xff]  }
 0x5f6   :  { %5906 = vmatmul.mubr.bf16.gmra.mrb[156].mxu1 %v13921_v21 }
 0x5f7   :  { %5915 = vmatprep.mubr.bf16.mxu1 %v13935_v16  ;;  %6188 = vmatpush1.bf16.msra.mxu1 %v11370_v43  ;;  %v11403_v43 = vld [vmem:[%s15046_s4 + $0x2f0] ss:$8 sps:$4 sm:$0xff]  }
 0x5f8   :  { %6189 = vmatprep.subr.bf16.mxu1 %v11375_v63  ;;  %v11408_v63 = vld [vmem:[%s15046_s4 + $0x304] ss:$8 sps:$4 sm:$0xff]  }
 0x5fb   :  { %6190 = vmatpush1.bf16.msra.mxu1 %v11373_v46  ;;  %v11406_v46 = vld [vmem:[%s15046_s4 + $0x300] ss:$8 sps:$4 sm:$0xff]  }
 0x5fc   :  { %6191 = vmatprep.subr.bf16.mxu1 %v11378_v37  ;;  %v11411_v37 = vld [vmem:[%s15046_s4 + $0x314] ss:$8 sps:$4 sm:$0xff]  }
 0x5fe   :  { %5916 = vmatmul.mubr.bf16.gmra.mrb[160].mxu1 %v13941_v50 }
 0x5ff   :  { %5925 = vmatprep.mubr.bf16.mxu1 %v13955_v1  ;;  %6192 = vmatpush1.bf16.msra.mxu1 %v11376_v19  ;;  %v11409_v19 = vld [vmem:[%s15046_s4 + $0x310] ss:$8 sps:$4 sm:$0xff]  }
 0x600   :  { %6193 = vmatprep.subr.bf16.mxu1 %v11381_v56  ;;  %v11412_v56 = vld [vmem:[%s15046_s4 + $0x320] ss:$8 sps:$4 sm:$0xff]  }
 0x603   :  { %6194 = vmatpush1.bf16.msra.mxu1 %v11379_v38  ;;  %v11415_v38 = vld [vmem:[%s15046_s4 + $0x330] ss:$8 sps:$4 sm:$0xff]  }
 0x604   :  { %6195 = vmatprep.subr.bf16.mxu1 %v11384_v54  ;;  %v11420_v54 = vld [vmem:[%s15046_s4 + $0x344] ss:$8 sps:$4 sm:$0xff]  }
 0x606   :  { %5926 = vmatmul.mubr.bf16.gmra.mrb[164].mxu1 %v13961_v15 }
 0x607   :  { %5935 = vmatprep.mubr.bf16.mxu1 %v13975_v34  ;;  %6196 = vmatpush1.bf16.msra.mxu1 %v11382_v12  ;;  %v11418_v12 = vld [vmem:[%s15046_s4 + $0x340] ss:$8 sps:$4 sm:$0xff]  }
 0x608   :  { %6197 = vmatprep.subr.bf16.mxu1 %v11387_v60  ;;  %v11423_v60 = vld [vmem:[%s15046_s4 + $0x354] ss:$8 sps:$4 sm:$0xff]  }
 0x60b   :  { %6198 = vmatpush1.bf16.msra.mxu1 %v11385_v40  ;;  %v11421_v40 = vld [vmem:[%s15046_s4 + $0x350] ss:$8 sps:$4 sm:$0xff]  }
 0x60c   :  { %6199 = vmatprep.subr.bf16.mxu1 %v11390_v55  ;;  %v11426_v55 = vld [vmem:[%s15046_s4 + $0x364] ss:$8 sps:$4 sm:$0xff]  }
 0x60e   :  { %5936 = vmatmul.mubr.bf16.gmra.mrb[168].mxu1 %v13981_v36 }
 0x60f   :  { %5945 = vmatprep.mubr.bf16.mxu1 %v13995_v47  ;;  %6200 = vmatpush1.bf16.msra.mxu1 %v11388_v9  ;;  %v11424_v9 = vld [vmem:[%s15046_s4 + $0x360] ss:$8 sps:$4 sm:$0xff]  }
 0x610   :  { %6201 = vmatprep.subr.bf16.mxu1 %v11393_v45  ;;  %v11429_v45 = vld [vmem:[%s15046_s4 + $0x374] ss:$8 sps:$4 sm:$0xff]  }
 0x613   :  { %6202 = vmatpush1.bf16.msra.mxu1 %v11391_v53  ;;  %v11427_v53 = vld [vmem:[%s15046_s4 + $0x370] ss:$8 sps:$4 sm:$0xff]  }
 0x614   :  { %6203 = vmatprep.subr.bf16.mxu1 %v11396_v0  ;;  %v11432_v0 = vld [vmem:[%s15046_s4 + $0x384] ss:$8 sps:$4 sm:$0xff]  }
 0x616   :  { %5946 = vmatmul.mubr.bf16.gmra.mrb[172].mxu1 %v14001_v42 }
 0x617   :  { %5955 = vmatprep.mubr.bf16.mxu1 %v14015_v27  ;;  %6204 = vmatpush1.bf16.msra.mxu1 %v11394_v57  ;;  %v11430_v57 = vld [vmem:[%s15046_s4 + $0x380] ss:$8 sps:$4 sm:$0xff]  }
 0x618   :  { %6205 = vmatprep.subr.bf16.mxu1 %v11399_v35  ;;  %v11435_v35 = vld [vmem:[%s15046_s4 + $0x394] ss:$8 sps:$4 sm:$0xff]  }
 0x61b   :  { %6206 = vmatpush1.bf16.msra.mxu1 %v11397_v48  ;;  %v11433_v48 = vld [vmem:[%s15046_s4 + $0x390] ss:$8 sps:$4 sm:$0xff]  }
 0x61c   :  { %6207 = vmatprep.subr.bf16.mxu1 %v11402_v11  ;;  %v11438_v11 = vld [vmem:[%s15046_s4 + $0x3a4] ss:$8 sps:$4 sm:$0xff]  }
 0x61e   :  { %5956 = vmatmul.mubr.bf16.gmra.mrb[176].mxu1 %v14021_v33 }
 0x61f   :  { %5965 = vmatprep.mubr.bf16.mxu1 %v14035_v22  ;;  %6208 = vmatpush1.bf16.msra.mxu1 %v11400_v62  ;;  %v11436_v62 = vld [vmem:[%s15046_s4 + $0x3a0] ss:$8 sps:$4 sm:$0xff]  }
 0x620   :  { %6209 = vmatprep.subr.bf16.mxu1 %v11405_v59  ;;  %v11441_v59 = vld [vmem:[%s15046_s4 + $0x3b4] ss:$8 sps:$4 sm:$0xff]  }
 0x623   :  { %6210 = vmatpush1.bf16.msra.mxu1 %v11403_v43  ;;  %v11439_v43 = vld [vmem:[%s15046_s4 + $0x3b0] ss:$8 sps:$4 sm:$0xff]  }
 0x624   :  { %6545 = vmatprep.subr.bf16.mxu1 %v11408_v63  ;;  %v11444_v63 = vld [vmem:[%s15046_s4 + $0x3c4] ss:$8 sps:$4 sm:$0xff]  }
 0x626   :  { %5966 = vmatmul.mubr.bf16.gmra.mrb[180].mxu1 %v14041_v13 }
 0x627   :  { %5975 = vmatprep.mubr.bf16.mxu1 %v14055_v5 }
 0x62e   :  { %5976 = vmatmul.mubr.bf16.gmra.mrb[184].mxu1 %v14058_v29 }
 0x62f   :  { %6211 = vmatprep.mubr.bf16.mxu1 %v13915_v4  ;;  %v11414_v4 = vld [vmem:[%s15046_s4 + $0x324] ss:$8 sps:$4 sm:$0xff]  }
 0x636   :  { %6212 = vmatmul.mubr.bf16.vlgmr.msra.gmra.mrb[148].mxu1 %v13921_v21  ;;  %v11417_v21 = vld [vmem:[%s15046_s4 + $0x334] ss:$8 sps:$4 sm:$0xff]  }
 0x637   :  { %6221 = vmatprep.mubr.bf16.mxu1 %v13935_v16  ;;  %6546 = vmatpush1.bf16.msra.mxu1 %v11406_v46  ;;  %v11442_v46 = vld [vmem:[%s15046_s4 + $0x3c0] ss:$8 sps:$4 sm:$0xff]  }
 0x638   :  { %6547 = vmatprep.subr.bf16.mxu1 %v11411_v37  ;;  %v11447_v37 = vld [vmem:[%s15046_s4 + $0x3d4] ss:$8 sps:$4 sm:$0xff]  }
 0x63b   :  { %6548 = vmatpush1.bf16.msra.mxu1 %v11409_v19  ;;  %v11445_v19 = vld [vmem:[%s15046_s4 + $0x3d0] ss:$8 sps:$4 sm:$0xff]  }
 0x63c   :  { %6549 = vmatprep.subr.bf16.mxu1 %v11414_v4  ;;  %v11450_v4 = vld [vmem:[%s15046_s4 + $0x3e4] ss:$8 sps:$4 sm:$0xff]  }
 0x63e   :  { %6222 = vmatmul.mubr.bf16.gmra.mrb[152].mxu1 %v13941_v50 }
 0x63f   :  { %6231 = vmatprep.mubr.bf16.mxu1 %v13955_v1  ;;  %6550 = vmatpush1.bf16.msra.mxu1 %v11412_v56  ;;  %v11448_v56 = vld [vmem:[%s15046_s4 + $0x3e0] ss:$8 sps:$4 sm:$0xff]  }
 0x640   :  { %6551 = vmatprep.subr.bf16.mxu1 %v11417_v21  ;;  %v11453_v21 = vld [vmem:[%s15046_s4 + $0x3f4] ss:$8 sps:$4 sm:$0xff]  }
 0x643   :  { %6552 = vmatpush1.bf16.msra.mxu1 %v11415_v38  ;;  %v11451_v38 = vld [vmem:[%s15046_s4 + $0x3f0] ss:$8 sps:$4 sm:$0xff]  }
 0x644   :  { %6553 = vmatprep.subr.bf16.mxu1 %v11420_v54  ;;  %v11456_v54 = vld [vmem:[%s15046_s4 + $0x404] ss:$8 sps:$4 sm:$0xff]  }
 0x646   :  { %6232 = vmatmul.mubr.bf16.gmra.mrb[156].mxu1 %v13961_v15 }
 0x647   :  { %6241 = vmatprep.mubr.bf16.mxu1 %v13975_v34  ;;  %6554 = vmatpush1.bf16.msra.mxu1 %v11418_v12  ;;  %v14345_v12 = vmax.bf16 %v5302_v2, %v13677_v17  ;;  %v11459_v17 = vld [vmem:[%s15046_s4 + $0x414] ss:$8 sps:$4 sm:$0xff]  }
 0x648   :  { %6555 = vmatprep.subr.bf16.mxu1 %v11423_v60  ;;  %v14353_v60 = vmax.bf16 %v5301_v61, %v13674_v7  ;;  %v11457_v7 = vld [vmem:[%s15046_s4 + $0x410] ss:$8 sps:$4 sm:$0xff]   ;;  %v11468_v61 = vld [vmem:[%s15046_s4 + $0x444] ss:$8 sps:$4 sm:$0xff]   ;;  %v11471_v2 = vld [vmem:[%s15046_s4 + $0x454] ss:$8 sps:$4 sm:$0xff]  }
 0x64b   :  { %6556 = vmatpush1.bf16.msra.mxu1 %v11421_v40  ;;  %v11469_v40 = vld [vmem:[%s15046_s4 + $0x450] ss:$8 sps:$4 sm:$0xff]  }
 0x64c   :  { %6557 = vmatprep.subr.bf16.mxu1 %v11426_v55  ;;  %v11474_v55 = vld [vmem:[%s15046_s4 + $0x464] ss:$8 sps:$4 sm:$0xff]  }
 0x64e   :  { %6242 = vmatmul.mubr.bf16.gmra.mrb[160].mxu1 %v13981_v36 }
 0x64f   :  { %6251 = vmatprep.mubr.bf16.mxu1 %v13995_v47  ;;  %6558 = vmatpush1.bf16.msra.mxu1 %v11424_v9  ;;  %v11472_v9 = vld [vmem:[%s15046_s4 + $0x460] ss:$8 sps:$4 sm:$0xff]  }
 0x650   :  { %6559 = vmatprep.subr.bf16.mxu1 %v11429_v45  ;;  %v11477_v45 = vld [vmem:[%s15046_s4 + $0x474] ss:$8 sps:$4 sm:$0xff]  }
 0x653   :  { %6560 = vmatpush1.bf16.msra.mxu1 %v11427_v53  ;;  %v11475_v53 = vld [vmem:[%s15046_s4 + $0x470] ss:$8 sps:$4 sm:$0xff]  }
 0x654   :  { %6561 = vmatprep.subr.bf16.mxu1 %v11432_v0  ;;  %v11480_v0 = vld [vmem:[%s15046_s4 + $0x484] ss:$8 sps:$4 sm:$0xff]  }
 0x656   :  { %6252 = vmatmul.mubr.bf16.gmra.mrb[164].mxu1 %v14001_v42 }
 0x657   :  { %6261 = vmatprep.mubr.bf16.mxu1 %v14015_v27  ;;  %6562 = vmatpush1.bf16.msra.mxu1 %v11430_v57  ;;  %v11478_v57 = vld [vmem:[%s15046_s4 + $0x480] ss:$8 sps:$4 sm:$0xff]  }
 0x658   :  { %6563 = vmatprep.subr.bf16.mxu1 %v11435_v35  ;;  %v11483_v35 = vld [vmem:[%s15046_s4 + $0x494] ss:$8 sps:$4 sm:$0xff]  }
 0x65b   :  { %6564 = vmatpush1.bf16.msra.mxu1 %v11433_v48  ;;  %v11481_v48 = vld [vmem:[%s15046_s4 + $0x490] ss:$8 sps:$4 sm:$0xff]  }
 0x65c   :  { %6565 = vmatprep.subr.bf16.mxu1 %v11438_v11  ;;  %v11486_v11 = vld [vmem:[%s15046_s4 + $0x4a4] ss:$8 sps:$4 sm:$0xff]  }
 0x65e   :  { %6262 = vmatmul.mubr.bf16.gmra.mrb[168].mxu1 %v14021_v33 }
 0x65f   :  { %6271 = vmatprep.mubr.bf16.mxu1 %v14035_v22  ;;  %6566 = vmatpush1.bf16.msra.mxu1 %v11436_v62  ;;  %v11484_v62 = vld [vmem:[%s15046_s4 + $0x4a0] ss:$8 sps:$4 sm:$0xff]  }
 0x660   :  { %6567 = vmatprep.subr.bf16.mxu1 %v11441_v59  ;;  %v11489_v59 = vld [vmem:[%s15046_s4 + $0x4b4] ss:$8 sps:$4 sm:$0xff]  }
 0x663   :  { %6568 = vmatpush1.bf16.msra.mxu1 %v11439_v43  ;;  %v11487_v43 = vld [vmem:[%s15046_s4 + $0x4b0] ss:$8 sps:$4 sm:$0xff]  }
 0x664   :  { %6569 = vmatprep.subr.bf16.mxu1 %v11444_v63  ;;  %v11492_v63 = vld [vmem:[%s15046_s4 + $0x4c4] ss:$8 sps:$4 sm:$0xff]  }
 0x666   :  { %6272 = vmatmul.mubr.bf16.gmra.mrb[172].mxu1 %v14041_v13 }
 0x667   :  { %6281 = vmatprep.mubr.bf16.mxu1 %v14055_v5  ;;  %6570 = vmatpush1.bf16.msra.mxu1 %v11442_v46  ;;  %v11490_v46 = vld [vmem:[%s15046_s4 + $0x4c0] ss:$8 sps:$4 sm:$0xff]  }
 0x668   :  { %6571 = vmatprep.subr.bf16.mxu1 %v11447_v37  ;;  %v11495_v37 = vld [vmem:[%s15046_s4 + $0x4d4] ss:$8 sps:$4 sm:$0xff]  }
 0x66b   :  { %6572 = vmatpush1.bf16.msra.mxu1 %v11445_v19  ;;  %v11493_v19 = vld [vmem:[%s15046_s4 + $0x4d0] ss:$8 sps:$4 sm:$0xff]  }
 0x66c   :  { %6573 = vmatprep.subr.bf16.mxu1 %v11450_v4  ;;  %v11498_v4 = vld [vmem:[%s15046_s4 + $0x4e4] ss:$8 sps:$4 sm:$0xff]  }
 0x66e   :  { %6282 = vmatmul.mubr.bf16.gmra.mrb[176].mxu1 %v14058_v29 }
 0x66f   :  { %6291 = vmatprep.mubr.bf16.mxu1 %v14063_v18  ;;  %6574 = vmatpush1.bf16.msra.mxu1 %v11448_v56  ;;  %v11496_v56 = vld [vmem:[%s15046_s4 + $0x4e0] ss:$8 sps:$4 sm:$0xff]  }
 0x670   :  { %6575 = vmatprep.subr.bf16.mxu1 %v11453_v21  ;;  %v11501_v21 = vld [vmem:[%s15046_s4 + $0x4f4] ss:$8 sps:$4 sm:$0xff]  }
 0x673   :  { %6576 = vmatpush1.bf16.msra.mxu1 %v11451_v38  ;;  %v11499_v38 = vld [vmem:[%s15046_s4 + $0x4f0] ss:$8 sps:$4 sm:$0xff]  }
 0x674   :  { %6911 = vmatprep.subr.bf16.mxu1 %v11456_v54  ;;  %v11504_v54 = vld [vmem:[%s15047_s5 + $0x4] ss:$8 sps:$4 sm:$0xff]  }
 0x676   :  { %6292 = vmatmul.mubr.bf16.gmra.mrb[180].mxu1 %v14066_v30 }
 0x677   :  { %6301 = vmatprep.mubr.bf16.mxu1 %v14345_v12 }
 0x67e   :  { %6302 = vmatmul.mubr.bf16.gmra.mrb[184].mxu1 %v14353_v60 }
 0x67f   :  { %6577 = vmatprep.mubr.bf16.mxu1 %v13935_v16  ;;  %v11462_v16 = vld [vmem:[%s15046_s4 + $0x424] ss:$8 sps:$4 sm:$0xff]  }
 0x686   :  { %6578 = vmatmul.mubr.bf16.vlgmr.msra.gmra.mrb[148].mxu1 %v13941_v50  ;;  %v11465_v50 = vld [vmem:[%s15046_s4 + $0x434] ss:$8 sps:$4 sm:$0xff]  }
 0x687   :  { %6587 = vmatprep.mubr.bf16.mxu1 %v13955_v1  ;;  %6912 = vmatpush1.bf16.msra.mxu1 %v11454_v10  ;;  %v5332_v10 = vmax.bf16 %v5304_v51, %v13697_v49  ;;  %v11510_v49 = vld [vmem:[%s15047_s5 + $0x24] ss:$8 sps:$4 sm:$0xff]  }
 0x688   :  { %6913 = vmatprep.subr.bf16.mxu1 %v11459_v17  ;;  %v5331_v17 = vmax.bf16 %v5303_v20, %v13694_v31  ;;  %v11505_v31 = vld [vmem:[%s15047_s5 + $0x10] ss:$8 sps:$4 sm:$0xff]   ;;  %v11522_v20 = vld [vmem:[%s15047_s5 + $0x64] ss:$8 sps:$4 sm:$0xff]  }
 0x689   :  { %v11528_v51 = vld [vmem:[%s15047_s5 + $0x84] ss:$8 sps:$4 sm:$0xff]  }
 0x68b   :  { %6914 = vmatpush1.bf16.msra.mxu1 %v11457_v7  ;;  %v11502_v7 = vld [vmem:[%s15047_s5] ss:$8 sps:$4 sm:$0xff]  }
 0x68c   :  { %6915 = vmatprep.subr.bf16.mxu1 %v11462_v16  ;;  %v11526_v16 = vld [vmem:[%s15047_s5 + $0x80] ss:$8 sps:$4 sm:$0xff]  }
 0x68e   :  { %6588 = vmatmul.mubr.bf16.gmra.mrb[152].mxu1 %v13961_v15 }
 0x68f   :  { %6597 = vmatprep.mubr.bf16.mxu1 %v13975_v34  ;;  %6916 = vmatpush1.bf16.msra.mxu1 %v11460_v24  ;;  %v11534_v24 = vld [vmem:[%s15047_s5 + $0xa4] ss:$8 sps:$4 sm:$0xff]  }
 0x690   :  { %6917 = vmatprep.subr.bf16.mxu1 %v11465_v50  ;;  %v11532_v50 = vld [vmem:[%s15047_s5 + $0xa0] ss:$8 sps:$4 sm:$0xff]  }
 0x693   :  { %6918 = vmatpush1.bf16.msra.mxu1 %v11463_v6 }
 0x694   :  { %6919 = vmatprep.subr.bf16.mxu1 %v11468_v61  ;;  %v15200_v61 = vld [vmem:[#allocation23_spill] sm:$0xff] }
 0x696   :  { %6598 = vmatmul.mubr.bf16.gmra.mrb[156].mxu1 %v13981_v36 }
 0x697   :  { %6607 = vmatprep.mubr.bf16.mxu1 %v13995_v47  ;;  %6920 = vmatpush1.bf16.msra.mxu1 %v11466_v8  ;;  %v15201_v8 = vsub.s32 0, %v15200_v61 }
 0x698   :  { %6921 = vmatprep.subr.bf16.mxu1 %v11471_v2 }
 0x69b   :  { %6922 = vmatpush1.bf16.msra.mxu1 %v11469_v40 }
 0x69c   :  { %6923 = vmatprep.subr.bf16.mxu1 %v11474_v55 }
 0x69e   :  { %6608 = vmatmul.mubr.bf16.gmra.mrb[160].mxu1 %v14001_v42 }
 0x69f   :  { %6617 = vmatprep.mubr.bf16.mxu1 %v14015_v27  ;;  %6924 = vmatpush1.bf16.msra.mxu1 %v11472_v9  ;;  %v15202_v9 = vsub.s32 1, %v15200_v61 }
 0x6a0   :  { %6925 = vmatprep.subr.bf16.mxu1 %v11477_v45 }
 0x6a3   :  { %6926 = vmatpush1.bf16.msra.mxu1 %v11475_v53 }
 0x6a4   :  { %6927 = vmatprep.subr.bf16.mxu1 %v11480_v0 }
 0x6a6   :  { %6618 = vmatmul.mubr.bf16.gmra.mrb[164].mxu1 %v14021_v33 }
 0x6a7   :  { %6627 = vmatprep.mubr.bf16.mxu1 %v14035_v22  ;;  %6928 = vmatpush1.bf16.msra.mxu1 %v11478_v57 }
 0x6a8   :  { %6929 = vmatprep.subr.bf16.mxu1 %v11483_v35 }
 0x6ab   :  { %6930 = vmatpush1.bf16.msra.mxu1 %v11481_v48 }
 0x6ac   :  { %6931 = vmatprep.subr.bf16.mxu1 %v11486_v11 }
 0x6ae   :  { %6628 = vmatmul.mubr.bf16.gmra.mrb[168].mxu1 %v14041_v13 }
 0x6af   :  { %6637 = vmatprep.mubr.bf16.mxu1 %v14055_v5  ;;  %6932 = vmatpush1.bf16.msra.mxu1 %v11484_v62 }
 0x6b0   :  { %6933 = vmatprep.subr.bf16.mxu1 %v11489_v59 }
 0x6b3   :  { %6934 = vmatpush1.bf16.msra.mxu1 %v11487_v43 }
 0x6b4   :  { %6935 = vmatprep.subr.bf16.mxu1 %v11492_v63 }
 0x6b6   :  { %6638 = vmatmul.mubr.bf16.gmra.mrb[172].mxu1 %v14058_v29 }
 0x6b7   :  { %6647 = vmatprep.mubr.bf16.mxu1 %v14063_v18  ;;  %6936 = vmatpush1.bf16.msra.mxu1 %v11490_v46 }
 0x6b8   :  { %6937 = vmatprep.subr.bf16.mxu1 %v11495_v37 }
 0x6bb   :  { %6938 = vmatpush1.bf16.msra.mxu1 %v11493_v19 }
 0x6bc   :  { %6939 = vmatprep.subr.bf16.mxu1 %v11498_v4 }
 0x6be   :  { %6648 = vmatmul.mubr.bf16.gmra.mrb[176].mxu1 %v14066_v30 }
 0x6bf   :  { %6657 = vmatprep.mubr.bf16.mxu1 %v14345_v12  ;;  %6940 = vmatpush1.bf16.msra.mxu1 %v11496_v56 }
 0x6c0   :  { %6941 = vmatprep.subr.bf16.mxu1 %v11501_v21 }
 0x6c3   :  { %6942 = vmatpush1.bf16.msra.mxu1 %v11499_v38 }
 0x6c4   :  { %7398 = vmatprep.subr.bf16.mxu1 %v11504_v54 }
 0x6c6   :  { %6658 = vmatmul.mubr.bf16.gmra.mrb[180].mxu1 %v14353_v60 }
 0x6c7   :  { %6667 = vmatprep.mubr.bf16.mxu1 %v5332_v10 }
 0x6ce   :  { %6668 = vmatmul.mubr.bf16.gmra.mrb[184].mxu1 %v5331_v17 }
 0x6cf   :  { %6943 = vmatprep.mubr.bf16.mxu1 %v13955_v1  ;;  %v11508_v1 = vld [vmem:[%s15047_s5 + $0x20] ss:$8 sps:$4 sm:$0xff]  }
 0x6d6   :  { %6944 = vmatmul.mubr.bf16.vlgmr.msra.gmra.mrb[148].mxu1 %v13961_v15  ;;  %v11513_v15 = vld [vmem:[%s15047_s5 + $0x34] ss:$8 sps:$4 sm:$0xff]  }
 0x6d7   :  { %6953 = vmatprep.mubr.bf16.mxu1 %v13975_v34  ;;  %7399 = vmatpush1.bf16.msra.mxu1 %v11502_v7  ;;  %v11511_v34 = vld [vmem:[%s15047_s5 + $0x30] ss:$8 sps:$4 sm:$0xff]  }
 0x6d8   :  { %7400 = vmatprep.subr.bf16.mxu1 %v11507_v25 }
 0x6db   :  { %7401 = vmatpush1.bf16.msra.mxu1 %v11505_v31 }
 0x6dc   :  { %7402 = vmatprep.subr.bf16.mxu1 %v11510_v49 }
 0x6de   :  { %6954 = vmatmul.mubr.bf16.gmra.mrb[152].mxu1 %v13981_v36  ;;  %v11519_v36 = vld [vmem:[%s15047_s5 + $0x54] ss:$8 sps:$4 sm:$0xff]  }
 0x6df   :  { %6963 = vmatprep.mubr.bf16.mxu1 %v13995_v47  ;;  %7403 = vmatpush1.bf16.msra.mxu1 %v11508_v1  ;;  %v11517_v47 = vld [vmem:[%s15047_s5 + $0x50] ss:$8 sps:$4 sm:$0xff]  }
 0x6e0   :  { %7404 = vmatprep.subr.bf16.mxu1 %v11513_v15 }
 0x6e3   :  { %7405 = vmatpush1.bf16.msra.mxu1 %v11511_v34 }
 0x6e4   :  { %7406 = vmatprep.subr.bf16.mxu1 %v11516_v14 }
 0x6e6   :  { %6964 = vmatmul.mubr.bf16.gmra.mrb[156].mxu1 %v14001_v42  ;;  %v11525_v42 = vld [vmem:[%s15047_s5 + $0x74] ss:$8 sps:$4 sm:$0xff]  }
 0x6e7   :  { %6973 = vmatprep.mubr.bf16.mxu1 %v14015_v27  ;;  %7407 = vmatpush1.bf16.msra.mxu1 %v11514_v44  ;;  %v11523_v27 = vld [vmem:[%s15047_s5 + $0x70] ss:$8 sps:$4 sm:$0xff]  }
 0x6e8   :  { %7408 = vmatprep.subr.bf16.mxu1 %v11519_v36  ;;  %v11551_v36 = vld [vmem:[%s15048_s7 + $0x80] sm:$0xff]  }
 0x6eb   :  { %7409 = vmatpush1.bf16.msra.mxu1 %v11517_v47 }
 0x6ec   :  { %7410 = vmatprep.subr.bf16.mxu1 %v11522_v20  ;;  %v11552_v20 = vld [vmem:[%s15048_s7 + $0xc8] sm:$0xff]  }
 0x6ee   :  { %6974 = vmatmul.mubr.bf16.gmra.mrb[160].mxu1 %v14021_v33  ;;  %v11531_v33 = vld [vmem:[%s15047_s5 + $0x94] ss:$8 sps:$4 sm:$0xff]  }
 0x6ef   :  { %6983 = vmatprep.mubr.bf16.mxu1 %v14035_v22  ;;  %7411 = vmatpush1.bf16.msra.mxu1 %v11520_v28  ;;  %v11529_v22 = vld [vmem:[%s15047_s5 + $0x90] ss:$8 sps:$4 sm:$0xff]   ;;  %v11553_v28 = vld [vmem:[%s15048_s7 + $0x88] sm:$0xff]  }
 0x6f0   :  { %7412 = vmatprep.subr.bf16.mxu1 %v11525_v42 }
 0x6f3   :  { %7413 = vmatpush1.bf16.msra.mxu1 %v11523_v27  ;;  %v11554_v27 = vld [vmem:[%s15048_s7 + $0xd0] sm:$0xff]  }
 0x6f4   :  { %7414 = vmatprep.subr.bf16.mxu1 %v11528_v51 }
 0x6f6   :  { %6984 = vmatmul.mubr.bf16.gmra.mrb[164].mxu1 %v14041_v13  ;;  %v5334_v13 = vmax.bf16 %v5306_v39, %v13713_v58  ;;  %v11540_v58 = vld [vmem:[%s15047_s5 + $0xc4] ss:$8 sps:$4 sm:$0xff]  }
 0x6f7   :  { %6993 = vmatprep.mubr.bf16.mxu1 %v14055_v5  ;;  %7415 = vmatpush1.bf16.msra.mxu1 %v11526_v16  ;;  %v5333_v5 = vmax.bf16 %v5305_v26, %v13711_v23  ;;  %v11543_v23 = vld [vmem:[%s15047_s5 + $0xd4] ss:$8 sps:$4 sm:$0xff]   ;;  %v11550_v39 = vld [vmem:[%s15048_s7 + $0xc0] sm:$0xff]  }
 0x6f8   :  { %7416 = vmatprep.subr.bf16.mxu1 %v11531_v33  ;;  %v11549_v26 = vld [vmem:[%s15047_s5 + $0xf4] ss:$8 sps:$4 sm:$0xff]  }
 0x6fb   :  { %7417 = vmatpush1.bf16.msra.mxu1 %v11529_v22 }
 0x6fc   :  { %7418 = vmatprep.subr.bf16.mxu1 %v11534_v24 }
 0x6fe   :  { %6994 = vmatmul.mubr.bf16.gmra.mrb[168].mxu1 %v14058_v29  ;;  %v11537_v29 = vld [vmem:[%s15047_s5 + $0xb4] ss:$8 sps:$4 sm:$0xff]  }
 0x6ff   :  { %7003 = vmatprep.mubr.bf16.mxu1 %v14063_v18  ;;  %7419 = vmatpush1.bf16.msra.mxu1 %v11532_v50  ;;  %v11535_v18 = vld [vmem:[%s15047_s5 + $0xb0] ss:$8 sps:$4 sm:$0xff]  }
 0x700   :  { %7420 = vmatprep.subr.bf16.mxu1 %v11537_v29  ;;  %v11555_v29 = vld [vmem:[%s15048_s7 + $0x90] sm:$0xff]  }
 0x703   :  { %7421 = vmatpush1.bf16.msra.mxu1 %v11535_v18 }
 0x704   :  { %7422 = vmatprep.subr.bf16.mxu1 %v11540_v58 }
 0x706   :  { %7004 = vmatmul.mubr.bf16.gmra.mrb[172].mxu1 %v14066_v30  ;;  %v11538_v30 = vld [vmem:[%s15047_s5 + $0xc0] ss:$8 sps:$4 sm:$0xff]  }
 0x707   :  { %7013 = vmatprep.mubr.bf16.mxu1 %v14345_v12  ;;  %7423 = vmatpush1.bf16.msra.mxu1 %v11538_v30  ;;  %v7084_v12 = vld [vmem:[%s15049_s6] sm:$0x3] }
 0x708   :  { %7424 = vmatprep.subr.bf16.mxu1 %v11543_v23  ;;  %v14603_v2 = vrot.slane %v7084_v12, %v15201_v8  ;;  %v14607_v45 = vrot.slane %v7084_v12, %v15202_v9 }
 0x70b   :  { %7425 = vmatpush1.bf16.msra.mxu1 %v11541_v3 }
 0x70c   :  { %7426 = vmatprep.subr.bf16.mxu1 %v11546_v52 }
 0x70e   :  { %7014 = vmatmul.mubr.bf16.gmra.mrb[176].mxu1 %v14353_v60 }
 0x70f   :  { %7023 = vmatprep.mubr.bf16.mxu1 %v5332_v10  ;;  %7427 = vmatpush1.bf16.msra.mxu1 %v11544_v41 }
 0x710   :  { %7428 = vmatprep.subr.bf16.mxu1 %v11549_v26 }
 0x713   :  { %7429 = vmatpush1.bf16.msra.mxu1 %v11547_v32 }
 0x714   :  { %9972 = vmatprep.subr.bf16.mxu1 %v11550_v39 }
 0x716   :  { %7024 = vmatmul.mubr.bf16.gmra.mrb[180].mxu1 %v5331_v17 }
 0x717   :  { %7033 = vmatprep.mubr.bf16.mxu1 %v5334_v13 }
 0x71e   :  { %7034 = vmatmul.mubr.bf16.gmra.mrb[184].mxu1 %v5333_v5 }
 0x7a9   :  { %v6945_v60 = vpop.f32.mrb[148].mxu1 }
 0x7aa   :  { %v6947_v6 = vpop.f32.mrb[149].mxu1  ;;  %v7096_v53 = vadd.f32 %v14603_v2, %v6945_v60 }
 0x7ab   :  { %v6949_v40 = vpop.f32.mrb[150].mxu1  ;;  %v7097_v0 = vadd.f32 %v14607_v45, %v6947_v6 }
 0x7ac   :  { %v6951_v55 = vpop.f32.mrb[151].mxu1  ;;  %v7098_v35 = vadd.f32 %v14603_v2, %v6949_v40  ;;  %v7136_v62 = vmax.f32 %v7096_v53, 0.0 }
 0x7ad   :  { %v7099_v59 = vadd.f32 %v14607_v45, %v6951_v55  ;;  %v7137_v4 = vmax.f32 %v7097_v0, 0.0 }
 0x7ae   :  { %v7138_v38 = vmax.f32 %v7098_v35, 0.0 }
 0x7af   :  { %v7139_v17 = vmax.f32 %v7099_v59, 0.0 }
 0x7b1   :  { %v6955_v57 = vpop.f32.mrb[152].mxu1 }
 0x7b2   :  { %v7100_v48 = vadd.f32 %v14603_v2, %v6955_v57  ;;  %v6957_v11 = vpop.f32.mrb[153].mxu1 }
 0x7b3   :  { %v7101_v43 = vadd.f32 %v14607_v45, %v6957_v11  ;;  %v6959_v63 = vpop.f32.mrb[154].mxu1 }
 0x7b4   :  { %v7140_v46 = vmax.f32 %v7100_v48, 0.0  ;;  %v7102_v37 = vadd.f32 %v14603_v2, %v6959_v63  ;;  %v6961_v19 = vpop.f32.mrb[155].mxu1 }
 0x7b5   :  { %v7141_v56 = vmax.f32 %v7101_v43, 0.0  ;;  %v7103_v21 = vadd.f32 %v14607_v45, %v6961_v19 }
 0x7b6   :  { %v7176_v54 = vmax.f32 %v7136_v62, %v7140_v46  ;;  %v7142_v10 = vmax.f32 %v7102_v37, 0.0 }
 0x7b7   :  { %v7177_v7 = vmax.f32 %v7137_v4, %v7141_v56  ;;  %v7143_v25 = vmax.f32 %v7103_v21, 0.0 }
 0x7b8   :  { %v7178_v31 = vmax.f32 %v7138_v38, %v7142_v10 }
 0x7b9   :  { %v7179_v49 = vmax.f32 %v7139_v17, %v7143_v25  ;;  %v6965_v1 = vpop.f32.mrb[156].mxu1 }
 0x7ba   :  { %v14617_v15 = vpack.c.bf16 %v7178_v31, %v7176_v54  ;;  %v6967_v34 = vpop.f32.mrb[157].mxu1  ;;  %v7104_v42 = vadd.f32 %v14603_v2, %v6965_v1 }
 0x7bb   :  { %v6969_v14 = vpop.f32.mrb[158].mxu1  ;;  %v14619_v44 = vpack.c.bf16 %v7179_v49, %v7177_v7  ;;  %v7105_v51 = vadd.f32 %v14607_v45, %v6967_v34 }
 0x7bc   :  { %v6971_v47 = vpop.f32.mrb[159].mxu1  ;;  %v7106_v33 = vadd.f32 %v14603_v2, %v6969_v14  ;;  %v7144_v18 = vmax.f32 %v7104_v42, 0.0 }
 0x7bd   :  { %7430 = vmatprep.mubr.bf16.mxu1 %v14619_v44  ;;  %v7107_v50 = vadd.f32 %v14607_v45, %v6971_v47  ;;  %v7145_v3 = vmax.f32 %v7105_v51, 0.0 }
 0x7be   :  { %7431 = vmatmul.mubr.bf16.vlgmr.msra.gmra.mrb[188].mxu1 %v14617_v15  ;;  %v7146_v26 = vmax.f32 %v7106_v33, 0.0 }
 0x7bf   :  { %9973 = vmatpush3.bf16.msra.mxu1 %v11551_v36  ;;  %v7147_v12 = vmax.f32 %v7107_v50, 0.0 }
 0x7c0   :  { %9974 = vmatprep.subr.bf16.mxu1 %v11552_v20 }
 0x7c1   :  { %v6975_v16 = vpop.f32.mrb[160].mxu1 }
 0x7c2   :  { %v7108_v22 = vadd.f32 %v14603_v2, %v6975_v16  ;;  %v6977_v24 = vpop.f32.mrb[161].mxu1 }
 0x7c3   :  { %v7109_v13 = vadd.f32 %v14607_v45, %v6977_v24  ;;  %v6979_v5 = vpop.f32.mrb[162].mxu1  ;;  %9975 = vmatpush3.bf16.msra.mxu1 %v11553_v28 }
 0x7c4   :  { %v7148_v58 = vmax.f32 %v7108_v22, 0.0  ;;  %v7110_v30 = vadd.f32 %v14603_v2, %v6979_v5  ;;  %v6981_v23 = vpop.f32.mrb[163].mxu1  ;;  %9976 = vmatprep.subr.bf16.mxu1 %v11554_v27 }
 0x7c5   :  { %v7149_v52 = vmax.f32 %v7109_v13, 0.0  ;;  %v7111_v41 = vadd.f32 %v14607_v45, %v6981_v23 }
 0x7c6   :  { %v7180_v32 = vmax.f32 %v7144_v18, %v7148_v58  ;;  %v7150_v39 = vmax.f32 %v7110_v30, 0.0 }
 0x7c7   :  { %v7181_v60 = vmax.f32 %v7145_v3, %v7149_v52  ;;  %v7151_v6 = vmax.f32 %v7111_v41, 0.0  ;;  %9977 = vmatpush3.bf16.msra.mxu1 %v11555_v29 }
 0x7c8   :  { %v7182_v61 = vmax.f32 %v7146_v26, %v7150_v39 }
 0x7c9   :  { %v7183_v8 = vmax.f32 %v7147_v12, %v7151_v6  ;;  %v6985_v40 = vpop.f32.mrb[164].mxu1 }
 0x7ca   :  { %v6987_v55 = vpop.f32.mrb[165].mxu1  ;;  %v14646_v9 = vpack.c.bf16 %v7182_v61, %v7180_v32  ;;  %v7112_v35 = vadd.f32 %v14603_v2, %v6985_v40 }
 0x7cb   :  { %v6989_v53 = vpop.f32.mrb[166].mxu1  ;;  %v14648_v0 = vpack.c.bf16 %v7183_v8, %v7181_v60  ;;  %v7113_v48 = vadd.f32 %v14607_v45, %v6987_v55 }
 0x7cc   :  { %v6991_v57 = vpop.f32.mrb[167].mxu1  ;;  %v7114_v62 = vadd.f32 %v14603_v2, %v6989_v53  ;;  %v7152_v19 = vmax.f32 %v7112_v35, 0.0 }
 0x7cd   :  { %7440 = vmatprep.mubr.bf16.mxu1 %v14648_v0  ;;  %v7115_v63 = vadd.f32 %v14607_v45, %v6991_v57  ;;  %v7153_v38 = vmax.f32 %v7113_v48, 0.0 }
 0x7ce   :  { %7441 = vmatmul.mubr.bf16.gmra.mrb[192].mxu1 %v14646_v9  ;;  %v7154_v17 = vmax.f32 %v7114_v62, 0.0 }
 0x7cf   :  { %v7155_v31 = vmax.f32 %v7115_v63, 0.0 }
 0x7d1   :  { %v6995_v11 = vpop.f32.mrb[168].mxu1 }
 0x7d2   :  { %v7116_v59 = vadd.f32 %v14603_v2, %v6995_v11  ;;  %v6997_v43 = vpop.f32.mrb[169].mxu1 }
 0x7d3   :  { %v7117_v46 = vadd.f32 %v14607_v45, %v6997_v43  ;;  %v6999_v37 = vpop.f32.mrb[170].mxu1 }
 0x7d4   :  { %v7156_v4 = vmax.f32 %v7116_v59, 0.0  ;;  %v7118_v56 = vadd.f32 %v14603_v2, %v6999_v37  ;;  %v7001_v21 = vpop.f32.mrb[171].mxu1 }
 0x7d5   :  { %v7157_v54 = vmax.f32 %v7117_v46, 0.0  ;;  %v7119_v10 = vadd.f32 %v14607_v45, %v7001_v21 }
 0x7d6   :  { %v7184_v7 = vmax.f32 %v7152_v19, %v7156_v4  ;;  %v7158_v25 = vmax.f32 %v7118_v56, 0.0 }
 0x7d7   :  { %v7185_v49 = vmax.f32 %v7153_v38, %v7157_v54  ;;  %v7159_v1 = vmax.f32 %v7119_v10, 0.0 }
 0x7d8   :  { %v7186_v34 = vmax.f32 %v7154_v17, %v7158_v25 }
 0x7d9   :  { %v7187_v14 = vmax.f32 %v7155_v31, %v7159_v1  ;;  %v7005_v36 = vpop.f32.mrb[172].mxu1 }
 0x7da   :  { %v7007_v47 = vpop.f32.mrb[173].mxu1  ;;  %v14660_v20 = vpack.c.bf16 %v7186_v34, %v7184_v7  ;;  %v7120_v51 = vadd.f32 %v14603_v2, %v7005_v36 }
 0x7db   :  { %v7009_v28 = vpop.f32.mrb[174].mxu1  ;;  %v14662_v42 = vpack.c.bf16 %v7187_v14, %v7185_v49  ;;  %v7121_v16 = vadd.f32 %v14607_v45, %v7007_v47 }
 0x7dc   :  { %v7011_v27 = vpop.f32.mrb[175].mxu1  ;;  %v7122_v22 = vadd.f32 %v14603_v2, %v7009_v28  ;;  %v7160_v18 = vmax.f32 %v7120_v51, 0.0  ;;  %v11558_v51 = vld [vmem:[%s15048_s7 + $0xe0] sm:$0xff]  }
 0x7dd   :  { %7450 = vmatprep.mubr.bf16.mxu1 %v14662_v42  ;;  %v7123_v13 = vadd.f32 %v14607_v45, %v7011_v27  ;;  %v7161_v3 = vmax.f32 %v7121_v16, 0.0  ;;  %v11559_v16 = vld [vmem:[%s15048_s7 + $0xa0] sm:$0xff]  }
 0x7de   :  { %7451 = vmatmul.mubr.bf16.gmra.mrb[196].mxu1 %v14660_v20  ;;  %v7162_v26 = vmax.f32 %v7122_v22, 0.0  ;;  %v11561_v22 = vld [vmem:[%s15048_s7 + $0xa8] sm:$0xff]  }
 0x7df   :  { %v7163_v12 = vmax.f32 %v7123_v13, 0.0  ;;  %v11564_v13 = vld [vmem:[%s15048_s7 + $0xf8] sm:$0xff]  }
 0x7e1   :  { %v7015_v33 = vpop.f32.mrb[176].mxu1 }
 0x7e2   :  { %v7124_v24 = vadd.f32 %v14603_v2, %v7015_v33  ;;  %v7017_v50 = vpop.f32.mrb[177].mxu1  ;;  %v11560_v33 = vld [vmem:[%s15048_s7 + $0xe8] sm:$0xff]  }
 0x7e3   :  { %v7125_v5 = vadd.f32 %v14607_v45, %v7017_v50  ;;  %v7019_v29 = vpop.f32.mrb[178].mxu1  ;;  %v11563_v50 = vld [vmem:[%s15048_s7 + $0xb0] sm:$0xff]  }
 0x7e4   :  { %v7164_v58 = vmax.f32 %v7124_v24, 0.0  ;;  %v7126_v30 = vadd.f32 %v14603_v2, %v7019_v29  ;;  %v7021_v23 = vpop.f32.mrb[179].mxu1  ;;  %v11562_v24 = vld [vmem:[%s15048_s7 + $0xf0] sm:$0xff]   ;;  %v11566_v29 = vld [vmem:[%s15048_s7 + $0x40] sm:$0xff]  }
 0x7e5   :  { %v7165_v52 = vmax.f32 %v7125_v5, 0.0  ;;  %v7127_v41 = vadd.f32 %v14607_v45, %v7021_v23  ;;  %v11565_v5 = vld [vmem:[%s15048_s7 + $0xb8] sm:$0xff]  }
 0x7e6   :  { %v7188_v32 = vmax.f32 %v7160_v18, %v7164_v58  ;;  %v7166_v39 = vmax.f32 %v7126_v30, 0.0 }
 0x7e7   :  { %v7189_v60 = vmax.f32 %v7161_v3, %v7165_v52  ;;  %v7167_v6 = vmax.f32 %v7127_v41, 0.0 }
 0x7e8   :  { %v7190_v61 = vmax.f32 %v7162_v26, %v7166_v39 }
 0x7e9   :  { %v7191_v8 = vmax.f32 %v7163_v12, %v7167_v6  ;;  %v7025_v40 = vpop.f32.mrb[180].mxu1 }
 0x7ea   :  { %v7128_v55 = vadd.f32 %v14603_v2, %v7025_v40  ;;  %v7027_v53 = vpop.f32.mrb[181].mxu1  ;;  %v14675_v57 = vpack.c.bf16 %v7190_v61, %v7188_v32  ;;  %v11567_v61 = vld [vmem:[%s15048_s7] sm:$0xff]   ;;  %v11568_v40 = vld [vmem:[%s15048_s7 + $0x48] sm:$0xff]  }
 0x7eb   :  { %v7129_v35 = vadd.f32 %v14607_v45, %v7027_v53  ;;  %v7029_v48 = vpop.f32.mrb[182].mxu1  ;;  %v14678_v11 = vpack.c.bf16 %v7191_v8, %v7189_v60  ;;  %v11570_v53 = vld [vmem:[%s15048_s7 + $0x50] sm:$0xff]  }
 0x7ec   :  { %v7130_v62 = vadd.f32 %v14603_v2, %v7029_v48  ;;  %v7031_v59 = vpop.f32.mrb[183].mxu1  ;;  %v7168_v56 = vmax.f32 %v7128_v55, 0.0 }
 0x7ed   :  { %v7131_v43 = vadd.f32 %v14607_v45, %v7031_v59  ;;  %7460 = vmatprep.mubr.bf16.mxu1 %v14678_v11  ;;  %v7169_v10 = vmax.f32 %v7129_v35, 0.0  ;;  %v11573_v59 = vld [vmem:[%s15048_s7 + $0x18] sm:$0xff]  }
 0x7ee   :  { %7461 = vmatmul.mubr.bf16.gmra.mrb[200].mxu1 %v14675_v57  ;;  %v7170_v25 = vmax.f32 %v7130_v62, 0.0 }
 0x7ef   :  { %v7171_v1 = vmax.f32 %v7131_v43, 0.0 }
 0x7f1   :  { %v7035_v63 = vpop.f32.mrb[184].mxu1 }
 0x7f2   :  { %v7132_v46 = vadd.f32 %v14603_v2, %v7035_v63  ;;  %v7037_v37 = vpop.f32.mrb[185].mxu1 }
 0x7f3   :  { %v7133_v19 = vadd.f32 %v14607_v45, %v7037_v37  ;;  %v7039_v4 = vpop.f32.mrb[186].mxu1 }
 0x7f4   :  { %v7172_v21 = vmax.f32 %v7132_v46, 0.0  ;;  %v7134_v38 = vadd.f32 %v14603_v2, %v7039_v4  ;;  %v7041_v54 = vpop.f32.mrb[187].mxu1  ;;  %v11556_v2 = vld [vmem:[%s15048_s7 + $0xd8] sm:$0xff]   ;;  %v11574_v46 = vld [vmem:[%s15048_s7 + $0x60] sm:$0xff]   ;;  %v11576_v4 = vld [vmem:[%s15048_s7 + $0x68] sm:$0xff]  }
 0x7f5   :  { %v7173_v17 = vmax.f32 %v7133_v19, 0.0  ;;  %v7135_v7 = vadd.f32 %v14607_v45, %v7041_v54  ;;  %v11557_v45 = vld [vmem:[%s15048_s7 + $0x98] sm:$0xff]   ;;  %9978 = vmatprep.subr.bf16.mxu1 %v11556_v2  ;;  %v11575_v19 = vld [vmem:[%s15048_s7 + $0x20] sm:$0xff]  }
 0x7f6   :  { %v7192_v31 = vmax.f32 %v7168_v56, %v7172_v21  ;;  %v7174_v49 = vmax.f32 %v7134_v38, 0.0  ;;  %9979 = vmatpush3.bf16.msra.mxu1 %v11557_v45  ;;  %v11577_v56 = vld [vmem:[%s15048_s7 + $0x28] sm:$0xff]   ;;  %v11578_v21 = vld [vmem:[%s15048_s7 + $0x70] sm:$0xff]   ;;  %v11580_v54 = vld [vmem:[%s15048_s7 + $0x78] sm:$0xff]  }
 0x7f7   :  { %v7193_v34 = vmax.f32 %v7169_v10, %v7173_v17  ;;  %v7175_v14 = vmax.f32 %v7135_v7, 0.0  ;;  %9980 = vmatprep.subr.bf16.mxu1 %v11558_v51  ;;  %v11579_v38 = vld [vmem:[%s15048_s7 + $0x30] sm:$0xff]   ;;  %v11585_v45 = vld [vmem:[%s15048_s7 + $0x108] sm:$0xff]  }
 0x7f8   :  { %v7194_v36 = vmax.f32 %v7170_v25, %v7174_v49  ;;  %v11581_v25 = vld [vmem:[%s15048_s7 + $0x38] sm:$0xff]   ;;  %v11586_v51 = vld [vmem:[%s15048_s7 + $0x150] sm:$0xff]  }
 0x7f9   :  { %v7195_v47 = vmax.f32 %v7171_v1, %v7175_v14  ;;  %v11582_v1 = vld [vmem:[%s15048_s7 + $0x140] sm:$0xff]  }
 0x7fa   :  { %v14688_v28 = vpack.c.bf16 %v7194_v36, %v7192_v31  ;;  %9981 = vmatpush3.bf16.msra.mxu1 %v11559_v16  ;;  %v11583_v14 = vld [vmem:[%s15048_s7 + $0x100] sm:$0xff]  }
 0x7fb   :  { %v14690_v27 = vpack.c.bf16 %v7195_v47, %v7193_v34  ;;  %9982 = vmatprep.subr.bf16.mxu1 %v11560_v33  ;;  %v11584_v47 = vld [vmem:[%s15048_s7 + $0x148] sm:$0xff]  }
 0x7fd   :  { %7470 = vmatprep.mubr.bf16.mxu1 %v14690_v27 }
 0x7fe   :  { %7471 = vmatmul.mubr.bf16.gmra.mrb[204].mxu1 %v14688_v28 }
 0x7ff   :  { %9983 = vmatpush3.bf16.msra.mxu1 %v11561_v22 }
 0x800   :  { %9984 = vmatprep.subr.bf16.mxu1 %v11562_v24  ;;  %v11589_v24 = vld [vmem:[%s15048_s7 + $0x118] sm:$0xff]  }
 0x803   :  { %9985 = vmatpush3.bf16.msra.mxu1 %v11563_v50 }
 0x804   :  { %9986 = vmatprep.subr.bf16.mxu1 %v11564_v13 }
 0x807   :  { %9987 = vmatpush3.bf16.msra.mxu1 %v11565_v5  ;;  %v11590_v5 = vld [vmem:[%s15048_s7 + $0x160] sm:$0xff]  }
 0x808   :  { %9994 = vmatprep.subr.bf16.mxu1 %v11566_v29 }
 0x891   :  { %v14727_v18 = vpop.f32.mrb[188].mxu1 }
 0x892   :  { %v7434_v58 = vpop.f32.mrb[189].mxu1 }
 0x893   :  { %v7436_v30 = vpop.f32.mrb[190].mxu1 }
 0x894   :  { %v7481_v23 = vpack.c.bf16 %v7436_v30, %v14727_v18  ;;  %v7438_v3 = vpop.f32.mrb[191].mxu1  ;;  %v11591_v18 = vld [vmem:[%s15048_s7 + $0x120] sm:$0xff]   ;;  %v11593_v30 = vld [vmem:[%s15048_s7 + $0x128] sm:$0xff]  }
 0x895   :  { %v7482_v52 = vpack.c.bf16 %v7438_v3, %v7434_v58  ;;  %v11592_v58 = vld [vmem:[%s15048_s7 + $0x168] sm:$0xff]   ;;  %v11595_v3 = vld [vmem:[%s15048_s7 + $0x130] sm:$0xff]  }
 0x896   :  { %v7491_v36 = vmax.bf16 %v7481_v23, %v14617_v15  ;;  %v11587_v15 = vld [vmem:[%s15048_s7 + $0x110] sm:$0xff]  }
 0x897   :  { %v7492_v55 = vmax.bf16 %v7482_v52, %v14619_v44  ;;  %v11572_v44 = vld [vmem:[%s15048_s7 + $0x58] sm:$0xff]   ;;  %v11594_v23 = vld [vmem:[%s15048_s7 + $0x170] sm:$0xff]  }
 0x898   :  { %v11596_v52 = vld [vmem:[%s15048_s7 + $0x178] sm:$0xff]  }
 0x8a1   :  { %v7442_v41 = vpop.f32.mrb[192].mxu1 }
 0x8a2   :  { %v7444_v26 = vpop.f32.mrb[193].mxu1 }
 0x8a3   :  { %v7446_v32 = vpop.f32.mrb[194].mxu1 }
 0x8a4   :  { %v7483_v39 = vpack.c.bf16 %v7446_v32, %v7442_v41  ;;  %v7448_v12 = vpop.f32.mrb[195].mxu1  ;;  %v11597_v41 = vld [vmem:[%s15048_s7 + $0x138] sm:$0xff]   ;;  %v11599_v32 = vld [vmem:[%s15048_s7 + $0x180] sm:$0xff]  }
 0x8a5   :  { %v7484_v60 = vpack.c.bf16 %v7448_v12, %v7444_v26  ;;  %v11598_v26 = vld [vmem:[%s15048_s7 + $0x1c0] sm:$0xff]   ;;  %v11600_v12 = vld [vmem:[%s15048_s7 + $0x1c8] sm:$0xff]  }
 0x8a6   :  { %v7493_v8 = vmax.bf16 %v7483_v39, %v14646_v9  ;;  %v11571_v9 = vld [vmem:[%s15048_s7 + $0x10] sm:$0xff]  }
 0x8a7   :  { %v7494_v6 = vmax.bf16 %v7484_v60, %v14648_v0  ;;  %v11569_v0 = vld [vmem:[%s15048_s7 + $0x8] sm:$0xff]  }
 0x8a9   :  { %7694 = vmatprep.mubr.bf16.mxu1 %v7494_v6  ;;  %v11601_v6 = vld [vmem:[%s15048_s7 + $0x188] sm:$0xff]  }
 0x8aa   :  { %7695 = vmatmul.mubr.bf16.vlgmr.msra.gmra.mrb[208].mxu1 %v7493_v8  ;;  %v11605_v8 = vld [vmem:[%s15048_s7 + $0x198] sm:$0xff]  }
 0x8ab   :  { %9995 = vmatpush3.bf16.msra.mxu1 %v11567_v61  ;;  %7831 = vmatprep.mubr.bf16.mxu1 %v7492_v55  ;;  %v11602_v61 = vld [vmem:[%s15048_s7 + $0x1d0] sm:$0xff]   ;;  %v11607_v55 = vld [vmem:[%s15048_s7 + $0x1a0] sm:$0xff]  }
 0x8ac   :  { %9996 = vmatprep.subr.bf16.mxu1 %v11568_v40  ;;  %v11606_v40 = vld [vmem:[%s15048_s7 + $0x1e0] sm:$0xff]  }
 0x8af   :  { %9997 = vmatpush3.bf16.msra.mxu1 %v11569_v0  ;;  %v11608_v0 = vld [vmem:[%s15048_s7 + $0x1e8] sm:$0xff]  }
 0x8b0   :  { %9998 = vmatprep.subr.bf16.mxu1 %v11570_v53  ;;  %v11609_v53 = vld [vmem:[%s15048_s7 + $0x1a8] sm:$0xff]  }
 0x8b1   :  { %v14751_v35 = vpop.f32.mrb[196].mxu1 }
 0x8b2   :  { %v7454_v48 = vpop.f32.mrb[197].mxu1 }
 0x8b3   :  { %9999 = vmatpush3.bf16.msra.mxu1 %v11571_v9  ;;  %v14753_v62 = vpop.f32.mrb[198].mxu1  ;;  %v11610_v9 = vld [vmem:[%s15048_s7 + $0x1f0] sm:$0xff]  }
 0x8b4   :  { %v7485_v43 = vpack.c.bf16 %v14753_v62, %v14751_v35  ;;  %v7458_v63 = vpop.f32.mrb[199].mxu1  ;;  %10000 = vmatprep.subr.bf16.mxu1 %v11572_v44  ;;  %v11611_v44 = vld [vmem:[%s15048_s7 + $0x1b0] sm:$0xff]   ;;  %v11612_v35 = vld [vmem:[%s15048_s7 + $0x1f8] sm:$0xff]   ;;  %v11614_v62 = vld [vmem:[%s15048_s7 + $0x240] sm:$0xff]  }
 0x8b5   :  { %v7486_v37 = vpack.c.bf16 %v7458_v63, %v7454_v48  ;;  %v11613_v48 = vld [vmem:[%s15048_s7 + $0x1b8] sm:$0xff]   ;;  %v11616_v63 = vld [vmem:[%s15048_s7 + $0x248] sm:$0xff]  }
 0x8b6   :  { %v7495_v39 = vmax.bf16 %v7485_v43, %v14660_v20  ;;  %v11603_v20 = vld [vmem:[%s15048_s7 + $0x190] sm:$0xff]  }
 0x8b7   :  { %10001 = vmatpush3.bf16.msra.mxu1 %v11573_v59  ;;  %v7496_v2 = vmax.bf16 %v7486_v37, %v14662_v42  ;;  %v11588_v42 = vld [vmem:[%s15048_s7 + $0x158] sm:$0xff]   ;;  %v11615_v59 = vld [vmem:[%s15048_s7 + $0x200] sm:$0xff]   ;;  %v11617_v37 = vld [vmem:[%s15048_s7 + $0x208] sm:$0xff]  }
 0x8b8   :  { %10002 = vmatprep.subr.bf16.mxu1 %v11574_v46 }
 0x8bb   :  { %10003 = vmatpush3.bf16.msra.mxu1 %v11575_v19  ;;  %v11618_v19 = vld [vmem:[%s15048_s7 + $0x250] sm:$0xff]  }
 0x8bc   :  { %10004 = vmatprep.subr.bf16.mxu1 %v11576_v4  ;;  %v11621_v4 = vld [vmem:[%s15048_s7 + $0x218] sm:$0xff]  }
 0x8bf   :  { %10005 = vmatpush3.bf16.msra.mxu1 %v11577_v56  ;;  %v11622_v56 = vld [vmem:[%s15048_s7 + $0x260] sm:$0xff]  }
 0x8c0   :  { %10006 = vmatprep.subr.bf16.mxu1 %v11578_v21  ;;  %v11623_v21 = vld [vmem:[%s15048_s7 + $0x220] sm:$0xff]  }
 0x8c1   :  { %v14781_v10 = vpop.f32.mrb[200].mxu1 }
 0x8c2   :  { %v7464_v17 = vpop.f32.mrb[201].mxu1 }
 0x8c3   :  { %10007 = vmatpush3.bf16.msra.mxu1 %v11579_v38  ;;  %v14783_v7 = vpop.f32.mrb[202].mxu1  ;;  %v11624_v38 = vld [vmem:[%s15048_s7 + $0x268] sm:$0xff]  }
 0x8c4   :  { %v7487_v31 = vpack.c.bf16 %v14783_v7, %v14781_v10  ;;  %v7468_v49 = vpop.f32.mrb[203].mxu1  ;;  %10008 = vmatprep.subr.bf16.mxu1 %v11580_v54  ;;  %v11625_v54 = vld [vmem:[%s15048_s7 + $0x228] sm:$0xff]   ;;  %v11626_v10 = vld [vmem:[%s15048_s7 + $0x270] sm:$0xff]   ;;  %v11628_v7 = vld [vmem:[%s15048_s7 + $0x278] sm:$0xff]  }
 0x8c5   :  { %v7488_v34 = vpack.c.bf16 %v7468_v49, %v7464_v17  ;;  %v11627_v17 = vld [vmem:[%s15048_s7 + $0x230] sm:$0xff]   ;;  %v11646_v49 = vmov 0.0  }
 0x8c6   :  { %v7497_v43 = vmax.bf16 %v7487_v31, %v14675_v57  ;;  %v11619_v57 = vld [vmem:[%s15048_s7 + $0x210] sm:$0xff]  }
 0x8c7   :  { %10009 = vmatpush3.bf16.msra.mxu1 %v11581_v25  ;;  %v7498_v60 = vmax.bf16 %v7488_v34, %v14678_v11  ;;  %v11604_v11 = vld [vmem:[%s15048_s7 + $0x1d8] sm:$0xff]   ;;  %v11631_v34 = vld [vmem:[%s15050_s9 + $0x8] sm:$0xff]  }
 0x8c8   :  { %10016 = vmatprep.subr.bf16.mxu1 %v11582_v1  ;;  %v11629_v25 = vld [vmem:[%s15048_s7 + $0x238] sm:$0xff]   ;;  %v11630_v1 = vld [vmem:[%s15050_s9] sm:$0xff]  }
 0x8ca   :  { %7832 = vmatmul.mubr.bf16.vlgmr.msra.gmra.mrb[212].mxu1 %v7491_v36  ;;  %v11634_v36 = vld [vmem:[%s15050_s9 + $0x20] sm:$0xff]  }
 0x8cb   :  { %10017 = vmatpush3.bf16.msra.mxu1 %v11583_v14  ;;  %8001 = vmatprep.mubr.bf16.mxu1 %v7496_v2  ;;  %v11632_v14 = vld [vmem:[%s15050_s9 + $0x10] sm:$0xff]  }
 0x8cc   :  { %10018 = vmatprep.subr.bf16.mxu1 %v11584_v47 }
 0x8cf   :  { %10019 = vmatpush3.bf16.msra.mxu1 %v11585_v45  ;;  %v11635_v45 = vld [vmem:[%s15050_s9 + $0x28] sm:$0xff]  }
 0x8d0   :  { %10020 = vmatprep.subr.bf16.mxu1 %v11586_v51 }
 0x8d1   :  { %v14813_v16 = vpop.f32.mrb[204].mxu1 }
 0x8d2   :  { %v14815_v33 = vpop.f32.mrb[205].mxu1 }
 0x8d3   :  { %10021 = vmatpush3.bf16.msra.mxu1 %v11587_v15  ;;  %v14817_v22 = vpop.f32.mrb[206].mxu1 }
 0x8d4   :  { %v7489_v50 = vpack.c.bf16 %v14817_v22, %v14813_v16  ;;  %v7478_v13 = vpop.f32.mrb[207].mxu1  ;;  %10022 = vmatprep.subr.bf16.mxu1 %v11588_v42  ;;  %v11637_v22 = vld [vmem:[%s15050_s9 + $0x38] sm:$0xff]  }
 0x8d5   :  { %v7490_v29 = vpack.c.bf16 %v7478_v13, %v14815_v33  ;;  %v11636_v33 = vld [vmem:[%s15050_s9 + $0x30] sm:$0xff]  }
 0x8d6   :  { %v7499_v31 = vmax.bf16 %v7489_v50, %v14688_v28  ;;  %v11633_v28 = vld [vmem:[%s15050_s9 + $0x18] sm:$0xff]  }
 0x8d7   :  { %10023 = vmatpush3.bf16.msra.mxu1 %v11589_v24  ;;  %v7500_v46 = vmax.bf16 %v7490_v29, %v14690_v27  ;;  %v11620_v27 = vld [vmem:[%s15048_s7 + $0x258] sm:$0xff]  }
 0x8d8   :  { %10024 = vmatprep.subr.bf16.mxu1 %v11590_v5 }
 0x8db   :  { %10025 = vmatpush3.bf16.msra.mxu1 %v11591_v18 }
 0x8dc   :  { %10026 = vmatprep.subr.bf16.mxu1 %v11592_v58 }
 0x8df   :  { %10027 = vmatpush3.bf16.msra.mxu1 %v11593_v30 }
 0x8e0   :  { %10028 = vmatprep.subr.bf16.mxu1 %v11594_v23 }
 0x8e3   :  { %10029 = vmatpush3.bf16.msra.mxu1 %v11595_v3 }
 0x8e4   :  { %10030 = vmatprep.subr.bf16.mxu1 %v11596_v52 }
 0x8e7   :  { %10031 = vmatpush3.bf16.msra.mxu1 %v11597_v41 }
 0x8e8   :  { %10038 = vmatprep.subr.bf16.mxu1 %v11598_v26 }
 0x8ea   :  { %8002 = vmatmul.mubr.bf16.vlgmr.msra.gmra.mrb[216].mxu1 %v7495_v39 }
 0x8eb   :  { %10039 = vmatpush3.bf16.msra.mxu1 %v11599_v32  ;;  %8173 = vmatprep.mubr.bf16.mxu1 %v7498_v60 }
 0x8ec   :  { %10040 = vmatprep.subr.bf16.mxu1 %v11600_v12 }
 0x8ef   :  { %10041 = vmatpush3.bf16.msra.mxu1 %v11601_v6 }
 0x8f0   :  { %10042 = vmatprep.subr.bf16.mxu1 %v11602_v61 }
 0x8f3   :  { %10043 = vmatpush3.bf16.msra.mxu1 %v11603_v20 }
 0x8f4   :  { %10044 = vmatprep.subr.bf16.mxu1 %v11604_v11 }
 0x8f7   :  { %10045 = vmatpush3.bf16.msra.mxu1 %v11605_v8 }
 0x8f8   :  { %10046 = vmatprep.subr.bf16.mxu1 %v11606_v40 }
 0x8fb   :  { %10047 = vmatpush3.bf16.msra.mxu1 %v11607_v55 }
 0x8fc   :  { %10048 = vmatprep.subr.bf16.mxu1 %v11608_v0 }
 0x8ff   :  { %10049 = vmatpush3.bf16.msra.mxu1 %v11609_v53 }
 0x900   :  { %10050 = vmatprep.subr.bf16.mxu1 %v11610_v9 }
 0x903   :  { %10051 = vmatpush3.bf16.msra.mxu1 %v11611_v44 }
 0x904   :  { %10052 = vmatprep.subr.bf16.mxu1 %v11612_v35  ;;  %v9953_v35 = vld [vmem:[%s15052_s8] ss:$0 sm:$0xff] }
 0x907   :  { %10053 = vmatpush3.bf16.msra.mxu1 %v11613_v48 }
 0x908   :  { %10060 = vmatprep.subr.bf16.mxu1 %v11614_v62 }
 0x90a   :  { %8174 = vmatmul.mubr.bf16.vlgmr.msra.gmra.mrb[220].mxu1 %v7497_v43 }
 0x90b   :  { %10061 = vmatpush3.bf16.msra.mxu1 %v11615_v59  ;;  %8345 = vmatprep.mubr.bf16.mxu1 %v7500_v46 }
 0x90c   :  { %10062 = vmatprep.subr.bf16.mxu1 %v11616_v63 }
 0x90f   :  { %10063 = vmatpush3.bf16.msra.mxu1 %v11617_v37 }
 0x910   :  { %10064 = vmatprep.subr.bf16.mxu1 %v11618_v19 }
 0x913   :  { %10065 = vmatpush3.bf16.msra.mxu1 %v11619_v57  ;;  %v11638_v57 = vld [vmem:[%s15051_s11] sm:$0xff]  }
 0x914   :  { %10066 = vmatprep.subr.bf16.mxu1 %v11620_v27 }
 0x917   :  { %10067 = vmatpush3.bf16.msra.mxu1 %v11621_v4  ;;  %v11639_v4 = vld [vmem:[%s15051_s11 + $0x8] sm:$0xff]  }
 0x918   :  { %10068 = vmatprep.subr.bf16.mxu1 %v11622_v56  ;;  %v11640_v56 = vld [vmem:[%s15051_s11 + $0x10] sm:$0xff]  }
 0x91b   :  { %10069 = vmatpush3.bf16.msra.mxu1 %v11623_v21  ;;  %v11641_v21 = vld [vmem:[%s15051_s11 + $0x18] sm:$0xff]  }
 0x91c   :  { %10070 = vmatprep.subr.bf16.mxu1 %v11624_v38  ;;  %v11642_v38 = vld [vmem:[%s15051_s11 + $0x20] sm:$0xff]  }
 0x91f   :  { %10071 = vmatpush3.bf16.msra.mxu1 %v11625_v54  ;;  %v11643_v54 = vld [vmem:[%s15051_s11 + $0x28] sm:$0xff]  }
 0x920   :  { %10072 = vmatprep.subr.bf16.mxu1 %v11626_v10  ;;  %v11644_v10 = vld [vmem:[%s15051_s11 + $0x30] sm:$0xff]  }
 0x923   :  { %10073 = vmatpush3.bf16.msra.mxu1 %v11627_v17  ;;  %v11645_v17 = vld [vmem:[%s15051_s11 + $0x38] sm:$0xff]  }
 0x924   :  { %10074 = vmatprep.subr.bf16.mxu1 %v11628_v7  ;;  %v9954_v7 = vld [vmem:[%s15053_s10] ss:$0 sm:$0xff] }
 0x927   :  { %10075 = vmatpush3.bf16.msra.mxu1 %v11629_v25 }
 0x928   :  { %10100 = vmatprep.subr.bf16.mxu1 %v11646_v49 }
 0x92a   :  { %8346 = vmatmul.mubr.bf16.vlgmr.msra.gmra.mrb[224].mxu1 %v7499_v31 }
 0x92b   :  { %10101 = vmatpush3.bf16.msra.mxu1 %v11630_v1  ;;  %10116 = vmatprep.mubr.msk.bf16.mxu1 %vm11647_vm0, %v11646_v49 }
 0x92c   :  { %10102 = vmatprep.subr.bf16.mxu1 %v11646_v49 }
 0x92f   :  { %10103 = vmatpush3.bf16.msra.mxu1 %v11631_v34 }
 0x930   :  { %10104 = vmatprep.subr.bf16.mxu1 %v11646_v49 }
 0x933   :  { %10105 = vmatpush3.bf16.msra.mxu1 %v11632_v14 }
 0x934   :  { %10106 = vmatprep.subr.bf16.mxu1 %v11646_v49 }
 0x937   :  { %10107 = vmatpush3.bf16.msra.mxu1 %v11633_v28 }
 0x938   :  { %10108 = vmatprep.subr.bf16.mxu1 %v11646_v49 }
 0x93b   :  { %10109 = vmatpush3.bf16.msra.mxu1 %v11634_v36 }
 0x93c   :  { %10110 = vmatprep.subr.bf16.mxu1 %v11646_v49 }
 0x93f   :  { %10111 = vmatpush3.bf16.msra.mxu1 %v11635_v45 }
 0x940   :  { %10112 = vmatprep.subr.bf16.mxu1 %v11646_v49 }
 0x943   :  { %10113 = vmatpush3.bf16.msra.mxu1 %v11636_v33 }
 0x944   :  { %10114 = vmatprep.subr.bf16.mxu1 %v11646_v49 }
 0x947   :  { %10115 = vmatpush3.bf16.msra.mxu1 %v11637_v22 }
 0x948   :  { %10120 = vmatprep.subr.bf16.mxu1 %v11646_v49 }
 0x97d   :  { %v9988_v47 = vpop.f32.mrb[208].mxu1 }
 0x97e   :  { %v9989_v2 = vpop.f32.mrb[209].mxu1 }
 0x97f   :  { %v9990_v51 = vadd.f32 %v9989_v2, %v9988_v47  ;;  %v9991_v15 = vpop.f32.mrb[210].mxu1 }
 0x980   :  { %v9992_v42 = vpop.f32.mrb[211].mxu1 }
 0x981   :  { %v9993_v16 = vadd.f32 %v9992_v42, %v9991_v15 }
 0x99d   :  { %v10010_v24 = vpop.f32.mrb[212].mxu1 }
 0x99e   :  { %v10011_v50 = vpop.f32.mrb[213].mxu1 }
 0x99f   :  { %v10012_v13 = vadd.f32 %v10011_v50, %v10010_v24  ;;  %v10013_v5 = vpop.f32.mrb[214].mxu1 }
 0x9a0   :  { %v10014_v29 = vpop.f32.mrb[215].mxu1 }
 0x9a1   :  { %v7834_v18 = vadd.f32 %v10012_v13, %v9990_v51  ;;  %v10015_v58 = vadd.f32 %v10014_v29, %v10013_v5 }
 0x9a3   :  { %v7837_v30 = vadd.f32 %v10015_v58, %v9993_v16 }
 0x9bd   :  { %v10032_v23 = vpop.f32.mrb[216].mxu1 }
 0x9be   :  { %v10033_v3 = vpop.f32.mrb[217].mxu1 }
 0x9bf   :  { %v10034_v52 = vadd.f32 %v10033_v3, %v10032_v23  ;;  %v10035_v41 = vpop.f32.mrb[218].mxu1 }
 0x9c0   :  { %v10036_v26 = vpop.f32.mrb[219].mxu1 }
 0x9c1   :  { %v8010_v32 = vadd.f32 %v10034_v52, %v7834_v18  ;;  %v10037_v39 = vadd.f32 %v10036_v26, %v10035_v41 }
 0x9c3   :  { %v8011_v12 = vadd.f32 %v10037_v39, %v7837_v30 }
 0x9dd   :  { %v10054_v60 = vpop.f32.mrb[220].mxu1 }
 0x9de   :  { %v10055_v6 = vpop.f32.mrb[221].mxu1 }
 0x9df   :  { %v10056_v61 = vadd.f32 %v10055_v6, %v10054_v60  ;;  %v10057_v20 = vpop.f32.mrb[222].mxu1 }
 0x9e0   :  { %v10058_v11 = vpop.f32.mrb[223].mxu1 }
 0x9e1   :  { %v8182_v8 = vadd.f32 %v10056_v61, %v8010_v32  ;;  %v10059_v40 = vadd.f32 %v10058_v11, %v10057_v20 }
 0x9e3   :  { %v8183_v55 = vadd.f32 %v10059_v40, %v8011_v12 }
 0x9fd   :  { %v10076_v0 = vpop.f32.mrb[224].mxu1 }
 0x9fe   :  { %v10077_v53 = vpop.f32.mrb[225].mxu1 }
 0x9ff   :  { %v10078_v9 = vadd.f32 %v10077_v53, %v10076_v0  ;;  %v10079_v44 = vpop.f32.mrb[226].mxu1 }
 0xa00   :  { %v10080_v48 = vpop.f32.mrb[227].mxu1 }
 0xa01   :  { %v8354_v62 = vadd.f32 %v10078_v9, %v8182_v8  ;;  %v10081_v59 = vadd.f32 %v10080_v48, %v10079_v44 }
 0xa03   :  { %v8363_v43 = vadd.f32 %v9953_v35, %v8354_v62  ;;  %v8355_v63 = vadd.f32 %v10081_v59, %v8183_v55 }
 0xa05   :  { %v8364_v46 = vadd.f32 %v9953_v35, %v8355_v63  ;;  %v8365_v37 = vmax.f32 %v8363_v43, 0.0 }
 0xa07   :  { %v8366_v19 = vmax.f32 %v8364_v46, 0.0 }
 0xa09   :  { %v8367_v27 = vpack.c.bf16 %v8366_v19, %v8365_v37 }
 0xa0b   :  { %10117 = vmatmul.mubr.bf16.vlgmr.msra.gmra.mrb[228].mxu1 %v8367_v27 }
 0xa0c   :  { %10121 = vmatpush3.bf16.msra.mxu1 %v11638_v57  ;;  %10136 = vmatprep.mubr.msk.bf16.mxu1 %vm11647_vm0, %v11646_v49 }
 0xa0d   :  { %10122 = vmatprep.subr.bf16.mxu1 %v11646_v49 }
 0xa10   :  { %10123 = vmatpush3.bf16.msra.mxu1 %v11639_v4 }
 0xa11   :  { %10124 = vmatprep.subr.bf16.mxu1 %v11646_v49 }
 0xa14   :  { %10125 = vmatpush3.bf16.msra.mxu1 %v11640_v56 }
 0xa15   :  { %10126 = vmatprep.subr.bf16.mxu1 %v11646_v49 }
 0xa18   :  { %10127 = vmatpush3.bf16.msra.mxu1 %v11641_v21 }
 0xa19   :  { %10128 = vmatprep.subr.bf16.mxu1 %v11646_v49 }
 0xa1c   :  { %10129 = vmatpush3.bf16.msra.mxu1 %v11642_v38 }
 0xa1d   :  { %10130 = vmatprep.subr.bf16.mxu1 %v11646_v49 }
 0xa20   :  { %10131 = vmatpush3.bf16.msra.mxu1 %v11643_v54 }
 0xa21   :  { %10132 = vmatprep.subr.bf16.mxu1 %v11646_v49 }
 0xa24   :  { %10133 = vmatpush3.bf16.msra.mxu1 %v11644_v10 }
 0xa25   :  { %10134 = vmatprep.subr.bf16.mxu1 %v11646_v49  ;;  %v9963_v49 = vld [vmem:[%s15054_s12] ss:$0 sm:$0xff] }
 0xa28   :  { %10135 = vmatpush3.bf16.msra.mxu1 %v11645_v17 }
 0xade   :  { %v8473_v25 = vpop.f32.mrb[228].mxu1 }
 0xadf   :  { %v8474_v31 = vadd.f32 %v9954_v7, %v8473_v25  ;;  %v10118_v1 = vpop.f32.mrb[229].mxu1 }
 0xae0   :  { %v8476_v34 = vpop.f32.mrb[230].mxu1 }
 0xae1   :  { %v8477_v14 = vadd.f32 %v9954_v7, %v8476_v34  ;;  %v10119_v28 = vpop.f32.mrb[231].mxu1  ;;  %v8480_v36 = vmax.f32 %v8474_v31, 0.0 }
 0xae3   :  { %v8481_v47 = vmax.f32 %v8477_v14, 0.0 }
 0xae5   :  { %v8482_v2 = vpack.c.bf16 %v8481_v47, %v8480_v36 }
 0xae7   :  { %10137 = vmatmul.mubr.bf16.vlgmr.msra.gmra.mrb[232].mxu1 %v8482_v2 }
 0xbba   :  { %v8588_v45 = vpop.f32.mrb[232].mxu1 }
 0xbbb   :  { %v8589_v51 = vadd.f32 %v9963_v49, %v8588_v45  ;;  %v10138_v15 = vpop.f32.mrb[233].mxu1 }
 0xbbc   :  { %v8591_v42 = vpop.f32.mrb[234].mxu1 }
 0xbbd   :  { %8595 = vst [vmem:[%s15055_s13] sm:$0xff] %v8589_v51  ;;  %v8592_v16 = vadd.f32 %v9963_v49, %v8591_v42  ;;  %v10139_v33 = vpop.f32.mrb[235].mxu1 }
 0xbbf   :  { %8596 = vst [vmem:[%s15055_s13 + $0x8] sm:$0xff] %v8592_v16 }

</bundles_post_ra>
